<compile_context>
chip_gen: v7x
topology: tpu7x:2x2x1
jax: 0.10.0
libtpu: 0.0.40
codegen_flags: <defaults>
</compile_context>

<pallas_src>
import functools

import jax
import jax.numpy as jnp
from jax import lax
from jax.experimental import pallas as pl
from jax.experimental.pallas import tpu as pltpu

EPS = 1e-5
LANE = 128


def _round_up(v, m):
    return (v + m - 1) // m * m


def _pick_batch_tile(n, hw, max_rows):
    """Images per grid step: as many as fit the row budget, dividing n."""
    bt = max(1, min(n, max_rows // max(hw, 1)))
    while n % bt:
        bt -= 1
    if (bt * hw) % 8 != 0:       # block rows must be sublane-aligned unless full
        bt = n
    return bt


# ----------------------------------------------------------------------------
# In-kernel helpers (operate on traced VMEM values)
# ----------------------------------------------------------------------------
def _pad_hw(t, H, W, C):
    """Zero-pad (H, W, C) -> (H+2, W+2, C) in VMEM via concatenation."""
    dt = t.dtype
    zc = jnp.zeros((H, 1, C), dt)
    t = jnp.concatenate([zc, t, zc], axis=1)          # (H, W+2, C)
    zr = jnp.zeros((1, W + 2, C), dt)
    return jnp.concatenate([zr, t, zr], axis=0)       # (H+2, W+2, C)


def _tap_matrix(t, H, W, C):
    """(H, W, C) -> (H*W, 9*C): im2col for a 3x3 / pad-1 conv, built in VMEM."""
    tp = _pad_hw(t, H, W, C)
    taps = [tp[kh:kh + H, kw:kw + W, :] for kh in range(3) for kw in range(3)]
    return jnp.concatenate(taps, axis=-1).reshape(H * W, 9 * C)


def _tap_matrix_batched(x, B, H, W, C):
    """(B, H, W, C) -> (B*H*W, 9*C), padding each image independently."""
    mats = [_tap_matrix(x[b], H, W, C) for b in range(B)]
    return mats[0] if B == 1 else jnp.concatenate(mats, axis=0)


# ----------------------------------------------------------------------------
# Pallas kernels
# ----------------------------------------------------------------------------
def _stage1_kernel(x_ref, w1_ref, b1_ref, *rest,
                   B, H, W, CI, CO, mm_dtype, apply_proj):
    """conv1 (folded 3x3) + bias, residual-branch BN statistics.

    x_ref : (B, H, W, CI)    f32 input images (channels padded)
    w1_ref: (9*CI, CO)       folded conv1 weights (mm_dtype)
    rest  : [wres_ref (CI,CO), bres_ref (1,CO)]  (only if apply_proj)
            z1_ref (B*H*W, CO)  pre-BN conv1 output (f32)
            st_ref (1, 8, CO)   rows: sum(z1), sum(z1^2), sum(r), sum(r^2), 0...
    """
    if apply_proj:
        wres_ref, bres_ref, z1_ref, st_ref = rest
    else:
        z1_ref, st_ref = rest

    hw = H * W
    x = x_ref[...]                                                   # (B,H,W,CI) f32
    mat = _tap_matrix_batched(x.astype(mm_dtype), B, H, W, CI)       # (B*hw, 9*CI)
    z1 = jnp.dot(mat, w1_ref[...], preferred_element_type=jnp.float32)
    z1 = z1 + b1_ref[...]        # bias (cancelled by BN, kept for faithfulness)
    z1_ref[...] = z1

    # Residual branch: only its BN3 statistics are needed here; the values are
    # recomputed (or re-read from x) in the combine stage -> no HBM round-trip.
    x_flat = x.reshape(B * hw, CI)
    if apply_proj:
        r = jnp.dot(x_flat.astype(mm_dtype), wres_ref[...],
                    preferred_element_type=jnp.float32) + bres_ref[...]
    else:
        r = x_flat                                                   # CI == CO here

    st = jnp.concatenate([
        jnp.sum(z1, axis=0, keepdims=True),
        jnp.sum(z1 * z1, axis=0, keepdims=True),
        jnp.sum(r, axis=0, keepdims=True),
        jnp.sum(r * r, axis=0, keepdims=True),
        jnp.zeros((4, CO), jnp.float32),
    ], axis=0)
    st_ref[...] = st[None]


def _stage2_kernel(z1_ref, sc1_ref, sh1_ref, w2_ref, b2_ref, z2_ref, st_ref,
                   *, B, H, W, CO, mm_dtype):
    """fused BN1-affine + ReLU, then conv2 (folded 3x3) + bias, BN2 partials."""
    hw = H * W
    y = jnp.maximum(z1_ref[...] * sc1_ref[...] + sh1_ref[...], 0.0)  # (B*hw, CO) f32
    ym = y.astype(mm_dtype)
    mats = [_tap_matrix(ym[b * hw:(b + 1) * hw].reshape(H, W, CO), H, W, CO)
            for b in range(B)]
    mat = mats[0] if B == 1 else jnp.concatenate(mats, axis=0)       # (B*hw, 9*CO)
    z2 = jnp.dot(mat, w2_ref[...], preferred_element_type=jnp.float32) + b2_ref[...]
    z2_ref[...] = z2
    st = jnp.concatenate([
        jnp.sum(z2, axis=0, keepdims=True),
        jnp.sum(z2 * z2, axis=0, keepdims=True),
        jnp.zeros((6, CO), jnp.float32),
    ], axis=0)
    st_ref[...] = st[None]


def _combine_kernel(z2_ref, x_ref, sc2_ref, sh2_ref, sc3_ref, sh3_ref, *rest,
                    mm_dtype, apply_proj):
    """BN2-affine(main) + residual (recomputed 1x1 proj or x) + BN3 + add + ReLU."""
    if apply_proj:
        wres_ref, bres_ref, o_ref = rest
    else:
        (o_ref,) = rest
    main = z2_ref[...] * sc2_ref[...] + sh2_ref[...]
    if apply_proj:
        r = jnp.dot(x_ref[...].astype(mm_dtype), wres_ref[...],
                    preferred_element_type=jnp.float32) + bres_ref[...]
    else:
        r = x_ref[...]
    o_ref[...] = jnp.maximum(main + r * sc3_ref[...] + sh3_ref[...], 0.0)


# ----------------------------------------------------------------------------
# Wrapper
# ----------------------------------------------------------------------------
def _pad_last(a, to):
    pad = to - a.shape[-1]
    if pad == 0:
        return a.astype(jnp.float32)
    return jnp.pad(a.astype(jnp.float32), [(0, 0)] * (a.ndim - 1) + [(0, pad)])


def _fold_conv3x3(w, ci_pad, co_pad, dtype):
    """(Cout, Cin, 3, 3) OIHW -> (9*ci_pad, co_pad), tap order (kh, kw)."""
    cout, cin = w.shape[0], w.shape[1]
    wt = jnp.transpose(w, (2, 3, 1, 0))                              # (3,3,Cin,Cout)
    wt = jnp.pad(wt, ((0, 0), (0, 0), (0, ci_pad - cin), (0, co_pad - cout)))
    return wt.reshape(9 * ci_pad, co_pad).astype(dtype)


def _bn_affine(s, q, g, bt, count):
    """Fold batch stats into per-channel scale/shift: y = x*scale + shift."""
    mean = s / count
    var = jnp.maximum(q / count - mean * mean, 0.0)
    scale = g * lax.rsqrt(var + EPS)
    shift = bt - mean * scale
    return scale, shift


def res_block_forward(x_nchw, params, in_channels, out_channels, stride_shape=1,
                      matmul_dtype=jnp.bfloat16, max_rows_per_step=1024):
    assert stride_shape == 1, "only stride 1 implemented"  # TODO(synk): stride > 1
    apply_proj = not (in_channels == out_channels and stride_shape == 1)

    n, cin, h, w = x_nchw.shape
    assert cin == in_channels
    cout = out_channels
    hw = h * w
    m = n * hw
    ci_pad = _round_up(cin, LANE)
    co_pad = _round_up(cout, LANE)
    if not apply_proj:
        assert ci_pad == co_pad

    bt = _pick_batch_tile(n, hw, max_rows_per_step)   # images per grid step
    steps = n // bt
    rows = bt * hw                                    # row block per grid step

    # NHWC, f32, channel-padded to a lane-dense multiple of 128.
    x = jnp.transpose(x_nchw, (0, 2, 3, 1)).astype(jnp.float32)
    x = jnp.pad(x, ((0, 0), (0, 0), (0, 0), (0, ci_pad - cin)))      # (N,H,W,ci_pad)
    x2d = x.reshape(m, ci_pad)                                       # same HBM layout

    # Folded / padded weights and BN parameters (weights in matmul dtype).
    w1f = _fold_conv3x3(params["w1"], ci_pad, co_pad, matmul_dtype)
    w2f = _fold_conv3x3(params["w2"], co_pad, co_pad, matmul_dtype)
    b1 = _pad_last(params["b1"], co_pad)
    b2 = _pad_last(params["b2"], co_pad)
    g1, bt1 = _pad_last(params["g1"], co_pad), _pad_last(params["bt1"], co_pad)
    g2, bt2 = _pad_last(params["g2"], co_pad), _pad_last(params["bt2"], co_pad)
    g3, bt3 = _pad_last(params["g3"], co_pad), _pad_last(params["bt3"], co_pad)
    if apply_proj:
        wrf = jnp.pad(jnp.transpose(params["wres"][:, :, 0, 0], (1, 0)),
                      ((0, ci_pad - cin), (0, co_pad - cout))).astype(matmul_dtype)
        brs = _pad_last(params["bres"], co_pad)

    cp = pltpu.CompilerParams(dimension_semantics=("parallel",),
                              vmem_limit_bytes=32 * 1024 * 1024)
    row_spec = pl.BlockSpec((rows, co_pad), lambda i: (i, 0))
    xrow_spec = pl.BlockSpec((rows, ci_pad), lambda i: (i, 0))
    vec_spec = pl.BlockSpec((1, co_pad), lambda i: (0, 0))
    st_spec = pl.BlockSpec((1, 8, co_pad), lambda i: (i, 0, 0))
    w1_spec = pl.BlockSpec((9 * ci_pad, co_pad), lambda i: (0, 0))
    w2_spec = pl.BlockSpec((9 * co_pad, co_pad), lambda i: (0, 0))
    wres_spec = pl.BlockSpec((ci_pad, co_pad), lambda i: (0, 0))
    x4d_spec = pl.BlockSpec((bt, h, w, ci_pad), lambda i: (i, 0, 0, 0))

    # ---- stage 1: conv1 + residual-branch BN stats --------------------------
    k1 = functools.partial(_stage1_kernel, B=bt, H=h, W=w, CI=ci_pad, CO=co_pad,
                           mm_dtype=matmul_dtype, apply_proj=apply_proj)
    in_specs = [x4d_spec, w1_spec, vec_spec]
    args = [x, w1f, b1]
    if apply_proj:
        in_specs += [wres_spec, vec_spec]
        args += [wrf, brs]

    z1, st1 = pl.pallas_call(
        k1, grid=(steps,), in_specs=in_specs,
        out_specs=(row_spec, st_spec),
        out_shape=(jax.ShapeDtypeStruct((m, co_pad), jnp.float32),
                   jax.ShapeDtypeStruct((steps, 8, co_pad), jnp.float32)),
        compiler_params=cp,
    )(*args)

    red1 = jnp.sum(st1, axis=0)                                      # (8, co_pad)
    sc1, sh1 = _bn_affine(red1[0:1], red1[1:2], g1, bt1, m)          # BN1
    sc3, sh3 = _bn_affine(red1[2:3], red1[3:4], g3, bt3, m)          # BN3 (residual)

    # ---- stage 2: BN1 affine + ReLU fused with conv2 -------------------------
    k2 = functools.partial(_stage2_kernel, B=bt, H=h, W=w, CO=co_pad,
                           mm_dtype=matmul_dtype)
    z2, st2 = pl.pallas_call(
        k2, grid=(steps,),
        in_specs=[row_spec, vec_spec, vec_spec, w2_spec, vec_spec],
        out_specs=(row_spec, st_spec),
        out_shape=(jax.ShapeDtypeStruct((m, co_pad), jnp.float32),
                   jax.ShapeDtypeStruct((steps, 8, co_pad), jnp.float32)),
        compiler_params=cp,
    )(z1, sc1, sh1, w2f, b2)

    red2 = jnp.sum(st2, axis=0)
    sc2, sh2 = _bn_affine(red2[0:1], red2[1:2], g2, bt2, m)          # BN2

    # ---- stage 3: BN2(main) + recomputed residual + BN3 + add + ReLU ---------
    k3 = functools.partial(_combine_kernel, mm_dtype=matmul_dtype,
                           apply_proj=apply_proj)
    in_specs3 = [row_spec, xrow_spec, vec_spec, vec_spec, vec_spec, vec_spec]
    args3 = [z2, x2d, sc2, sh2, sc3, sh3]
    if apply_proj:
        in_specs3 += [wres_spec, vec_spec]
        args3 += [wrf, brs]

    out = pl.pallas_call(
        k3, grid=(steps,), in_specs=in_specs3, out_specs=row_spec,
        out_shape=jax.ShapeDtypeStruct((m, co_pad), jnp.float32),
        compiler_params=cp,
    )(*args3)

    out = out[:, :cout].reshape(n, h, w, cout)
    return jnp.transpose(out, (0, 3, 1, 2))                          # back to NCHW


# ----------------------------------------------------------------------------
# Pure-JAX reference (for correctness checks)
# ----------------------------------------------------------------------------
def _ref_forward(x, params, in_channels, out_channels, matmul_dtype=jnp.float32):
    dt = matmul_dtype

    def conv(v, wgt, bias, pad):
        y = lax.conv_general_dilated(v.astype(dt), wgt.astype(dt), (1, 1),
                                     ((pad, pad), (pad, pad)),
                                     dimension_numbers=("NCHW", "OIHW", "NCHW"),
                                     preferred_element_type=jnp.float32)
        return y + bias.reshape(1, -1, 1, 1)

    def bn(v, g, bt):
        mean = v.mean((0, 2, 3), keepdims=True)
        var = jnp.mean((v - mean) ** 2, (0, 2, 3), keepdims=True)
        return (v - mean) / jnp.sqrt(var + EPS) * g.reshape(1, -1, 1, 1) + bt.reshape(1, -1, 1, 1)

    y = jnp.maximum(bn(conv(x, params["w1"], params["b1"][0], 1),
                       params["g1"][0], params["bt1"][0]), 0.0)
    y = bn(conv(y, params["w2"], params["b2"][0], 1), params["g2"][0], params["bt2"][0])
    r = x
    if in_channels != out_channels:
        r = conv(x, params["wres"], params["bres"][0], 0)
    r = bn(r, params["g3"][0], params["bt3"][0])
    return jnp.maximum(y + r, 0.0)


def _make_params(key, cin, cout):
    ks = jax.random.split(key, 12)
    return {
        "w1":  0.1 * jax.random.normal(ks[0], (cout, cin, 3, 3), jnp.float32),
        "b1":  0.1 * jax.random.normal(ks[1], (1, cout), jnp.float32),
        "g1":  1.0 + 0.1 * jax.random.normal(ks[2], (1, cout), jnp.float32),
        "bt1": 0.1 * jax.random.normal(ks[3], (1, cout), jnp.float32),
        "w2":  0.1 * jax.random.normal(ks[4], (cout, cout, 3, 3), jnp.float32),
        "b2":  0.1 * jax.random.normal(ks[5], (1, cout), jnp.float32),
        "g2":  1.0 + 0.1 * jax.random.normal(ks[6], (1, cout), jnp.float32),
        "bt2": 0.1 * jax.random.normal(ks[7], (1, cout), jnp.float32),
        "wres": 0.1 * jax.random.normal(ks[8], (cout, cin, 1, 1), jnp.float32),
        "bres": 0.1 * jax.random.normal(ks[9], (1, cout), jnp.float32),
        "g3":  1.0 + 0.1 * jax.random.normal(ks[10], (1, cout), jnp.float32),
        "bt3": 0.1 * jax.random.normal(ks[11], (1, cout), jnp.float32),
    }


# ----------------------------------------------------------------------------
if __name__ == "__main__":
    N, CIN, COUT, H, W = 2, 4, 8, 16, 16

    key = jax.random.PRNGKey(0)
    kp, kx, kp2, kx2 = jax.random.split(key, 4)
    params = _make_params(kp, CIN, COUT)
    x = jax.random.normal(kx, (N, CIN, H, W), jnp.float32)

    # 1) projection path, f32 MXU operands -> tight check vs f32 reference
    out32 = jax.block_until_ready(
        res_block_forward(x, params, CIN, COUT, matmul_dtype=jnp.float32))
    ref32 = _ref_forward(x, params, CIN, COUT, matmul_dtype=jnp.float32)
    assert out32.shape == (N, COUT, H, W), out32.shape
    assert jnp.allclose(out32, ref32, atol=1e-3, rtol=1e-3), \
        float(jnp.max(jnp.abs(out32 - ref32)))

    # 2) projection path, bf16 MXU operands (default) vs a bf16-input reference
    #    (both round conv inputs to bf16; remaining diff is f32 accumulation order)
    outbf = jax.block_until_ready(res_block_forward(x, params, CIN, COUT))
    refbf = _ref_forward(x, params, CIN, COUT, matmul_dtype=jnp.bfloat16)
    assert jnp.allclose(outbf, refbf, atol=5e-3, rtol=5e-3), \
        float(jnp.max(jnp.abs(outbf - refbf)))

    # 3) identity-residual path (in_channels == out_channels, no 1x1 projection)
    params_id = _make_params(kp2, COUT, COUT)
    x_id = jax.random.normal(kx2, (N, COUT, H, W), jnp.float32)
    out_id = jax.block_until_ready(
        res_block_forward(x_id, params_id, COUT, COUT, matmul_dtype=jnp.float32))
    ref_id = _ref_forward(x_id, params_id, COUT, COUT, matmul_dtype=jnp.float32)
    assert jnp.allclose(out_id, ref_id, atol=1e-3, rtol=1e-3), \
        float(jnp.max(jnp.abs(out_id - ref_id)))

    print("KERNEL_OK")
</pallas_src>

<mosaic_0001>
module attributes {stable_mosaic.version = 11 : i64} {
  func.func @_stage1_kernel(%arg0: i32, %arg1: memref<2x16x16x128xf32, #tpu.memory_space<vmem>>, %arg2: memref<1152x128xf32, #tpu.memory_space<vmem>>, %arg3: memref<1x128xf32, #tpu.memory_space<vmem>>, %arg4: memref<128x128xf32, #tpu.memory_space<vmem>>, %arg5: memref<1x128xf32, #tpu.memory_space<vmem>>, %arg6: memref<512x128xf32, #tpu.memory_space<vmem>>, %arg7: memref<1x8x128xf32, #tpu.memory_space<vmem>>) attributes {dimension_semantics = [#tpu.dimension_semantics<parallel>], iteration_bounds = array<i64: 1>, scalar_prefetch = 0 : i64, scratch_operands = 0 : i64, tpu.core_type = #tpu.core_type<tc>, window_params = [{transform_indices = @transform_0, window_bounds = array<i64: 2, 16, 16, 128>}, {pipeline_mode = #tpu.pipeline_mode<synchronous>, transform_indices = @transform_1, window_bounds = array<i64: 1152, 128>}, {pipeline_mode = #tpu.pipeline_mode<synchronous>, transform_indices = @transform_2, window_bounds = array<i64: 1, 128>}, {pipeline_mode = #tpu.pipeline_mode<synchronous>, transform_indices = @transform_3, window_bounds = array<i64: 128, 128>}, {pipeline_mode = #tpu.pipeline_mode<synchronous>, transform_indices = @transform_4, window_bounds = array<i64: 1, 128>}, {transform_indices = @transform_5, window_bounds = array<i64: 512, 128>}, {transform_indices = @transform_6, window_bounds = array<i64: 1, 8, 128>}]} {
    %c0 = arith.constant 0 : index
    %c0_0 = arith.constant 0 : index
    %c0_1 = arith.constant 0 : index
    %c0_2 = arith.constant 0 : index
    %0 = vector.load %arg1[%c0, %c0_0, %c0_1, %c0_2] : memref<2x16x16x128xf32, #tpu.memory_space<vmem>>, vector<2x16x16x128xf32>
    %1 = vector.extract_strided_slice %0 {offsets = [0, 0, 0, 0], sizes = [1, 16, 16, 128], strides = [1, 1, 1, 1]} : vector<2x16x16x128xf32> to vector<1x16x16x128xf32>
    %2 = vector.shape_cast %1 : vector<1x16x16x128xf32> to vector<16x16x128xf32>
    %cst = arith.constant 0.000000e+00 : f32
    %3 = vector.broadcast %cst : f32 to vector<16x1x128xf32>
    %4 = tpu.concatenate %3, %2, %3 in 1 : vector<16x1x128xf32>, vector<16x16x128xf32>, vector<16x1x128xf32> -> vector<16x18x128xf32>
    %cst_3 = arith.constant 0.000000e+00 : f32
    %5 = vector.broadcast %cst_3 : f32 to vector<1x18x128xf32>
    %6 = tpu.concatenate %5, %4, %5 in 0 : vector<1x18x128xf32>, vector<16x18x128xf32>, vector<1x18x128xf32> -> vector<18x18x128xf32>
    %7 = vector.extract_strided_slice %6 {offsets = [0, 0, 0], sizes = [16, 16, 128], strides = [1, 1, 1]} : vector<18x18x128xf32> to vector<16x16x128xf32>
    %8 = vector.extract_strided_slice %6 {offsets = [0, 1, 0], sizes = [16, 16, 128], strides = [1, 1, 1]} : vector<18x18x128xf32> to vector<16x16x128xf32>
    %9 = vector.extract_strided_slice %6 {offsets = [0, 2, 0], sizes = [16, 16, 128], strides = [1, 1, 1]} : vector<18x18x128xf32> to vector<16x16x128xf32>
    %10 = vector.extract_strided_slice %6 {offsets = [1, 0, 0], sizes = [16, 16, 128], strides = [1, 1, 1]} : vector<18x18x128xf32> to vector<16x16x128xf32>
    %11 = vector.extract_strided_slice %6 {offsets = [1, 1, 0], sizes = [16, 16, 128], strides = [1, 1, 1]} : vector<18x18x128xf32> to vector<16x16x128xf32>
    %12 = vector.extract_strided_slice %6 {offsets = [1, 2, 0], sizes = [16, 16, 128], strides = [1, 1, 1]} : vector<18x18x128xf32> to vector<16x16x128xf32>
    %13 = vector.extract_strided_slice %6 {offsets = [2, 0, 0], sizes = [16, 16, 128], strides = [1, 1, 1]} : vector<18x18x128xf32> to vector<16x16x128xf32>
    %14 = vector.extract_strided_slice %6 {offsets = [2, 1, 0], sizes = [16, 16, 128], strides = [1, 1, 1]} : vector<18x18x128xf32> to vector<16x16x128xf32>
    %15 = vector.extract_strided_slice %6 {offsets = [2, 2, 0], sizes = [16, 16, 128], strides = [1, 1, 1]} : vector<18x18x128xf32> to vector<16x16x128xf32>
    %16 = tpu.concatenate %7, %8, %9, %10, %11, %12, %13, %14, %15 in 2 : vector<16x16x128xf32>, vector<16x16x128xf32>, vector<16x16x128xf32>, vector<16x16x128xf32>, vector<16x16x128xf32>, vector<16x16x128xf32>, vector<16x16x128xf32>, vector<16x16x128xf32>, vector<16x16x128xf32> -> vector<16x16x1152xf32>
    %17 = vector.shape_cast %16 : vector<16x16x1152xf32> to vector<256x1152xf32>
    %18 = vector.extract_strided_slice %0 {offsets = [1, 0, 0, 0], sizes = [1, 16, 16, 128], strides = [1, 1, 1, 1]} : vector<2x16x16x128xf32> to vector<1x16x16x128xf32>
    %19 = vector.shape_cast %18 : vector<1x16x16x128xf32> to vector<16x16x128xf32>
    %cst_4 = arith.constant 0.000000e+00 : f32
    %20 = vector.broadcast %cst_4 : f32 to vector<16x1x128xf32>
    %21 = tpu.concatenate %20, %19, %20 in 1 : vector<16x1x128xf32>, vector<16x16x128xf32>, vector<16x1x128xf32> -> vector<16x18x128xf32>
    %cst_5 = arith.constant 0.000000e+00 : f32
    %22 = vector.broadcast %cst_5 : f32 to vector<1x18x128xf32>
    %23 = tpu.concatenate %22, %21, %22 in 0 : vector<1x18x128xf32>, vector<16x18x128xf32>, vector<1x18x128xf32> -> vector<18x18x128xf32>
    %24 = vector.extract_strided_slice %23 {offsets = [0, 0, 0], sizes = [16, 16, 128], strides = [1, 1, 1]} : vector<18x18x128xf32> to vector<16x16x128xf32>
    %25 = vector.extract_strided_slice %23 {offsets = [0, 1, 0], sizes = [16, 16, 128], strides = [1, 1, 1]} : vector<18x18x128xf32> to vector<16x16x128xf32>
    %26 = vector.extract_strided_slice %23 {offsets = [0, 2, 0], sizes = [16, 16, 128], strides = [1, 1, 1]} : vector<18x18x128xf32> to vector<16x16x128xf32>
    %27 = vector.extract_strided_slice %23 {offsets = [1, 0, 0], sizes = [16, 16, 128], strides = [1, 1, 1]} : vector<18x18x128xf32> to vector<16x16x128xf32>
    %28 = vector.extract_strided_slice %23 {offsets = [1, 1, 0], sizes = [16, 16, 128], strides = [1, 1, 1]} : vector<18x18x128xf32> to vector<16x16x128xf32>
    %29 = vector.extract_strided_slice %23 {offsets = [1, 2, 0], sizes = [16, 16, 128], strides = [1, 1, 1]} : vector<18x18x128xf32> to vector<16x16x128xf32>
    %30 = vector.extract_strided_slice %23 {offsets = [2, 0, 0], sizes = [16, 16, 128], strides = [1, 1, 1]} : vector<18x18x128xf32> to vector<16x16x128xf32>
    %31 = vector.extract_strided_slice %23 {offsets = [2, 1, 0], sizes = [16, 16, 128], strides = [1, 1, 1]} : vector<18x18x128xf32> to vector<16x16x128xf32>
    %32 = vector.extract_strided_slice %23 {offsets = [2, 2, 0], sizes = [16, 16, 128], strides = [1, 1, 1]} : vector<18x18x128xf32> to vector<16x16x128xf32>
    %33 = tpu.concatenate %24, %25, %26, %27, %28, %29, %30, %31, %32 in 2 : vector<16x16x128xf32>, vector<16x16x128xf32>, vector<16x16x128xf32>, vector<16x16x128xf32>, vector<16x16x128xf32>, vector<16x16x128xf32>, vector<16x16x128xf32>, vector<16x16x128xf32>, vector<16x16x128xf32> -> vector<16x16x1152xf32>
    %34 = vector.shape_cast %33 : vector<16x16x1152xf32> to vector<256x1152xf32>
    %35 = tpu.concatenate %17, %34 in 0 : vector<256x1152xf32>, vector<256x1152xf32> -> vector<512x1152xf32>
    %c0_6 = arith.constant 0 : index
    %c0_7 = arith.constant 0 : index
    %36 = vector.load %arg2[%c0_6, %c0_7] : memref<1152x128xf32, #tpu.memory_space<vmem>>, vector<1152x128xf32>
    %cst_8 = arith.constant dense<0.000000e+00> : vector<512x128xf32>
    %37 = tpu.matmul %35, %36, %cst_8 {dimension_numbers = #tpu.dot_dimension_numbers<[1], [0], [0], [1], [0, 0, 1, 1], [], []>} : vector<512x1152xf32>, vector<1152x128xf32>, vector<512x128xf32> -> vector<512x128xf32>
    %c0_9 = arith.constant 0 : index
    %c0_10 = arith.constant 0 : index
    %38 = vector.load %arg3[%c0_9, %c0_10] : memref<1x128xf32, #tpu.memory_space<vmem>>, vector<1x128xf32>
    %39 = vector.broadcast %38 : vector<1x128xf32> to vector<512x128xf32>
    %40 = arith.addf %37, %39 : vector<512x128xf32>
    %c0_11 = arith.constant 0 : index
    %c0_12 = arith.constant 0 : index
    %41 = vector.load %arg6[%c0_11, %c0_12] : memref<512x128xf32, #tpu.memory_space<vmem>>, vector<512x128xf32>
    tpu.vector_store %arg6[%c0_11, %c0_12], %40 {strides = array<i32>} : memref<512x128xf32, #tpu.memory_space<vmem>>, vector<512x128xf32>,
    %42 = vector.shape_cast %0 : vector<2x16x16x128xf32> to vector<512x128xf32>
    %c0_13 = arith.constant 0 : index
    %c0_14 = arith.constant 0 : index
    %43 = vector.load %arg4[%c0_13, %c0_14] : memref<128x128xf32, #tpu.memory_space<vmem>>, vector<128x128xf32>
    %cst_15 = arith.constant dense<0.000000e+00> : vector<512x128xf32>
    %44 = tpu.matmul %42, %43, %cst_15 {dimension_numbers = #tpu.dot_dimension_numbers<[1], [0], [0], [1], [0, 0, 1, 1], [], []>} : vector<512x128xf32>, vector<128x128xf32>, vector<512x128xf32> -> vector<512x128xf32>
    %c0_16 = arith.constant 0 : index
    %c0_17 = arith.constant 0 : index
    %45 = vector.load %arg5[%c0_16, %c0_17] : memref<1x128xf32, #tpu.memory_space<vmem>>, vector<1x128xf32>
    %46 = vector.broadcast %45 : vector<1x128xf32> to vector<512x128xf32>
    %47 = arith.addf %44, %46 : vector<512x128xf32>
    %cst_18 = arith.constant dense<0.000000e+00> : vector<128xf32>
    %48 = vector.multi_reduction <add>, %40, %cst_18 [0] : vector<512x128xf32> to vector<128xf32>
    %49 = vector.shape_cast %48 : vector<128xf32> to vector<1x128xf32>
    %50 = arith.mulf %40, %40 : vector<512x128xf32>
    %cst_19 = arith.constant dense<0.000000e+00> : vector<128xf32>
    %51 = vector.multi_reduction <add>, %50, %cst_19 [0] : vector<512x128xf32> to vector<128xf32>
    %52 = vector.shape_cast %51 : vector<128xf32> to vector<1x128xf32>
    %cst_20 = arith.constant dense<0.000000e+00> : vector<128xf32>
    %53 = vector.multi_reduction <add>, %47, %cst_20 [0] : vector<512x128xf32> to vector<128xf32>
    %54 = vector.shape_cast %53 : vector<128xf32> to vector<1x128xf32>
    %55 = arith.mulf %47, %47 : vector<512x128xf32>
    %cst_21 = arith.constant dense<0.000000e+00> : vector<128xf32>
    %56 = vector.multi_reduction <add>, %55, %cst_21 [0] : vector<512x128xf32> to vector<128xf32>
    %57 = vector.shape_cast %56 : vector<128xf32> to vector<1x128xf32>
    %cst_22 = arith.constant 0.000000e+00 : f32
    %58 = vector.broadcast %cst_22 : f32 to vector<4x128xf32>
    %59 = tpu.concatenate %49, %52, %54, %57, %58 in 0 : vector<1x128xf32>, vector<1x128xf32>, vector<1x128xf32>, vector<1x128xf32>, vector<4x128xf32> -> vector<8x128xf32>
    %60 = vector.shape_cast %59 : vector<8x128xf32> to vector<1x8x128xf32>
    %c0_23 = arith.constant 0 : index
    %c0_24 = arith.constant 0 : index
    %c0_25 = arith.constant 0 : index
    %61 = vector.load %arg7[%c0_23, %c0_24, %c0_25] : memref<1x8x128xf32, #tpu.memory_space<vmem>>, vector<1x8x128xf32>
    tpu.vector_store %arg7[%c0_23, %c0_24, %c0_25], %60 {strides = array<i32>} : memref<1x8x128xf32, #tpu.memory_space<vmem>>, vector<1x8x128xf32>,
    return
  }
  func.func @transform_0(%arg0: i32) -> (i32, i32, i32, i32) {
    %c0_i32 = arith.constant 0 : i32
    %c0_i32_0 = arith.constant 0 : i32
    %c0_i32_1 = arith.constant 0 : i32
    %c0_i32_2 = arith.constant 0 : i32
    return %arg0, %c0_i32, %c0_i32_0, %c0_i32_1 : i32, i32, i32, i32
  }
  func.func @transform_1(%arg0: i32) -> (i32, i32) {
    %c0_i32 = arith.constant 0 : i32
    %c0_i32_0 = arith.constant 0 : i32
    %c0_i32_1 = arith.constant 0 : i32
    return %c0_i32, %c0_i32_0 : i32, i32
  }
  func.func @transform_2(%arg0: i32) -> (i32, i32) {
    %c0_i32 = arith.constant 0 : i32
    %c0_i32_0 = arith.constant 0 : i32
    %c0_i32_1 = arith.constant 0 : i32
    return %c0_i32, %c0_i32_0 : i32, i32
  }
  func.func @transform_3(%arg0: i32) -> (i32, i32) {
    %c0_i32 = arith.constant 0 : i32
    %c0_i32_0 = arith.constant 0 : i32
    %c0_i32_1 = arith.constant 0 : i32
    return %c0_i32, %c0_i32_0 : i32, i32
  }
  func.func @transform_4(%arg0: i32) -> (i32, i32) {
    %c0_i32 = arith.constant 0 : i32
    %c0_i32_0 = arith.constant 0 : i32
    %c0_i32_1 = arith.constant 0 : i32
    return %c0_i32, %c0_i32_0 : i32, i32
  }
  func.func @transform_5(%arg0: i32) -> (i32, i32) {
    %c0_i32 = arith.constant 0 : i32
    %c0_i32_0 = arith.constant 0 : i32
    return %arg0, %c0_i32 : i32, i32
  }
  func.func @transform_6(%arg0: i32) -> (i32, i32, i32) {
    %c0_i32 = arith.constant 0 : i32
    %c0_i32_0 = arith.constant 0 : i32
    %c0_i32_1 = arith.constant 0 : i32
    return %arg0, %c0_i32, %c0_i32_0 : i32, i32, i32
  }
}

</mosaic_0001>

<bundles_post_ra>
// kernel: tpu_custom_call.1
= control target key start
LH: loop header
LB: loop body
LE: loop exit
PB: predicated region body
PF: predicated region fallthrough
CT: control target
= control target key end

     0   :  { %12 = vsyncpa [#allocation3], 0  ;;  %s7855_s0 = inlined_call_operand.hbm [shape: f32[2,16,16,128], index: 0, kind: input, shape index: {}]   ;;  %s7856_s1 = inlined_call_operand.hbm [shape: f32[1152,128], index: 1, kind: input, shape index: {}]   ;;  %s7857_s2 = inlined_call_operand.vmem [shape: f32[1,128], index: 2, kind: input, shape index: {}]   ;;  %s7858_s3 = inlined_call_operand.hbm [shape: f32[128,128], index: 3, kind: input, shape index: {}]   ;;  %s7859_s4 = inlined_call_operand.vmem [shape: f32[1,128], index: 4, kind: input, shape index: {}]   ;;  %s7860_s5 = inlined_call_operand.hbm [shape: f32[512,128], index: 5, kind: output, shape index: {0}]   ;;  %s7861_s6 = inlined_call_operand.hbm [shape: f32[1,8,128], index: 6, kind: output, shape index: {1}]  }
   0x1   :  { %13 = vsyncpa [#allocation6], 0 }
   0x2   :  { %14 = vsyncpa [#allocation4], 0 }
   0x3   :  { %15 = vsyncpa [#allocation10], 0  ;;  %s5428_s21 = smov [#allocation5]   ;;  %s5429_s23 = smov [#allocation2]  }
   0x4   :  { %s33_s22 = sshll.u32 %s5428_s21, 4  ;;  %s21_s24 = sshll.u32 %s5429_s23, 4  ;;  %s34_s22 = int_to_ptr.vmem [resolvable:$true] %s33_s22  ;;  %s5472_s24 = int_to_ptr.vmem [resolvable:$true] %s21_s24 }
   0x5   :  { %s5310_s27 = scalar_lea.hbm %s7856_s1, 18432 }
   0x6   :  { %p5311_p0 = scmp.ne.s32.totalorder %s7856_s1, %s5310_s27  ;;  %p5314_p1 = scmp.lt.u32.totalorder %s5310_s27, %s7856_s1 }
   0x8   :  { %p5316_p2 = pnand %p5314_p1, %p5311_p0 }
   0xa   :  { %5319 = shalt.err (!%p5316_p2)
}
   0xb   :  { %s5320_s8 = scalar_lea.vmem %s34_s22, 18432  ;;  %p5325_p4 = scmp.lt.s32.totalorder %s34_s22, %s34_s22 }
   0xc   :  { %p5321_p3 = scmp.ne.s32.totalorder %s34_s22, %s5320_s8  ;;  %p5326_p5 = scmp.lt.s32.totalorder %s5320_s8, %s5320_s8 }
   0xe   :  { %p5327_p6 = por %p5326_p5, %p5325_p4 }
  0x10   :  { %p5328_p7 = pnand %p5327_p6, %p5321_p3 }
  0x12   :  { %5331 = shalt.err (!%p5328_p7)
}
  0x13   :  { %s5430_s9 = smov 128   ;;  %s5431_s10 = smov 8  }
  0x14   :  { %39 = dma.hbm_to_vmem [thread:$0]  %s7856_s1, 18432, %s34_s22, [#allocation6], %s5430_s9, %s5430_s9, %s5431_s10  }
  0x15   :  { %s5332_s15 = scalar_lea.hbm %s7855_s0, 8192 }
  0x16   :  { %p5333_p8 = scmp.ne.s32.totalorder %s7855_s0, %s5332_s15  ;;  %p5336_p9 = scmp.lt.u32.totalorder %s5332_s15, %s7855_s0 }
  0x18   :  { %p5338_p10 = pnand %p5336_p9, %p5333_p8 }
  0x1a   :  { %5341 = shalt.err (!%p5338_p10)
}
  0x1b   :  { %s5342_s20 = scalar_lea.vmem %s5472_s24, 8192  ;;  %p5347_p12 = scmp.lt.s32.totalorder %s5472_s24, %s5472_s24 }
  0x1c   :  { %p5343_p11 = scmp.ne.s32.totalorder %s5472_s24, %s5342_s20  ;;  %p5348_p13 = scmp.lt.s32.totalorder %s5342_s20, %s5342_s20 }
  0x1e   :  { %p5349_p0 = por %p5348_p13, %p5347_p12 }
  0x20   :  { %p5350_p1 = pnand %p5349_p0, %p5343_p11 }
  0x22   :  { %5353 = shalt.err (!%p5350_p1)
}
  0x23   :  { %27 = dma.hbm_to_vmem [thread:$0]  %s7855_s0, 8192, %s5472_s24, [#allocation3], %s5430_s9, %s5430_s9, %s5431_s10  }
  0x24   :  { %s5432_s22 = smov [#allocation7]   ;;  %s5354_s27 = scalar_lea.hbm %s7858_s3, 2048 }
  0x25   :  { %s47_s23 = sshll.u32 %s5432_s22, 4  ;;  %p5355_p2 = scmp.ne.s32.totalorder %s7858_s3, %s5354_s27  ;;  %s48_s23 = int_to_ptr.vmem [resolvable:$true] %s47_s23 }
  0x26   :  { %p5358_p3 = scmp.lt.u32.totalorder %s5354_s27, %s7858_s3 }
  0x28   :  { %p5360_p4 = pnand %p5358_p3, %p5355_p2 }
  0x2a   :  { %5363 = shalt.err (!%p5360_p4)
}
  0x2b   :  { %s5364_s8 = scalar_lea.vmem %s48_s23, 2048  ;;  %p5369_p6 = scmp.lt.s32.totalorder %s48_s23, %s48_s23 }
  0x2c   :  { %p5365_p5 = scmp.ne.s32.totalorder %s48_s23, %s5364_s8  ;;  %p5370_p7 = scmp.lt.s32.totalorder %s5364_s8, %s5364_s8 }
  0x2e   :  { %p5371_p8 = por %p5370_p7, %p5369_p6 }
  0x30   :  { %p5372_p9 = pnand %p5371_p8, %p5365_p5 }
  0x32   :  { %5375 = shalt.err (!%p5372_p9)
}
  0x33   :  { %53 = dma.hbm_to_vmem [thread:$0]  %s7858_s3, 2048, %s48_s23, [#allocation6], %s5430_s9, %s5430_s9, %s5431_s10  }
  0x34   :  { %5420 = dma.done.wait [#allocation3], 8192  }
  0x35   :  { %5421 = vsyncadd [#allocation3], 4294959104 }
  0x36   :  { %5422 = dma.done.wait [#allocation6], 20480  }
  0x37   :  { %5423 = vsyncadd [#allocation6], 4294946816  ;;  %v7864_v0 = vmov 0.0|0.0   ;;  %v7862_v1 = vmov 0.0   ;;  %v971_v3 = vld [vmem:[#allocation5] sm:$0xff]  ;;  %v972_v4 = vld [vmem:[#allocation5 + $0x8] sm:$0xff] }
  0x38   :  { %4565 = vmatprep.subr.bf16.mxu1 %v7864_v0  ;;  %4613 = vmatprep.subr.bf16.mxu0 %v7864_v0  ;;  %v5527_v2 = vrot.slane %v7862_v1, 1  ;;  %v1003_v5 = vld [vmem:[#allocation5 + $0x100] sm:$0xff]  ;;  %v4566_v6 = vpack.c.bf16 %v972_v4, %v971_v3  ;;  %v1004_v7 = vld [vmem:[#allocation5 + $0x108] sm:$0xff]  ;;  %v973_v8 = vld [vmem:[#allocation5 + $0x10] sm:$0xff]  ;;  %vm161_vm0 = vcmask 1040384   ;;  %vm321_vm2 = vcmask 1046528  }
  0x39   :  { %v974_v9 = vld [vmem:[#allocation5 + $0x18] sm:$0xff]  ;;  %v5530_v10 = vpack.c.bf16 %v1004_v7, %v1003_v5  ;;  %v1005_v11 = vld [vmem:[#allocation5 + $0x110] sm:$0xff]  ;;  %v975_v15 = vld [vmem:[#allocation5 + $0x20] sm:$0xff]  ;;  %vm430_vm3 = vcmask 1045504  }
  0x3a   :  { %8084 = vst [vmem:[#allocation15_spill] sm:$0xff] %v5527_v2  ;;  %1186 = vmatprep.mubr.f32.mxu1 %v5527_v2  ;;  %v1006_v12 = vld [vmem:[#allocation5 + $0x118] sm:$0xff]  ;;  %4567 = vmatpush1.bf16.msra.mxu1 %v4566_v6  ;;  %v4569_v13 = vpack.c.bf16 %v974_v9, %v973_v8  ;;  %v976_v16 = vld [vmem:[#allocation5 + $0x28] sm:$0xff]  ;;  %v1007_v17 = vld [vmem:[#allocation5 + $0x120] sm:$0xff] }
  0x3b   :  { %4615 = vmatpush1.bf16.msra.mxu0 %v5530_v10  ;;  %4568 = vmatprep.subr.bf16.mxu1 %v7864_v0  ;;  %v5534_v14 = vpack.c.bf16 %v1006_v12, %v1005_v11  ;;  %v1008_v18 = vld [vmem:[#allocation5 + $0x128] sm:$0xff]  ;;  %v4572_v19 = vpack.c.bf16 %v976_v16, %v975_v15  ;;  %v977_v21 = vld [vmem:[#allocation5 + $0x30] sm:$0xff]  ;;  %v978_v22 = vld [vmem:[#allocation5 + $0x38] sm:$0xff] }
  0x3c   :  { %4616 = vmatprep.subr.bf16.mxu0 %v7864_v0  ;;  %v5539_v20 = vpack.c.bf16 %v1008_v18, %v1007_v17  ;;  %v1009_v23 = vld [vmem:[#allocation5 + $0x130] sm:$0xff]  ;;  %v1010_v24 = vld [vmem:[#allocation5 + $0x138] sm:$0xff]  ;;  %v4575_v25 = vpack.c.bf16 %v978_v22, %v977_v21  ;;  %v979_v27 = vld [vmem:[#allocation5 + $0x40] sm:$0xff] }
  0x3d   :  { %v5544_v26 = vpack.c.bf16 %v1010_v24, %v1009_v23  ;;  %v980_v28 = vld [vmem:[#allocation5 + $0x48] sm:$0xff]  ;;  %v1011_v29 = vld [vmem:[#allocation5 + $0x140] sm:$0xff]  ;;  %v981_v33 = vld [vmem:[#allocation5 + $0x50] sm:$0xff] }
  0x3e   :  { %4570 = vmatpush1.bf16.msra.mxu1 %v4569_v13  ;;  %v1012_v30 = vld [vmem:[#allocation5 + $0x148] sm:$0xff]  ;;  %v4578_v31 = vpack.c.bf16 %v980_v28, %v979_v27  ;;  %v982_v34 = vld [vmem:[#allocation5 + $0x58] sm:$0xff]  ;;  %v1013_v35 = vld [vmem:[#allocation5 + $0x150] sm:$0xff] }
  0x3f   :  { %4618 = vmatpush1.bf16.msra.mxu0 %v5534_v14  ;;  %4571 = vmatprep.subr.bf16.mxu1 %v7864_v0  ;;  %v5549_v32 = vpack.c.bf16 %v1012_v30, %v1011_v29  ;;  %v1014_v36 = vld [vmem:[#allocation5 + $0x158] sm:$0xff]  ;;  %v4581_v37 = vpack.c.bf16 %v982_v34, %v981_v33  ;;  %v983_v39 = vld [vmem:[#allocation5 + $0x60] sm:$0xff]  ;;  %v984_v40 = vld [vmem:[#allocation5 + $0x68] sm:$0xff] }
  0x40   :  { %4619 = vmatprep.subr.bf16.mxu0 %v7864_v0  ;;  %v5554_v38 = vpack.c.bf16 %v1014_v36, %v1013_v35  ;;  %v1015_v41 = vld [vmem:[#allocation5 + $0x160] sm:$0xff]  ;;  %v1016_v42 = vld [vmem:[#allocation5 + $0x168] sm:$0xff]  ;;  %vm5560_vm1 = vmneg %vm161_vm0  ;;  %v4584_v46 = vpack.c.bf16 %v984_v40, %v983_v39 }
  0x41   :  { %v65_v43 = vld [vmem:[#allocation2] sm:$0xff]  ;;  %v5566_v47 = vpack.c.bf16 %v1016_v42, %v1015_v41  ;;  %v985_v48 = vld [vmem:[#allocation5 + $0x70] sm:$0xff]  ;;  %v986_v49 = vld [vmem:[#allocation5 + $0x78] sm:$0xff] }
  0x42   :  { %4573 = vmatpush1.bf16.msra.mxu1 %v4572_v19  ;;  %v5557_v44 = vrot.slane %v65_v43, 7  ;;  %v1017_v50 = vld [vmem:[#allocation5 + $0x170] sm:$0xff]  ;;  %v1018_v51 = vld [vmem:[#allocation5 + $0x178] sm:$0xff]  ;;  %v4587_v52 = vpack.c.bf16 %v986_v49, %v985_v48  ;;  %v987_v54 = vld [vmem:[#allocation5 + $0x80] sm:$0xff] }
  0x43   :  { %4621 = vmatpush1.bf16.msra.mxu0 %v5539_v20  ;;  %4574 = vmatprep.subr.bf16.mxu1 %v7864_v0  ;;  %v5574_v53 = vpack.c.bf16 %v1018_v51, %v1017_v50  ;;  %v988_v55 = vld [vmem:[#allocation5 + $0x88] sm:$0xff]  ;;  %v1019_v56 = vld [vmem:[#allocation5 + $0x180] sm:$0xff]  ;;  %v989_v60 = vld [vmem:[#allocation5 + $0x90] sm:$0xff] }
  0x44   :  { %4622 = vmatprep.subr.bf16.mxu0 %v7864_v0  ;;  %4025 = vmatprep.mubr.msk.f32.mxu0 %vm5560_vm1, %v5557_v44  ;;  %v1020_v57 = vld [vmem:[#allocation5 + $0x188] sm:$0xff]  ;;  %v4590_v58 = vpack.c.bf16 %v988_v55, %v987_v54  ;;  %v990_v61 = vld [vmem:[#allocation5 + $0x98] sm:$0xff]  ;;  %v1021_v62 = vld [vmem:[#allocation5 + $0x190] sm:$0xff] }
  0x45   :  { %v5579_v59 = vpack.c.bf16 %v1020_v57, %v1019_v56  ;;  %v1022_v63 = vld [vmem:[#allocation5 + $0x198] sm:$0xff]  ;;  %v4593_v3 = vpack.c.bf16 %v990_v61, %v989_v60  ;;  %v991_v5 = vld [vmem:[#allocation5 + $0xa0] sm:$0xff]  ;;  %v992_v6 = vld [vmem:[#allocation5 + $0xa8] sm:$0xff]  ;;  %v258_v56 = vsel %vm161_vm0, 0.0, %v5557_v44 }
  0x46   :  { %4576 = vmatpush1.bf16.msra.mxu1 %v4575_v25  ;;  %v5584_v4 = vpack.c.bf16 %v1022_v63, %v1021_v62  ;;  %v1023_v7 = vld [vmem:[#allocation5 + $0x1a0] sm:$0xff]  ;;  %v1024_v8 = vld [vmem:[#allocation5 + $0x1a8] sm:$0xff]  ;;  %v4596_v9 = vpack.c.bf16 %v992_v6, %v991_v5  ;;  %v993_v12 = vld [vmem:[#allocation5 + $0xb0] sm:$0xff]  ;;  %v324_v62 = vrot.slane %v258_v56, 1 }
  0x47   :  { %4624 = vmatpush1.bf16.msra.mxu0 %v5544_v26  ;;  %4577 = vmatprep.subr.bf16.mxu1 %v7864_v0  ;;  %v5589_v11 = vpack.c.bf16 %v1024_v8, %v1023_v7  ;;  %v994_v13 = vld [vmem:[#allocation5 + $0xb8] sm:$0xff]  ;;  %v1025_v15 = vld [vmem:[#allocation5 + $0x1b0] sm:$0xff]  ;;  %v995_v19 = vld [vmem:[#allocation5 + $0xc0] sm:$0xff] }
  0x48   :  { %4625 = vmatprep.subr.bf16.mxu0 %v7864_v0  ;;  %v1026_v16 = vld [vmem:[#allocation5 + $0x1b8] sm:$0xff]  ;;  %v4599_v17 = vpack.c.bf16 %v994_v13, %v993_v12  ;;  %v996_v21 = vld [vmem:[#allocation5 + $0xc8] sm:$0xff]  ;;  %v1027_v22 = vld [vmem:[#allocation5 + $0x1c0] sm:$0xff] }
  0x49   :  { %v5594_v18 = vpack.c.bf16 %v1026_v16, %v1025_v15  ;;  %v1028_v23 = vld [vmem:[#allocation5 + $0x1c8] sm:$0xff]  ;;  %v4602_v24 = vpack.c.bf16 %v996_v21, %v995_v19  ;;  %v997_v27 = vld [vmem:[#allocation5 + $0xd0] sm:$0xff]  ;;  %v998_v28 = vld [vmem:[#allocation5 + $0xd8] sm:$0xff] }
  0x4a   :  { %4579 = vmatpush1.bf16.msra.mxu1 %v4578_v31  ;;  %v5599_v25 = vpack.c.bf16 %v1028_v23, %v1027_v22  ;;  %v1029_v29 = vld [vmem:[#allocation5 + $0x1d0] sm:$0xff]  ;;  %v1030_v30 = vld [vmem:[#allocation5 + $0x1d8] sm:$0xff]  ;;  %v4605_v31 = vpack.c.bf16 %v998_v28, %v997_v27  ;;  %v999_v34 = vld [vmem:[#allocation5 + $0xe0] sm:$0xff] }
  0x4b   :  { %4627 = vmatpush1.bf16.msra.mxu0 %v5549_v32  ;;  %4580 = vmatprep.subr.bf16.mxu1 %v7864_v0  ;;  %v5604_v33 = vpack.c.bf16 %v1030_v30, %v1029_v29  ;;  %v1000_v35 = vld [vmem:[#allocation5 + $0xe8] sm:$0xff]  ;;  %v1031_v36 = vld [vmem:[#allocation5 + $0x1e0] sm:$0xff]  ;;  %v1001_v42 = vld [vmem:[#allocation5 + $0xf0] sm:$0xff] }
  0x4c   :  { %4628 = vmatprep.subr.bf16.mxu0 %v7864_v0  ;;  %v66_v39 = vld [vmem:[#allocation2 + $0x8] sm:$0xff]  ;;  %v4608_v40 = vpack.c.bf16 %v1000_v35, %v999_v34  ;;  %v1002_v43 = vld [vmem:[#allocation5 + $0xf8] sm:$0xff]  ;;  %v67_v60 = vld [vmem:[#allocation2 + $0x10] sm:$0xff] }
  0x4d   :  { %v1034_v48 = vld [vmem:[#allocation5 + $0x1f8] sm:$0xff]  ;;  %v163_v49 = vrot.slane %v66_v39, 7  ;;  %v4611_v50 = vpack.c.bf16 %v1002_v43, %v1001_v42  ;;  %v1036_v54 = vld [vmem:[#allocation5 + $0x208] sm:$0xff]  ;;  %v5632_v8 = vrot.slane %v67_v60, 7  ;;  %v1039_v19 = vld [vmem:[#allocation5 + $0x220] sm:$0xff] }
  0x4e   :  { %4582 = vmatpush1.bf16.msra.mxu1 %v4581_v37  ;;  %v1032_v37 = vld [vmem:[#allocation5 + $0x1e8] sm:$0xff]  ;;  %v68_v57 = vld [vmem:[#allocation2 + $0x18] sm:$0xff]  ;;  %v69_v30 = vld [vmem:[#allocation2 + $0x20] sm:$0xff] }
  0x4f   :  { %4630 = vmatpush1.bf16.msra.mxu0 %v5554_v38  ;;  %4583 = vmatprep.subr.bf16.mxu1 %v7864_v0  ;;  %v5609_v41 = vpack.c.bf16 %v1032_v37, %v1031_v36  ;;  %v5619_v55 = vsel %vm161_vm0, %v5557_v44, %v163_v49  ;;  %v1038_v5 = vld [vmem:[#allocation5 + $0x218] sm:$0xff]  ;;  %v166_v6 = vrot.slane %v68_v57, 7  ;;  %v274_v7 = vsel %vm161_vm0, %v163_v49, 0.0  ;;  %8088 = vst [vmem:[#allocation17_spill] sm:$0xff] %v5632_v8  ;;  %v1040_v21 = vld [vmem:[#allocation5 + $0x228] sm:$0xff]  ;;  %v1041_v36 = vld [vmem:[#allocation5 + $0x230] sm:$0xff] }
  0x50   :  { %4631 = vmatprep.subr.bf16.mxu0 %v7864_v0  ;;  %v325_v63 = vrot.slane %v5619_v55, 1  ;;  %v434_v15 = vrot.slane %v5619_v55, 2  ;;  %v327_v16 = vrot.slane %v274_v7, 1  ;;  %v70_v22 = vld [vmem:[#allocation2 + $0x28] sm:$0xff]  ;;  %v436_v23 = vrot.slane %v274_v7, 2  ;;  %v1042_v37 = vld [vmem:[#allocation5 + $0x238] sm:$0xff] }
  0x51   :  { %v275_v34 = vsel %vm161_vm0, %v166_v6, 0.0  ;;  %v169_v35 = vrot.slane %v70_v22, 7  ;;  %v5672_v39 = vrot.slane %v69_v30, 7  ;;  %v1047_v22 = vld [vmem:[#allocation5 + $0x260] sm:$0xff] }
  0x52   :  { %4585 = vmatpush1.bf16.msra.mxu1 %v4584_v46  ;;  %v1033_v46 = vld [vmem:[#allocation5 + $0x1f0] sm:$0xff]  ;;  %v5638_v13 = vsel %vm321_vm2, %v324_v62, %v325_v63  ;;  %v5661_v28 = vsel %vm321_vm2, %v325_v63, %v327_v16  ;;  %v5677_v42 = vsel %vm430_vm3, %v434_v15, %v436_v23  ;;  %v441_v57 = vrot.slane %v275_v34, 2  ;;  %v1048_v23 = vld [vmem:[#allocation5 + $0x268] sm:$0xff] }
  0x53   :  { %4633 = vmatpush1.bf16.msra.mxu0 %v5566_v47  ;;  %4586 = vmatprep.subr.bf16.mxu1 %v7864_v0  ;;  %v5614_v51 = vpack.c.bf16 %v1034_v48, %v1033_v46  ;;  %8090 = vst [vmem:[#allocation19_spill] sm:$0xff] %v5672_v39  ;;  %v4671_v46 = vpack.c.bf16 %v1042_v37, %v1041_v36  ;;  %v260_v49 = vsel %vm161_vm0, 0.0, %v5672_v39  ;;  %v276_v63 = vsel %vm161_vm0, %v169_v35, 0.0 }
  0x54   :  { %4634 = vmatprep.subr.bf16.mxu0 %v7864_v0  ;;  %v5684_v48 = vsel %vm161_vm0, %v5672_v39, %v169_v35  ;;  %v337_v16 = vrot.slane %v276_v63, 1  ;;  %v446_v30 = vrot.slane %v276_v63, 2  ;;  %v73_v35 = vld [vmem:[#allocation2 + $0x40] sm:$0xff]  ;;  %v4680_v36 = vpack.c.bf16 %v1048_v23, %v1047_v22  ;;  %v76_v63 = vld [vmem:[#allocation2 + $0x58] sm:$0xff]  ;;  %v1053_v22 = vld [vmem:[#allocation5 + $0x290] sm:$0xff] }
  0x55   :  { %8092 = vst [vmem:[#allocation21_spill] sm:$0xff] %v5684_v48  ;;  %v1054_v23 = vld [vmem:[#allocation5 + $0x298] sm:$0xff] }
  0x56   :  { %4588 = vmatpush1.bf16.msra.mxu1 %v4587_v52  ;;  %v1035_v52 = vld [vmem:[#allocation5 + $0x200] sm:$0xff] }
  0x57   :  { %4636 = vmatpush1.bf16.msra.mxu0 %v5574_v53  ;;  %4589 = vmatprep.subr.bf16.mxu1 %v7864_v0  ;;  %v4662_v61 = vpack.c.bf16 %v1036_v54, %v1035_v52  ;;  %v1044_v52 = vld [vmem:[#allocation5 + $0x248] sm:$0xff]  ;;  %v72_v54 = vld [vmem:[#allocation2 + $0x38] sm:$0xff] }
  0x58   :  { %4637 = vmatprep.subr.bf16.mxu0 %v7864_v0 }
  0x5a   :  { %4591 = vmatpush1.bf16.msra.mxu1 %v4590_v58  ;;  %v5624_v58 = vrot.slane %v7862_v1, 2 }
  0x5b   :  { %4639 = vmatpush1.bf16.msra.mxu0 %v5579_v59  ;;  %4592 = vmatprep.subr.bf16.mxu1 %v7864_v0 }
  0x5c   :  { %4640 = vmatprep.subr.bf16.mxu0 %v7864_v0  ;;  %8087 = vst [vmem:[#allocation16_spill] sm:$0xff] %v5624_v58 }
  0x5e   :  { %4594 = vmatpush1.bf16.msra.mxu1 %v4593_v3  ;;  %v1037_v3 = vld [vmem:[#allocation5 + $0x210] sm:$0xff] }
  0x5f   :  { %4642 = vmatpush1.bf16.msra.mxu0 %v5584_v4  ;;  %4595 = vmatprep.subr.bf16.mxu1 %v7864_v0  ;;  %v4665_v12 = vpack.c.bf16 %v1038_v5, %v1037_v3  ;;  %v172_v3 = vrot.slane %v72_v54, 7  ;;  %v1045_v5 = vld [vmem:[#allocation5 + $0x250] sm:$0xff] }
  0x60   :  { %4643 = vmatprep.subr.bf16.mxu0 %v7864_v0 }
  0x61   :  { %v277_v37 = vsel %vm161_vm0, %v172_v3, 0.0 }
  0x62   :  { %4597 = vmatpush1.bf16.msra.mxu1 %v4596_v9  ;;  %v433_v9 = vrot.slane %v258_v56, 2  ;;  %v342_v54 = vrot.slane %v277_v37, 1 }
  0x63   :  { %4645 = vmatpush1.bf16.msra.mxu0 %v5589_v11  ;;  %4598 = vmatprep.subr.bf16.mxu1 %v7864_v0 }
  0x64   :  { %4646 = vmatprep.subr.bf16.mxu0 %v7864_v0  ;;  %v5658_v27 = vsel %vm430_vm3, %v433_v9, %v434_v15  ;;  %v443_v9 = vrot.slane %v260_v49, 2 }
  0x66   :  { %4600 = vmatpush1.bf16.msra.mxu1 %v4599_v17  ;;  %v5643_v17 = vsel %vm161_vm0, %v5632_v8, %v166_v6  ;;  %v1046_v6 = vld [vmem:[#allocation5 + $0x258] sm:$0xff] }
  0x67   :  { %4648 = vmatpush1.bf16.msra.mxu0 %v5594_v18  ;;  %4601 = vmatprep.subr.bf16.mxu1 %v7864_v0  ;;  %8089 = vst [vmem:[#allocation18_spill] sm:$0xff] %v5643_v17 }
  0x68   :  { %4649 = vmatprep.subr.bf16.mxu0 %v7864_v0 }
  0x6a   :  { %4603 = vmatpush1.bf16.msra.mxu1 %v4602_v24  ;;  %v330_v24 = vrot.slane %v5643_v17, 1 }
  0x6b   :  { %4651 = vmatpush1.bf16.msra.mxu0 %v5599_v25  ;;  %4604 = vmatprep.subr.bf16.mxu1 %v7864_v0 }
  0x6c   :  { %4652 = vmatprep.subr.bf16.mxu0 %v7864_v0 }
  0x6e   :  { %4606 = vmatpush1.bf16.msra.mxu1 %v4605_v31  ;;  %v4668_v31 = vpack.c.bf16 %v1040_v21, %v1039_v19 }
  0x6f   :  { %4654 = vmatpush1.bf16.msra.mxu0 %v5604_v33  ;;  %4607 = vmatprep.subr.bf16.mxu1 %v7864_v0 }
  0x70   :  { %4655 = vmatprep.subr.bf16.mxu0 %v7864_v0 }
  0x72   :  { %4609 = vmatpush1.bf16.msra.mxu1 %v4608_v40 }
  0x73   :  { %4657 = vmatpush1.bf16.msra.mxu0 %v5609_v41  ;;  %4610 = vmatprep.subr.bf16.mxu1 %v7864_v0 }
  0x74   :  { %4658 = vmatprep.subr.bf16.mxu0 %v7864_v0 }
  0x76   :  { %4612 = vmatpush1.bf16.msra.mxu1 %v4611_v50  ;;  %v1043_v50 = vld [vmem:[#allocation5 + $0x240] sm:$0xff] }
  0x77   :  { %4660 = vmatpush1.bf16.msra.mxu0 %v5614_v51  ;;  %4821 = vmatprep.subr.bf16.mxu1 %v7864_v0  ;;  %v4674_v62 = vpack.c.bf16 %v1044_v52, %v1043_v50 }
  0x78   :  { %4661 = vmatprep.subr.bf16.mxu0 %v7864_v0 }
  0x79   :  { %1187 = vmatmul.mubr.f32.vlgmr.msra.gmra.mrb[0].mxu1 %v7862_v1 }
  0x7a   :  { %1572 = vmatmul.mubr.f32.vlgmr.msra.gmra.mrb[0].mxu0 %v5624_v58  ;;  %4837 = vmatpush1.bf16.msra.mxu1 %v5530_v10  ;;  %v259_v10 = vsel %vm161_vm0, 0.0, %v5632_v8 }
  0x7b   :  { %4663 = vmatpush1.bf16.msra.mxu0 %v4662_v61  ;;  %1191 = vmatprep.mubr.f32.mxu1 %v5527_v2  ;;  %v329_v29 = vrot.slane %v259_v10, 1  ;;  %v438_v40 = vrot.slane %v259_v10, 2  ;;  %v71_v61 = vld [vmem:[#allocation2 + $0x30] sm:$0xff]  ;;  %v4677_v10 = vpack.c.bf16 %v1046_v6, %v1045_v5  ;;  %v451_v5 = vrot.slane %v277_v37, 2 }
  0x7c   :  { %1576 = vmatprep.mubr.f32.mxu0 %v5619_v55  ;;  %4664 = vmatprep.subr.bf16.mxu0 %v7864_v0  ;;  %v5713_v7 = vrot.slane %v71_v61, 7  ;;  %v1051_v61 = vld [vmem:[#allocation5 + $0x280] sm:$0xff] }
  0x7d   :  { %1192 = vmatmul.mubr.f32.gmra.mrb[2].mxu1 %v7862_v1  ;;  %4822 = vmatprep.subr.bf16.mxu1 %v7864_v0  ;;  %v5680_v43 = vsel %vm321_vm2, %v329_v29, %v330_v24 }
  0x7e   :  { %1577 = vmatmul.mubr.f32.gmra.mrb[2].mxu0 %v5624_v58  ;;  %1196 = vmatprep.mubr.f32.mxu1 %v5638_v13  ;;  %8091 = vst [vmem:[#allocation20_spill] sm:$0xff] %v5680_v43  ;;  %8095 = vst [vmem:[#allocation24_spill] sm:$0xff] %v5713_v7  ;;  %v5725_v19 = vsel %vm161_vm0, %v5713_v7, %v172_v3  ;;  %v261_v21 = vsel %vm161_vm0, 0.0, %v5713_v7 }
  0x7f   :  { %4027 = vmatprep.mubr.msk.f32.mxu0 %vm5560_vm1, %v5632_v8  ;;  %4666 = vmatpush1.bf16.msra.mxu0 %v4665_v12  ;;  %v444_v12 = vrot.slane %v5684_v48, 2  ;;  %8098 = vst [vmem:[#allocation27_spill] sm:$0xff] %v5725_v19  ;;  %v449_v50 = vrot.slane %v5725_v19, 2 }
  0x80   :  { %4667 = vmatprep.subr.bf16.mxu0 %v7864_v0  ;;  %4838 = vmatpush1.bf16.msra.mxu1 %v5534_v14  ;;  %v439_v14 = vrot.slane %v5643_v17, 2 }
  0x81   :  { %3965 = vmatmul.mubr.msk.f32.gmra.mrb[4].mxu1 %vm5560_vm1, %v5557_v44  ;;  %4823 = vmatprep.subr.bf16.mxu1 %v7864_v0  ;;  %v332_v44 = vrot.slane %v275_v34, 1  ;;  %v5736_v29 = vsel %vm430_vm3, %v443_v9, %v444_v12  ;;  %v340_v34 = vrot.slane %v5725_v19, 1  ;;  %v5759_v52 = vsel %vm430_vm3, %v444_v12, %v446_v30  ;;  %v75_v12 = vld [vmem:[#allocation2 + $0x50] sm:$0xff] }
  0x82   :  { %1582 = vmatmul.mubr.f32.gmra.mrb[4].mxu0 %v5658_v27  ;;  %1201 = vmatprep.mubr.f32.mxu1 %v5661_v28  ;;  %v5695_v56 = vsel %vm430_vm3, %v438_v40, %v439_v14  ;;  %v5718_v15 = vsel %vm430_vm3, %v439_v14, %v441_v57  ;;  %8099 = vst [vmem:[#allocation28_spill] sm:$0xff] %v5736_v29  ;;  %v1049_v14 = vld [vmem:[#allocation5 + $0x270] sm:$0xff]  ;;  %8102 = vst [vmem:[#allocation31_spill] sm:$0xff] %v5759_v52 }
  0x83   :  { %1586 = vmatprep.mubr.f32.mxu0 %v5643_v17  ;;  %4669 = vmatpush1.bf16.msra.mxu0 %v4668_v31  ;;  %8093 = vst [vmem:[#allocation22_spill] sm:$0xff] %v5695_v56  ;;  %v5701_v60 = vsel %vm321_vm2, %v330_v24, %v332_v44  ;;  %8096 = vst [vmem:[#allocation25_spill] sm:$0xff] %v5718_v15  ;;  %v74_v24 = vld [vmem:[#allocation2 + $0x48] sm:$0xff]  ;;  %v1050_v44 = vld [vmem:[#allocation5 + $0x278] sm:$0xff]  ;;  %v5783_v6 = vsel %vm321_vm2, %v340_v34, %v342_v54 }
  0x84   :  { %4670 = vmatprep.subr.bf16.mxu0 %v7864_v0  ;;  %4839 = vmatpush1.bf16.msra.mxu1 %v5539_v20  ;;  %8094 = vst [vmem:[#allocation23_spill] sm:$0xff] %v5701_v60  ;;  %v334_v20 = vrot.slane %v260_v49, 1  ;;  %v175_v40 = vrot.slane %v74_v24, 7  ;;  %v448_v49 = vrot.slane %v261_v21, 2  ;;  %v4683_v57 = vpack.c.bf16 %v1050_v44, %v1049_v14  ;;  %8106 = vst [vmem:[#allocation35_spill] sm:$0xff] %v5783_v6  ;;  %v1055_v14 = vld [vmem:[#allocation5 + $0x2a0] sm:$0xff] }
  0x85   :  { %1202 = vmatmul.mubr.f32.gmra.mrb[6].mxu1 %v5619_v55  ;;  %4824 = vmatprep.subr.bf16.mxu1 %v7864_v0  ;;  %v335_v55 = vrot.slane %v5684_v48, 1  ;;  %v5795_v24 = vrot.slane %v75_v12, 7  ;;  %v1056_v44 = vld [vmem:[#allocation5 + $0x2a8] sm:$0xff]  ;;  %v1058_v12 = vld [vmem:[#allocation5 + $0x2b8] sm:$0xff] }
  0x86   :  { %1587 = vmatmul.mubr.f32.gmra.mrb[6].mxu0 %v5677_v42  ;;  %1206 = vmatprep.mubr.f32.mxu1 %v5680_v43  ;;  %v5777_v3 = vsel %vm430_vm3, %v448_v49, %v449_v50  ;;  %v78_v49 = vld [vmem:[#allocation2 + $0x68] sm:$0xff] }
  0x87   :  { %4029 = vmatprep.mubr.msk.f32.mxu0 %vm5560_vm1, %v5672_v39  ;;  %4672 = vmatpush1.bf16.msra.mxu0 %v4671_v46  ;;  %v5742_v31 = vsel %vm321_vm2, %v335_v55, %v337_v16  ;;  %v5754_v46 = vrot.slane %v73_v35, 7  ;;  %8105 = vst [vmem:[#allocation34_spill] sm:$0xff] %v5777_v3  ;;  %8107 = vst [vmem:[#allocation36_spill] sm:$0xff] %v5795_v24 }
  0x88   :  { %4673 = vmatprep.subr.bf16.mxu0 %v7864_v0  ;;  %4840 = vmatpush1.bf16.msra.mxu1 %v5544_v26  ;;  %v5721_v26 = vsel %vm321_vm2, %v334_v20, %v335_v55  ;;  %8100 = vst [vmem:[#allocation29_spill] sm:$0xff] %v5742_v31 }
  0x89   :  { %3967 = vmatmul.mubr.msk.f32.gmra.mrb[8].mxu1 %vm5560_vm1, %v5632_v8  ;;  %4825 = vmatprep.subr.bf16.mxu1 %v7864_v0  ;;  %8097 = vst [vmem:[#allocation26_spill] sm:$0xff] %v5721_v26  ;;  %8101 = vst [vmem:[#allocation30_spill] sm:$0xff] %v5754_v46  ;;  %v5766_v20 = vsel %vm161_vm0, %v5754_v46, %v175_v40  ;;  %v262_v55 = vsel %vm161_vm0, 0.0, %v5754_v46 }
  0x8a   :  { %1592 = vmatmul.mubr.f32.gmra.mrb[8].mxu0 %v5695_v56  ;;  %1211 = vmatprep.mubr.f32.mxu1 %v5701_v60  ;;  %8104 = vst [vmem:[#allocation33_spill] sm:$0xff] %v5766_v20  ;;  %v345_v9 = vrot.slane %v5766_v20, 1  ;;  %v453_v30 = vrot.slane %v262_v55, 2 }
  0x8b   :  { %1596 = vmatprep.mubr.f32.mxu0 %v5684_v48  ;;  %4675 = vmatpush1.bf16.msra.mxu0 %v4674_v62  ;;  %v1052_v62 = vld [vmem:[#allocation5 + $0x288] sm:$0xff] }
  0x8c   :  { %4676 = vmatprep.subr.bf16.mxu0 %v7864_v0  ;;  %4841 = vmatpush1.bf16.msra.mxu1 %v5549_v32  ;;  %v339_v32 = vrot.slane %v261_v21, 1  ;;  %v4686_v16 = vpack.c.bf16 %v1052_v62, %v1051_v61  ;;  %v178_v21 = vrot.slane %v76_v63, 7  ;;  %v77_v61 = vld [vmem:[#allocation2 + $0x60] sm:$0xff]  ;;  %v4692_v62 = vpack.c.bf16 %v1056_v44, %v1055_v14 }
  0x8d   :  { %1212 = vmatmul.mubr.f32.gmra.mrb[10].mxu1 %v5643_v17  ;;  %4826 = vmatprep.subr.bf16.mxu1 %v7864_v0 }
  0x8e   :  { %1597 = vmatmul.mubr.f32.gmra.mrb[10].mxu0 %v5718_v15  ;;  %1216 = vmatprep.mubr.f32.mxu1 %v5721_v26  ;;  %v5807_v37 = vsel %vm161_vm0, %v5795_v24, %v178_v21  ;;  %v279_v63 = vsel %vm161_vm0, %v178_v21, 0.0 }
  0x8f   :  { %4031 = vmatprep.mubr.msk.f32.mxu0 %vm5560_vm1, %v5713_v7  ;;  %4678 = vmatpush1.bf16.msra.mxu0 %v4677_v10  ;;  %v278_v10 = vsel %vm161_vm0, %v175_v40, 0.0  ;;  %8110 = vst [vmem:[#allocation39_spill] sm:$0xff] %v5807_v37  ;;  %v263_v40 = vsel %vm161_vm0, 0.0, %v5795_v24  ;;  %v461_v44 = vrot.slane %v279_v63, 2 }
  0x90   :  { %4679 = vmatprep.subr.bf16.mxu0 %v7864_v0  ;;  %4842 = vmatpush1.bf16.msra.mxu1 %v5554_v38  ;;  %v5762_v38 = vsel %vm321_vm2, %v339_v32, %v340_v34  ;;  %v454_v32 = vrot.slane %v5766_v20, 2  ;;  %v5800_v34 = vsel %vm430_vm3, %v449_v50, %v451_v5  ;;  %v347_v35 = vrot.slane %v278_v10, 1 }
  0x91   :  { %3969 = vmatmul.mubr.msk.f32.gmra.mrb[12].mxu1 %vm5560_vm1, %v5672_v39  ;;  %4827 = vmatprep.subr.bf16.mxu1 %v7864_v0  ;;  %8103 = vst [vmem:[#allocation32_spill] sm:$0xff] %v5762_v38  ;;  %8108 = vst [vmem:[#allocation37_spill] sm:$0xff] %v5800_v34  ;;  %v456_v54 = vrot.slane %v278_v10, 2  ;;  %v181_v5 = vrot.slane %v78_v49, 7  ;;  %v459_v10 = vrot.slane %v5807_v37, 2 }
  0x92   :  { %1602 = vmatmul.mubr.f32.gmra.mrb[12].mxu0 %v5736_v29  ;;  %1221 = vmatprep.mubr.f32.mxu1 %v5742_v31  ;;  %v5818_v50 = vsel %vm430_vm3, %v453_v30, %v454_v32 }
  0x93   :  { %1606 = vmatprep.mubr.f32.mxu0 %v5725_v19  ;;  %4681 = vmatpush1.bf16.msra.mxu0 %v4680_v36  ;;  %v4689_v36 = vpack.c.bf16 %v1054_v23, %v1053_v22  ;;  %8111 = vst [vmem:[#allocation40_spill] sm:$0xff] %v5818_v50  ;;  %v5841_v21 = vsel %vm430_vm3, %v454_v32, %v456_v54  ;;  %v352_v22 = vrot.slane %v279_v63, 1  ;;  %v80_v32 = vld [vmem:[#allocation2 + $0x78] sm:$0xff] }
  0x94   :  { %4682 = vmatprep.subr.bf16.mxu0 %v7864_v0  ;;  %4843 = vmatpush1.bf16.msra.mxu1 %v5566_v47  ;;  %v344_v47 = vrot.slane %v262_v55, 1  ;;  %v350_v55 = vrot.slane %v5807_v37, 1  ;;  %8114 = vst [vmem:[#allocation43_spill] sm:$0xff] %v5841_v21  ;;  %v1062_v63 = vld [vmem:[#allocation5 + $0x2d8] sm:$0xff] }
  0x95   :  { %1222 = vmatmul.mubr.f32.gmra.mrb[14].mxu1 %v5684_v48  ;;  %4828 = vmatprep.subr.bf16.mxu1 %v7864_v0 }
  0x96   :  { %1607 = vmatmul.mubr.f32.gmra.mrb[14].mxu0 %v5759_v52  ;;  %1226 = vmatprep.mubr.f32.mxu1 %v5762_v38  ;;  %v5865_v49 = vsel %vm321_vm2, %v350_v55, %v352_v22  ;;  %v5882_v22 = vsel %vm430_vm3, %v459_v10, %v461_v44 }
  0x97   :  { %4033 = vmatprep.mubr.msk.f32.mxu0 %vm5560_vm1, %v5754_v46  ;;  %4684 = vmatpush1.bf16.msra.mxu0 %v4683_v57  ;;  %v5824_v57 = vsel %vm321_vm2, %v345_v9, %v347_v35  ;;  %8118 = vst [vmem:[#allocation47_spill] sm:$0xff] %v5865_v49  ;;  %8120 = vst [vmem:[#allocation49_spill] sm:$0xff] %v5882_v22 }
  0x98   :  { %4685 = vmatprep.subr.bf16.mxu0 %v7864_v0  ;;  %4844 = vmatpush1.bf16.msra.mxu1 %v5574_v53  ;;  %v5803_v53 = vsel %vm321_vm2, %v344_v47, %v345_v9  ;;  %8112 = vst [vmem:[#allocation41_spill] sm:$0xff] %v5824_v57  ;;  %v1057_v47 = vld [vmem:[#allocation5 + $0x2b0] sm:$0xff]  ;;  %v5836_v9 = vrot.slane %v77_v61, 7 }
  0x99   :  { %3971 = vmatmul.mubr.msk.f32.gmra.mrb[16].mxu1 %vm5560_vm1, %v5713_v7  ;;  %4829 = vmatprep.subr.bf16.mxu1 %v7864_v0  ;;  %8109 = vst [vmem:[#allocation38_spill] sm:$0xff] %v5803_v53  ;;  %v4695_v23 = vpack.c.bf16 %v1058_v12, %v1057_v47  ;;  %v184_v47 = vrot.slane %v80_v32, 7  ;;  %v1061_v12 = vld [vmem:[#allocation5 + $0x2d0] sm:$0xff]  ;;  %v1063_v32 = vld [vmem:[#allocation5 + $0x2e0] sm:$0xff] }
  0x9a   :  { %1612 = vmatmul.mubr.f32.gmra.mrb[16].mxu0 %v5777_v3  ;;  %1231 = vmatprep.mubr.f32.mxu1 %v5783_v6  ;;  %8113 = vst [vmem:[#allocation42_spill] sm:$0xff] %v5836_v9  ;;  %v5848_v30 = vsel %vm161_vm0, %v5836_v9, %v181_v5  ;;  %v264_v35 = vsel %vm161_vm0, 0.0, %v5836_v9 }
  0x9b   :  { %1616 = vmatprep.mubr.f32.mxu0 %v5766_v20  ;;  %4687 = vmatpush1.bf16.msra.mxu0 %v4686_v16  ;;  %v458_v16 = vrot.slane %v263_v40, 2  ;;  %8116 = vst [vmem:[#allocation45_spill] sm:$0xff] %v5848_v30  ;;  %v355_v54 = vrot.slane %v5848_v30, 1 }
  0x9c   :  { %4688 = vmatprep.subr.bf16.mxu0 %v7864_v0  ;;  %4845 = vmatpush1.bf16.msra.mxu1 %v5579_v59  ;;  %v349_v59 = vrot.slane %v263_v40, 1  ;;  %v1060_v40 = vld [vmem:[#allocation5 + $0x2c8] sm:$0xff] }
  0x9d   :  { %1232 = vmatmul.mubr.f32.gmra.mrb[18].mxu1 %v5725_v19  ;;  %4830 = vmatprep.subr.bf16.mxu1 %v7864_v0  ;;  %v5859_v14 = vsel %vm430_vm3, %v458_v16, %v459_v10  ;;  %v464_v16 = vrot.slane %v5848_v30, 2  ;;  %v82_v10 = vld [vmem:[#allocation2 + $0x88] sm:$0xff] }
  0x9e   :  { %1617 = vmatmul.mubr.f32.gmra.mrb[18].mxu0 %v5800_v34  ;;  %1236 = vmatprep.mubr.f32.mxu1 %v5803_v53  ;;  %8117 = vst [vmem:[#allocation46_spill] sm:$0xff] %v5859_v14 }
  0x9f   :  { %4035 = vmatprep.mubr.msk.f32.mxu0 %vm5560_vm1, %v5795_v24  ;;  %4690 = vmatpush1.bf16.msra.mxu0 %v4689_v36  ;;  %v1059_v36 = vld [vmem:[#allocation5 + $0x2c0] sm:$0xff] }
  0xa0   :  { %4691 = vmatprep.subr.bf16.mxu0 %v7864_v0  ;;  %4846 = vmatpush1.bf16.msra.mxu1 %v5584_v4  ;;  %v5844_v4 = vsel %vm321_vm2, %v349_v59, %v350_v55  ;;  %v79_v59 = vld [vmem:[#allocation2 + $0x70] sm:$0xff]  ;;  %v4698_v61 = vpack.c.bf16 %v1060_v40, %v1059_v36  ;;  %v4701_v36 = vpack.c.bf16 %v1062_v63, %v1061_v12  ;;  %v81_v63 = vld [vmem:[#allocation2 + $0x80] sm:$0xff] }
  0xa1   :  { %3973 = vmatmul.mubr.msk.f32.gmra.mrb[20].mxu1 %vm5560_vm1, %v5754_v46  ;;  %4831 = vmatprep.subr.bf16.mxu1 %v7864_v0  ;;  %8115 = vst [vmem:[#allocation44_spill] sm:$0xff] %v5844_v4  ;;  %v5877_v55 = vrot.slane %v79_v59, 7  ;;  %v1064_v59 = vld [vmem:[#allocation5 + $0x2e8] sm:$0xff] }
  0xa2   :  { %1622 = vmatmul.mubr.f32.gmra.mrb[20].mxu0 %v5818_v50  ;;  %1241 = vmatprep.mubr.f32.mxu1 %v5824_v57  ;;  %v4704_v1 = vpack.c.bf16 %v1064_v59, %v1063_v32 }
  0xa3   :  { %1626 = vmatprep.mubr.f32.mxu0 %v5807_v37  ;;  %4693 = vmatpush1.bf16.msra.mxu0 %v4692_v62  ;;  %v280_v62 = vsel %vm161_vm0, %v181_v5, 0.0  ;;  %8119 = vst [vmem:[#allocation48_spill] sm:$0xff] %v5877_v55  ;;  %v463_v5 = vrot.slane %v264_v35, 2  ;;  %v5889_v40 = vsel %vm161_vm0, %v5877_v55, %v184_v47 }
  0xa4   :  { %4694 = vmatprep.subr.bf16.mxu0 %v7864_v0  ;;  %4847 = vmatpush1.bf16.msra.mxu1 %v5589_v11  ;;  %v354_v11 = vrot.slane %v264_v35, 1  ;;  %8122 = vst [vmem:[#allocation51_spill] sm:$0xff] %v5889_v40  ;;  %v265_v35 = vsel %vm161_vm0, 0.0, %v5877_v55  ;;  %v360_v12 = vrot.slane %v5889_v40, 1 }
  0xa5   :  { %1242 = vmatmul.mubr.f32.gmra.mrb[22].mxu1 %v5766_v20  ;;  %4832 = vmatprep.subr.bf16.mxu1 %v7864_v0  ;;  %v5900_v44 = vsel %vm430_vm3, %v463_v5, %v464_v16  ;;  %v1065_v5 = vld [vmem:[#allocation5 + $0x2f0] sm:$0xff] }
  0xa6   :  { %1627 = vmatmul.mubr.f32.gmra.mrb[22].mxu0 %v5841_v21  ;;  %1246 = vmatprep.mubr.f32.mxu1 %v5844_v4  ;;  %8123 = vst [vmem:[#allocation52_spill] sm:$0xff] %v5900_v44 }
  0xa7   :  { %4037 = vmatprep.mubr.msk.f32.mxu0 %vm5560_vm1, %v5836_v9  ;;  %4696 = vmatpush1.bf16.msra.mxu0 %v4695_v23  ;;  %v357_v23 = vrot.slane %v280_v62, 1 }
  0xa8   :  { %4697 = vmatprep.subr.bf16.mxu0 %v7864_v0  ;;  %4848 = vmatpush1.bf16.msra.mxu1 %v5594_v18  ;;  %v5885_v18 = vsel %vm321_vm2, %v354_v11, %v355_v54  ;;  %v466_v11 = vrot.slane %v280_v62, 2  ;;  %v1066_v62 = vld [vmem:[#allocation5 + $0x2f8] sm:$0xff] }
  0xa9   :  { %3975 = vmatmul.mubr.msk.f32.gmra.mrb[24].mxu1 %vm5560_vm1, %v5795_v24  ;;  %4833 = vmatprep.subr.bf16.mxu1 %v7864_v0  ;;  %8121 = vst [vmem:[#allocation50_spill] sm:$0xff] %v5885_v18  ;;  %v8125_v24 = vmov 0.0|0.0   ;;  %v4707_v59 = vpack.c.bf16 %v1066_v62, %v1065_v5  ;;  %v83_v5 = vld [vmem:[#allocation2 + $0x90] sm:$0xff] }
  0xaa   :  { %1632 = vmatmul.mubr.f32.gmra.mrb[24].mxu0 %v5859_v14  ;;  %1251 = vmatprep.mubr.f32.mxu1 %v5865_v49 }
  0xab   :  { %1636 = vmatprep.mubr.f32.mxu0 %v5848_v30  ;;  %4699 = vmatpush1.bf16.msra.mxu0 %v4698_v61  ;;  %v5906_v61 = vsel %vm321_vm2, %v355_v54, %v357_v23  ;;  %v5918_v54 = vrot.slane %v81_v63, 7  ;;  %v469_v23 = vrot.slane %v5889_v40, 2 }
  0xac   :  { %4700 = vmatprep.subr.bf16.mxu0 %v7864_v0  ;;  %4849 = vmatpush1.bf16.msra.mxu1 %v5599_v25  ;;  %8124 = vst [vmem:[#allocation53_spill] sm:$0xff] %v5906_v61  ;;  %v359_v25 = vrot.slane %v265_v35, 1 }
  0xad   :  { %1252 = vmatmul.mubr.f32.gmra.mrb[26].mxu1 %v5807_v37  ;;  %4834 = vmatprep.subr.bf16.mxu1 %v7864_v0  ;;  %v281_v0 = vsel %vm161_vm0, %v184_v47, 0.0  ;;  %v187_v37 = vrot.slane %v82_v10, 7  ;;  %8126 = vst [vmem:[#allocation54_spill] sm:$0xff] %v5918_v54  ;;  %v468_v47 = vrot.slane %v265_v35, 2  ;;  %v266_v35 = vsel %vm161_vm0, 0.0, %v5918_v54 }
  0xae   :  { %1637 = vmatmul.mubr.f32.gmra.mrb[26].mxu0 %v5882_v22  ;;  %1256 = vmatprep.mubr.f32.mxu1 %v5885_v18  ;;  %v362_v32 = vrot.slane %v281_v0, 1 }
  0xaf   :  { %4039 = vmatprep.mubr.msk.f32.mxu0 %vm5560_vm1, %v5877_v55  ;;  %4702 = vmatpush1.bf16.msra.mxu0 %v4701_v36  ;;  %v5923_v36 = vsel %vm430_vm3, %v464_v16, %v466_v11  ;;  %v5930_v10 = vsel %vm161_vm0, %v5918_v54, %v187_v37  ;;  %v84_v16 = vld [vmem:[#allocation2 + $0x98] sm:$0xff]  ;;  %v282_v62 = vsel %vm161_vm0, %v187_v37, 0.0 }
  0xb0   :  { %4703 = vmatprep.subr.bf16.mxu0 %v8125_v24  ;;  %4850 = vmatpush1.bf16.msra.mxu1 %v5604_v33  ;;  %8127 = vst [vmem:[#allocation55_spill] sm:$0xff] %v5923_v36  ;;  %v5926_v33 = vsel %vm321_vm2, %v359_v25, %v360_v12  ;;  %8129 = vst [vmem:[#allocation57_spill] sm:$0xff] %v5930_v10  ;;  %v5947_v11 = vsel %vm321_vm2, %v360_v12, %v362_v32  ;;  %v364_v25 = vrot.slane %v266_v35, 1 }
  0xb1   :  { %3977 = vmatmul.mubr.msk.f32.gmra.mrb[28].mxu1 %vm5560_vm1, %v5836_v9  ;;  %4835 = vmatprep.subr.bf16.mxu1 %v8125_v24  ;;  %8128 = vst [vmem:[#allocation56_spill] sm:$0xff] %v5926_v33  ;;  %8131 = vst [vmem:[#allocation59_spill] sm:$0xff] %v5947_v11  ;;  %v365_v63 = vrot.slane %v5930_v10, 1  ;;  %v473_v12 = vrot.slane %v266_v35, 2  ;;  %v367_v32 = vrot.slane %v282_v62, 1  ;;  %v86_v35 = vld [vmem:[#allocation2 + $0xa8] sm:$0xff] }
  0xb2   :  { %1642 = vmatmul.mubr.f32.gmra.mrb[28].mxu0 %v5900_v44  ;;  %1261 = vmatprep.mubr.f32.mxu1 %v5906_v61  ;;  %v193_v20 = vrot.slane %v86_v35, 7 }
  0xb3   :  { %1646 = vmatprep.mubr.f32.mxu0 %v5889_v40  ;;  %4705 = vmatpush1.bf16.msra.mxu0 %v4704_v1  ;;  %v5941_v1 = vsel %vm430_vm3, %v468_v47, %v469_v23  ;;  %v474_v47 = vrot.slane %v5930_v10, 2 }
  0xb4   :  { %4706 = vmatprep.subr.bf16.mxu0 %v8125_v24  ;;  %4851 = vmatpush1.bf16.msra.mxu1 %v5609_v41  ;;  %8130 = vst [vmem:[#allocation58_spill] sm:$0xff] %v5941_v1  ;;  %v471_v41 = vrot.slane %v281_v0, 2  ;;  %v5958_v0 = vrot.slane %v83_v5, 7  ;;  %v284_v7 = vsel %vm161_vm0, %v193_v20, 0.0 }
  0xb5   :  { %1262 = vmatmul.mubr.f32.gmra.mrb[30].mxu1 %v5848_v30  ;;  %4836 = vmatprep.subr.bf16.mxu1 %v8125_v24  ;;  %v190_v30 = vrot.slane %v84_v16, 7 }
  0xb6   :  { %1647 = vmatmul.mubr.f32.gmra.mrb[30].mxu0 %v5923_v36  ;;  %1266 = vmatprep.mubr.f32.mxu1 %v5926_v33  ;;  %8132 = vst [vmem:[#allocation60_spill] sm:$0xff] %v5958_v0  ;;  %v5963_v37 = vsel %vm430_vm3, %v469_v23, %v471_v41  ;;  %v267_v16 = vsel %vm161_vm0, 0.0, %v5958_v0  ;;  %v5978_v23 = vsel %vm430_vm3, %v473_v12, %v474_v47 }
  0xb7   :  { %4041 = vmatprep.mubr.msk.f32.mxu0 %vm5560_vm1, %v5918_v54  ;;  %4708 = vmatpush1.bf16.msra.mxu0 %v4707_v59  ;;  %8133 = vst [vmem:[#allocation61_spill] sm:$0xff] %v5963_v37  ;;  %v5970_v59 = vsel %vm161_vm0, %v5958_v0, %v190_v30  ;;  %8136 = vst [vmem:[#allocation64_spill] sm:$0xff] %v5978_v23  ;;  %v5984_v41 = vsel %vm321_vm2, %v365_v63, %v367_v32  ;;  %v369_v5 = vrot.slane %v267_v16, 1 }
  0xb8   :  { %4709 = vmatprep.subr.bf16.mxu0 %v8125_v24  ;;  %4852 = vmatpush1.bf16.msra.mxu1 %v5614_v51  ;;  %v5966_v51 = vsel %vm321_vm2, %v364_v25, %v365_v63  ;;  %8135 = vst [vmem:[#allocation63_spill] sm:$0xff] %v5970_v59  ;;  %8137 = vst [vmem:[#allocation65_spill] sm:$0xff] %v5984_v41  ;;  %v476_v25 = vrot.slane %v282_v62, 2  ;;  %v283_v9 = vsel %vm161_vm0, %v190_v30, 0.0  ;;  %v478_v63 = vrot.slane %v267_v16, 2  ;;  %v88_v16 = vld [vmem:[#allocation2 + $0xb8] sm:$0xff] }
  0xb9   :  { %3979 = vmatmul.mubr.msk.f32.gmra.mrb[32].mxu1 %vm5560_vm1, %v5877_v55  ;;  %8134 = vst [vmem:[#allocation62_spill] sm:$0xff] %v5966_v51  ;;  %v370_v55 = vrot.slane %v5970_v59, 1  ;;  %v479_v62 = vrot.slane %v5970_v59, 2  ;;  %v372_v35 = vrot.slane %v283_v9, 1  ;;  %v196_v48 = vrot.slane %v88_v16, 7 }
  0xba   :  { %1652 = vmatmul.mubr.f32.gmra.mrb[32].mxu0 %v5941_v1  ;;  %1271 = vmatprep.mubr.f32.mxu1 %v5947_v11  ;;  %v5998_v32 = vsel %vm430_vm3, %v474_v47, %v476_v25  ;;  %v377_v16 = vrot.slane %v284_v7, 1 }
  0xbb   :  { %1656 = vmatprep.mubr.f32.mxu0 %v5930_v10  ;;  %8139 = vst [vmem:[#allocation67_spill] sm:$0xff] %v5998_v32  ;;  %v6001_v30 = vsel %vm321_vm2, %v369_v5, %v370_v55  ;;  %v6013_v47 = vsel %vm430_vm3, %v478_v63, %v479_v62  ;;  %v6019_v25 = vsel %vm321_vm2, %v370_v55, %v372_v35  ;;  %v481_v5 = vrot.slane %v283_v9, 2 }
  0xbc   :  { %8140 = vst [vmem:[#allocation68_spill] sm:$0xff] %v6001_v30  ;;  %8142 = vst [vmem:[#allocation70_spill] sm:$0xff] %v6013_v47  ;;  %v285_v8 = vsel %vm161_vm0, %v196_v48, 0.0 }
  0xbd   :  { %1272 = vmatmul.mubr.f32.gmra.mrb[34].mxu1 %v5889_v40  ;;  %v85_v40 = vld [vmem:[#allocation2 + $0xa0] sm:$0xff]  ;;  %8143 = vst [vmem:[#allocation71_spill] sm:$0xff] %v6019_v25  ;;  %v6033_v35 = vsel %vm430_vm3, %v479_v62, %v481_v5  ;;  %v486_v5 = vrot.slane %v284_v7, 2 }
  0xbe   :  { %1657 = vmatmul.mubr.f32.gmra.mrb[34].mxu0 %v5963_v37  ;;  %1276 = vmatprep.mubr.f32.mxu1 %v5966_v51  ;;  %v5993_v12 = vrot.slane %v85_v40, 7  ;;  %8145 = vst [vmem:[#allocation73_spill] sm:$0xff] %v6033_v35 }
  0xbf   :  { %4043 = vmatprep.mubr.msk.f32.mxu0 %vm5560_vm1, %v5958_v0 }
  0xc0   :  { %8138 = vst [vmem:[#allocation66_spill] sm:$0xff] %v5993_v12  ;;  %v268_v40 = vsel %vm161_vm0, 0.0, %v5993_v12 }
  0xc1   :  { %3981 = vmatmul.mubr.msk.f32.gmra.mrb[36].mxu1 %vm5560_vm1, %v5918_v54  ;;  %v6005_v54 = vsel %vm161_vm0, %v5993_v12, %v193_v20  ;;  %v374_v46 = vrot.slane %v268_v40, 1  ;;  %v483_v55 = vrot.slane %v268_v40, 2  ;;  %v90_v40 = vld [vmem:[#allocation2 + $0xc8] sm:$0xff] }
  0xc2   :  { %1662 = vmatmul.mubr.f32.gmra.mrb[36].mxu0 %v5978_v23  ;;  %1281 = vmatprep.mubr.f32.mxu1 %v5984_v41  ;;  %8141 = vst [vmem:[#allocation69_spill] sm:$0xff] %v6005_v54  ;;  %v375_v19 = vrot.slane %v6005_v54, 1  ;;  %v484_v9 = vrot.slane %v6005_v54, 2  ;;  %v199_v58 = vrot.slane %v90_v40, 7  ;;  %v382_v40 = vrot.slane %v285_v8, 1 }
  0xc3   :  { %1666 = vmatprep.mubr.f32.mxu0 %v5970_v59 }
  0xc4   :  { %v6036_v20 = vsel %vm321_vm2, %v374_v46, %v375_v19  ;;  %v6048_v62 = vsel %vm430_vm3, %v483_v55, %v484_v9  ;;  %v6054_v46 = vsel %vm321_vm2, %v375_v19, %v377_v16  ;;  %v6068_v16 = vsel %vm430_vm3, %v484_v9, %v486_v5 }
  0xc5   :  { %1282 = vmatmul.mubr.f32.gmra.mrb[38].mxu1 %v5930_v10  ;;  %v87_v10 = vld [vmem:[#allocation2 + $0xb0] sm:$0xff]  ;;  %8146 = vst [vmem:[#allocation74_spill] sm:$0xff] %v6036_v20  ;;  %8148 = vst [vmem:[#allocation76_spill] sm:$0xff] %v6048_v62  ;;  %v491_v5 = vrot.slane %v285_v8, 2 }
  0xc6   :  { %1667 = vmatmul.mubr.f32.gmra.mrb[38].mxu0 %v5998_v32  ;;  %1286 = vmatprep.mubr.f32.mxu1 %v6001_v30  ;;  %v6028_v63 = vrot.slane %v87_v10, 7  ;;  %8149 = vst [vmem:[#allocation77_spill] sm:$0xff] %v6054_v46  ;;  %8151 = vst [vmem:[#allocation79_spill] sm:$0xff] %v6068_v16 }
  0xc7   :  { %4045 = vmatprep.mubr.msk.f32.mxu0 %vm5560_vm1, %v5993_v12 }
  0xc8   :  { %8144 = vst [vmem:[#allocation72_spill] sm:$0xff] %v6028_v63  ;;  %v269_v10 = vsel %vm161_vm0, 0.0, %v6028_v63 }
  0xc9   :  { %3983 = vmatmul.mubr.msk.f32.gmra.mrb[40].mxu1 %vm5560_vm1, %v5958_v0  ;;  %v6040_v0 = vsel %vm161_vm0, %v6028_v63, %v196_v48  ;;  %v379_v39 = vrot.slane %v269_v10, 1  ;;  %v488_v19 = vrot.slane %v269_v10, 2  ;;  %v92_v10 = vld [vmem:[#allocation2 + $0xd8] sm:$0xff] }
  0xca   :  { %1672 = vmatmul.mubr.f32.gmra.mrb[40].mxu0 %v6013_v47  ;;  %1291 = vmatprep.mubr.f32.mxu1 %v6019_v25  ;;  %8147 = vst [vmem:[#allocation75_spill] sm:$0xff] %v6040_v0  ;;  %v380_v17 = vrot.slane %v6040_v0, 1  ;;  %v489_v7 = vrot.slane %v6040_v0, 2 }
  0xcb   :  { %1676 = vmatprep.mubr.f32.mxu0 %v6005_v54 }
  0xcc   :  { %v6071_v48 = vsel %vm321_vm2, %v379_v39, %v380_v17  ;;  %v6083_v9 = vsel %vm430_vm3, %v488_v19, %v489_v7  ;;  %v6089_v39 = vsel %vm321_vm2, %v380_v17, %v382_v40  ;;  %v6103_v40 = vsel %vm430_vm3, %v489_v7, %v491_v5 }
  0xcd   :  { %1292 = vmatmul.mubr.f32.gmra.mrb[42].mxu1 %v5970_v59  ;;  %v89_v59 = vld [vmem:[#allocation2 + $0xc0] sm:$0xff]  ;;  %8152 = vst [vmem:[#allocation80_spill] sm:$0xff] %v6071_v48  ;;  %8154 = vst [vmem:[#allocation82_spill] sm:$0xff] %v6083_v9 }
  0xce   :  { %1677 = vmatmul.mubr.f32.gmra.mrb[42].mxu0 %v6033_v35  ;;  %1296 = vmatprep.mubr.f32.mxu1 %v6036_v20  ;;  %v6063_v55 = vrot.slane %v89_v59, 7  ;;  %8155 = vst [vmem:[#allocation83_spill] sm:$0xff] %v6089_v39  ;;  %8157 = vst [vmem:[#allocation85_spill] sm:$0xff] %v6103_v40 }
  0xcf   :  { %4047 = vmatprep.mubr.msk.f32.mxu0 %vm5560_vm1, %v6028_v63 }
  0xd0   :  { %8150 = vst [vmem:[#allocation78_spill] sm:$0xff] %v6063_v55  ;;  %v270_v59 = vsel %vm161_vm0, 0.0, %v6063_v55 }
  0xd1   :  { %3985 = vmatmul.mubr.msk.f32.gmra.mrb[44].mxu1 %vm5560_vm1, %v5993_v12  ;;  %v6075_v12 = vsel %vm161_vm0, %v6063_v55, %v199_v58  ;;  %v493_v17 = vrot.slane %v270_v59, 2 }
  0xd2   :  { %1682 = vmatmul.mubr.f32.gmra.mrb[44].mxu0 %v6048_v62  ;;  %1301 = vmatprep.mubr.f32.mxu1 %v6054_v46  ;;  %8153 = vst [vmem:[#allocation81_spill] sm:$0xff] %v6075_v12  ;;  %v384_v46 = vrot.slane %v270_v59, 1  ;;  %v385_v20 = vrot.slane %v6075_v12, 1  ;;  %v286_v62 = vsel %vm161_vm0, %v199_v58, 0.0  ;;  %v494_v8 = vrot.slane %v6075_v12, 2  ;;  %v94_v59 = vld [vmem:[#allocation2 + $0xe8] sm:$0xff] }
  0xd3   :  { %1686 = vmatprep.mubr.f32.mxu0 %v6040_v0  ;;  %v496_v5 = vrot.slane %v286_v62, 2 }
  0xd4   :  { %v6106_v58 = vsel %vm321_vm2, %v384_v46, %v385_v20  ;;  %v6118_v7 = vsel %vm430_vm3, %v493_v17, %v494_v8 }
  0xd5   :  { %1302 = vmatmul.mubr.f32.gmra.mrb[46].mxu1 %v6005_v54  ;;  %v91_v54 = vld [vmem:[#allocation2 + $0xd0] sm:$0xff]  ;;  %8158 = vst [vmem:[#allocation86_spill] sm:$0xff] %v6106_v58  ;;  %8160 = vst [vmem:[#allocation88_spill] sm:$0xff] %v6118_v7 }
  0xd6   :  { %1687 = vmatmul.mubr.f32.gmra.mrb[46].mxu0 %v6068_v16  ;;  %1306 = vmatprep.mubr.f32.mxu1 %v6071_v48  ;;  %v202_v16 = vrot.slane %v92_v10, 7  ;;  %v6098_v19 = vrot.slane %v91_v54, 7  ;;  %v387_v10 = vrot.slane %v286_v62, 1 }
  0xd7   :  { %4049 = vmatprep.mubr.msk.f32.mxu0 %vm5560_vm1, %v6063_v55 }
  0xd8   :  { %8156 = vst [vmem:[#allocation84_spill] sm:$0xff] %v6098_v19  ;;  %v271_v54 = vsel %vm161_vm0, 0.0, %v6098_v19  ;;  %v6124_v46 = vsel %vm321_vm2, %v385_v20, %v387_v10  ;;  %v6138_v10 = vsel %vm430_vm3, %v494_v8, %v496_v5 }
  0xd9   :  { %3987 = vmatmul.mubr.msk.f32.gmra.mrb[48].mxu1 %vm5560_vm1, %v6028_v63  ;;  %v6110_v63 = vsel %vm161_vm0, %v6098_v19, %v202_v16  ;;  %8161 = vst [vmem:[#allocation89_spill] sm:$0xff] %v6124_v46  ;;  %v498_v20 = vrot.slane %v271_v54, 2  ;;  %8163 = vst [vmem:[#allocation91_spill] sm:$0xff] %v6138_v10 }
  0xda   :  { %1692 = vmatmul.mubr.f32.gmra.mrb[48].mxu0 %v6083_v9  ;;  %1311 = vmatprep.mubr.f32.mxu1 %v6089_v39  ;;  %8159 = vst [vmem:[#allocation87_spill] sm:$0xff] %v6110_v63  ;;  %v389_v39 = vrot.slane %v271_v54, 1  ;;  %v390_v48 = vrot.slane %v6110_v63, 1  ;;  %v287_v9 = vsel %vm161_vm0, %v202_v16, 0.0  ;;  %v499_v62 = vrot.slane %v6110_v63, 2 }
  0xdb   :  { %1696 = vmatprep.mubr.f32.mxu0 %v6075_v12  ;;  %v501_v54 = vrot.slane %v287_v9, 2 }
  0xdc   :  { %v6141_v16 = vsel %vm321_vm2, %v389_v39, %v390_v48  ;;  %v6153_v8 = vsel %vm430_vm3, %v498_v20, %v499_v62  ;;  %v6166_v20 = vld [vmem:[#allocation2 + $0xf8] sm:$0xff] }
  0xdd   :  { %1312 = vmatmul.mubr.f32.gmra.mrb[50].mxu1 %v6040_v0  ;;  %v93_v0 = vld [vmem:[#allocation2 + $0xe0] sm:$0xff]  ;;  %8164 = vst [vmem:[#allocation92_spill] sm:$0xff] %v6141_v16  ;;  %8166 = vst [vmem:[#allocation94_spill] sm:$0xff] %v6153_v8 }
  0xde   :  { %1697 = vmatmul.mubr.f32.gmra.mrb[50].mxu0 %v6103_v40  ;;  %1316 = vmatprep.mubr.f32.mxu1 %v6106_v58  ;;  %v205_v40 = vrot.slane %v94_v59, 7  ;;  %v6133_v17 = vrot.slane %v93_v0, 7  ;;  %v392_v59 = vrot.slane %v287_v9, 1  ;;  %v95_v58 = vld [vmem:[#allocation2 + $0xf0] sm:$0xff]  ;;  %8168 = vst [vmem:[#allocation96_spill] sm:$0xff] %v6166_v20  ;;  %v6174_v9 = vsel %vm430_vm3, %v499_v62, %v501_v54 }
  0xdf   :  { %4051 = vmatprep.mubr.msk.f32.mxu0 %vm5560_vm1, %v6098_v19  ;;  %8170 = vst [vmem:[#allocation98_spill] sm:$0xff] %v6174_v9 }
  0xe0   :  { %8162 = vst [vmem:[#allocation90_spill] sm:$0xff] %v6133_v17  ;;  %v272_v0 = vsel %vm161_vm0, 0.0, %v6133_v17  ;;  %v6159_v39 = vsel %vm321_vm2, %v390_v48, %v392_v59 }
  0xe1   :  { %3989 = vmatmul.mubr.msk.f32.gmra.mrb[52].mxu1 %vm5560_vm1, %v6063_v55  ;;  %v6145_v55 = vsel %vm161_vm0, %v6133_v17, %v205_v40  ;;  %8167 = vst [vmem:[#allocation95_spill] sm:$0xff] %v6159_v39  ;;  %v394_v5 = vrot.slane %v272_v0, 1  ;;  %v503_v48 = vrot.slane %v272_v0, 2 }
  0xe2   :  { %1702 = vmatmul.mubr.f32.gmra.mrb[52].mxu0 %v6118_v7  ;;  %1321 = vmatprep.mubr.f32.mxu1 %v6124_v46  ;;  %8165 = vst [vmem:[#allocation93_spill] sm:$0xff] %v6145_v55  ;;  %v395_v46 = vrot.slane %v6145_v55, 1  ;;  %v504_v59 = vrot.slane %v6145_v55, 2 }
  0xe3   :  { %1706 = vmatprep.mubr.f32.mxu0 %v6110_v63 }
  0xe5   :  { %1322 = vmatmul.mubr.f32.gmra.mrb[54].mxu1 %v6075_v12  ;;  %v288_v12 = vsel %vm161_vm0, %v205_v40, 0.0  ;;  %v6177_v40 = vsel %vm321_vm2, %v394_v5, %v395_v46 }
  0xe6   :  { %1707 = vmatmul.mubr.f32.gmra.mrb[54].mxu0 %v6138_v10  ;;  %1326 = vmatprep.mubr.f32.mxu1 %v6141_v16  ;;  %v6170_v16 = vrot.slane %v95_v58, 7  ;;  %8171 = vst [vmem:[#allocation99_spill] sm:$0xff] %v6177_v40  ;;  %v7922_v10 = vrot.slane %v6166_v20, 7  ;;  %v6188_v58 = vsel %vm430_vm3, %v503_v48, %v504_v59  ;;  %v506_v0 = vrot.slane %v288_v12, 2  ;;  %v99_v48 = vld [vmem:[#allocation2 + $0x110] sm:$0xff] }
  0xe7   :  { %4053 = vmatprep.mubr.msk.f32.mxu0 %vm5560_vm1, %v6133_v17  ;;  %8172 = vst [vmem:[#allocation100_spill] sm:$0xff] %v6188_v58 }
  0xe8   :  { %8169 = vst [vmem:[#allocation97_spill] sm:$0xff] %v6170_v16  ;;  %v6197_v54 = vsel %vm161_vm0, %v6170_v16, %v7922_v10  ;;  %v100_v10 = vld [vmem:[#allocation2 + $0x118] sm:$0xff] }
  0xe9   :  { %3991 = vmatmul.mubr.msk.f32.gmra.mrb[56].mxu1 %vm5560_vm1, %v6098_v19  ;;  %v397_v19 = vrot.slane %v288_v12, 1  ;;  %8174 = vst [vmem:[#allocation102_spill] sm:$0xff] %v6197_v54  ;;  %v6208_v12 = vsel %vm430_vm3, %v504_v59, %v506_v0  ;;  %v591_v20 = vrot.slane %v100_v10, 7 }
  0xea   :  { %1712 = vmatmul.mubr.f32.gmra.mrb[56].mxu0 %v6153_v8  ;;  %1331 = vmatprep.mubr.f32.mxu1 %v6159_v39  ;;  %v97_v8 = vld [vmem:[#allocation2 + $0x100] sm:$0xff]  ;;  %v98_v39 = vld [vmem:[#allocation2 + $0x108] sm:$0xff]  ;;  %8175 = vst [vmem:[#allocation103_spill] sm:$0xff] %v6208_v12 }
  0xeb   :  { %1716 = vmatprep.mubr.f32.mxu0 %v6145_v55  ;;  %v6191_v62 = vsel %vm321_vm2, %v395_v46, %v397_v19  ;;  %v6199_v5 = vrot.slane %v97_v8, 7  ;;  %v1067_v19 = vld [vmem:[#allocation5 + $0x300] sm:$0xff]  ;;  %v1068_v46 = vld [vmem:[#allocation5 + $0x308] sm:$0xff] }
  0xec   :  { %8173 = vst [vmem:[#allocation101_spill] sm:$0xff] %v6191_v62  ;;  %v4710_v59 = vpack.c.bf16 %v1068_v46, %v1067_v19 }
  0xed   :  { %1332 = vmatmul.mubr.f32.gmra.mrb[58].mxu1 %v6110_v63  ;;  %v588_v63 = vrot.slane %v98_v39, 7  ;;  %v6216_v39 = vsel %vm161_vm0, 0.0, %v6199_v5 }
  0xee   :  { %1717 = vmatmul.mubr.f32.gmra.mrb[58].mxu0 %v6174_v9  ;;  %1336 = vmatprep.mubr.f32.mxu1 %v6177_v40  ;;  %8176 = vst [vmem:[#allocation104_spill] sm:$0xff] %v6216_v39  ;;  %v745_v0 = vrot.slane %v6216_v39, 1  ;;  %v6227_v40 = vrot.slane %v99_v48, 7  ;;  %v1100_v48 = vld [vmem:[#allocation5 + $0x408] sm:$0xff] }
  0xef   :  { %4055 = vmatprep.mubr.msk.f32.mxu0 %vm5560_vm1, %v6170_v16  ;;  %v6212_v8 = vsel %vm161_vm0, %v6199_v5, %v588_v63 }
  0xf0   :  { %v6239_v10 = vsel %vm161_vm0, %v6227_v40, %v591_v20 }
  0xf1   :  { %3993 = vmatmul.mubr.msk.f32.gmra.mrb[60].mxu1 %vm5560_vm1, %v6133_v17  ;;  %v746_v17 = vrot.slane %v6212_v8, 1  ;;  %v751_v39 = vrot.slane %v6239_v10, 1 }
  0xf2   :  { %1722 = vmatmul.mubr.f32.gmra.mrb[60].mxu0 %v6188_v58  ;;  %1341 = vmatprep.mubr.f32.mxu1 %v6191_v62  ;;  %v6225_v62 = vsel %vm161_vm0, %v588_v63, 0.0  ;;  %v8178_v58 = vmov 0.0  }
  0xf3   :  { %1726 = vmatprep.mubr.f32.mxu0 %v6197_v54  ;;  %8177 = vst [vmem:[#allocation105_spill] sm:$0xff] %v6225_v62  ;;  %v1070_v54 = vld [vmem:[#allocation5 + $0x318] sm:$0xff]  ;;  %v6234_v19 = vsel %vm321_vm2, %v745_v0, %v746_v17  ;;  %v748_v63 = vrot.slane %v6225_v62, 1  ;;  %v101_v0 = vld [vmem:[#allocation2 + $0x120] sm:$0xff]  ;;  %v102_v62 = vld [vmem:[#allocation2 + $0x128] sm:$0xff] }
  0xf4   :  { %8179 = vst [vmem:[#allocation106_spill] sm:$0xff] %v6234_v19 }
  0xf5   :  { %1342 = vmatmul.mubr.f32.gmra.mrb[62].mxu1 %v6145_v55  ;;  %v1069_v55 = vld [vmem:[#allocation5 + $0x310] sm:$0xff] }
  0xf6   :  { %1727 = vmatmul.mubr.f32.gmra.mrb[62].mxu0 %v6208_v12  ;;  %1346 = vmatprep.mubr.f32.mxu1 %v5527_v2  ;;  %v4713_v46 = vpack.c.bf16 %v1070_v54, %v1069_v55  ;;  %v6253_v55 = vsel %vm321_vm2, %v746_v17, %v748_v63  ;;  %v594_v12 = vrot.slane %v102_v62, 7 }
  0xf7   :  { %1956 = vmatprep.mubr.f32.mxu0 %v5658_v27  ;;  %v1099_v27 = vld [vmem:[#allocation5 + $0x400] sm:$0xff]  ;;  %8180 = vst [vmem:[#allocation107_spill] sm:$0xff] %v6253_v55 }
  0xf9   :  { %1347 = vmatmul.mubr.f32.gmra.mrb[64].mxu1 %v8178_v58 }
  0xfa   :  { %1957 = vmatmul.mubr.f32.vlgmr.msra.gmra.mrb[0].mxu0 %v5638_v13  ;;  %1351 = vmatprep.mubr.f32.mxu1 %v5527_v2  ;;  %v6243_v13 = vsel %vm161_vm0, 0.0, %v6227_v40  ;;  %v1072_v2 = vld [vmem:[#allocation5 + $0x328] sm:$0xff] }
  0xfb   :  { %4711 = vmatpush1.bf16.msra.mxu0 %v4710_v59  ;;  %1961 = vmatprep.mubr.f32.mxu0 %v5677_v42  ;;  %v1071_v59 = vld [vmem:[#allocation5 + $0x320] sm:$0xff]  ;;  %v6246_v42 = vpack.c.bf16 %v1100_v48, %v1099_v27  ;;  %v750_v54 = vrot.slane %v6243_v13, 1  ;;  %v6258_v48 = vsel %vm161_vm0, %v591_v20, 0.0 }
  0xfc   :  { %4712 = vmatprep.subr.bf16.mxu0 %v8125_v24  ;;  %v4716_v27 = vpack.c.bf16 %v1072_v2, %v1071_v59  ;;  %v753_v17 = vrot.slane %v6258_v48, 1  ;;  %v1076_v59 = vld [vmem:[#allocation5 + $0x348] sm:$0xff] }
  0xfd   :  { %1352 = vmatmul.mubr.f32.gmra.mrb[66].mxu1 %v8178_v58  ;;  %v6260_v58 = vrot.slane %v101_v0, 7  ;;  %4758 = vmatprep.subr.bf16.mxu1 %v6246_v42  ;;  %v6271_v2 = vsel %vm321_vm2, %v750_v54, %v751_v39  ;;  %v103_v0 = vld [vmem:[#allocation2 + $0x130] sm:$0xff]  ;;  %v104_v54 = vld [vmem:[#allocation2 + $0x138] sm:$0xff] }
  0xfe   :  { %1962 = vmatmul.mubr.f32.gmra.mrb[2].mxu0 %v5661_v28  ;;  %1356 = vmatprep.mubr.f32.mxu1 %v6234_v19  ;;  %v1073_v28 = vld [vmem:[#allocation5 + $0x330] sm:$0xff]  ;;  %v1074_v19 = vld [vmem:[#allocation5 + $0x338] sm:$0xff]  ;;  %8181 = vst [vmem:[#allocation108_spill] sm:$0xff] %v6271_v2 }
  0xff   :  { %1966 = vmatprep.mubr.f32.mxu0 %v5695_v56  ;;  %4714 = vmatpush1.bf16.msra.mxu0 %v4713_v46  ;;  %v4719_v20 = vpack.c.bf16 %v1074_v19, %v1073_v28  ;;  %v6276_v62 = vsel %vm161_vm0, %v6260_v58, %v594_v12  ;;  %v6280_v63 = vsel %vm161_vm0, 0.0, %v6260_v58  ;;  %v1075_v46 = vld [vmem:[#allocation5 + $0x340] sm:$0xff]  ;;  %v6288_v19 = vsel %vm321_vm2, %v751_v39, %v753_v17 }
 0x100   :  { %4715 = vmatprep.subr.bf16.mxu0 %v8125_v24  ;;  %8182 = vst [vmem:[#allocation109_spill] sm:$0xff] %v6288_v19  ;;  %v756_v28 = vrot.slane %v6276_v62, 1  ;;  %v6295_v56 = vrot.slane %v103_v0, 7  ;;  %v1080_v0 = vld [vmem:[#allocation5 + $0x368] sm:$0xff] }
 0x101   :  { %3995 = vmatmul.mubr.msk.f32.gmra.mrb[68].mxu1 %vm5560_vm1, %v6199_v5 }
 0x102   :  { %1967 = vmatmul.mubr.f32.gmra.mrb[4].mxu0 %v5680_v43  ;;  %1361 = vmatprep.mubr.f32.mxu1 %v6253_v55  ;;  %v6293_v43 = vsel %vm161_vm0, %v594_v12, 0.0  ;;  %8183 = vst [vmem:[#allocation110_spill] sm:$0xff] %v6295_v56  ;;  %v597_v55 = vrot.slane %v104_v54, 7  ;;  %v105_v54 = vld [vmem:[#allocation2 + $0x140] sm:$0xff] }
 0x103   :  { %1971 = vmatprep.mubr.f32.mxu0 %v5718_v15  ;;  %4717 = vmatpush1.bf16.msra.mxu0 %v4716_v27  ;;  %v755_v27 = vrot.slane %v6280_v63, 1  ;;  %v4722_v15 = vpack.c.bf16 %v1076_v59, %v1075_v46  ;;  %v758_v39 = vrot.slane %v6293_v43, 1  ;;  %v6314_v46 = vsel %vm161_vm0, 0.0, %v6295_v56  ;;  %v1079_v59 = vld [vmem:[#allocation5 + $0x360] sm:$0xff] }
 0x104   :  { %4718 = vmatprep.subr.bf16.mxu0 %v8125_v24 }
 0x105   :  { %1362 = vmatmul.mubr.f32.gmra.mrb[70].mxu1 %v6212_v8  ;;  %v6305_v12 = vsel %vm321_vm2, %v755_v27, %v756_v28  ;;  %v106_v27 = vld [vmem:[#allocation2 + $0x148] sm:$0xff] }
 0x106   :  { %1972 = vmatmul.mubr.f32.gmra.mrb[6].mxu0 %v5701_v60  ;;  %1366 = vmatprep.mubr.f32.mxu1 %v6271_v2  ;;  %v1077_v60 = vld [vmem:[#allocation5 + $0x350] sm:$0xff]  ;;  %v1078_v2 = vld [vmem:[#allocation5 + $0x358] sm:$0xff]  ;;  %8184 = vst [vmem:[#allocation111_spill] sm:$0xff] %v6305_v12 }
 0x107   :  { %1976 = vmatprep.mubr.f32.mxu0 %v5736_v29  ;;  %4720 = vmatpush1.bf16.msra.mxu0 %v4719_v20  ;;  %v4725_v17 = vpack.c.bf16 %v1078_v2, %v1077_v60  ;;  %v6310_v20 = vsel %vm161_vm0, %v6295_v56, %v597_v55  ;;  %v6322_v60 = vsel %vm321_vm2, %v756_v28, %v758_v39  ;;  %v6329_v29 = vrot.slane %v105_v54, 7  ;;  %v1084_v54 = vld [vmem:[#allocation5 + $0x388] sm:$0xff] }
 0x108   :  { %4721 = vmatprep.subr.bf16.mxu0 %v8125_v24  ;;  %8185 = vst [vmem:[#allocation112_spill] sm:$0xff] %v6322_v60  ;;  %v761_v2 = vrot.slane %v6310_v20, 1 }
 0x109   :  { %3997 = vmatmul.mubr.msk.f32.gmra.mrb[72].mxu1 %vm5560_vm1, %v6227_v40 }
 0x10a   :  { %1977 = vmatmul.mubr.f32.gmra.mrb[8].mxu0 %v5721_v26  ;;  %1371 = vmatprep.mubr.f32.mxu1 %v6288_v19  ;;  %v4728_v26 = vpack.c.bf16 %v1080_v0, %v1079_v59  ;;  %v600_v19 = vrot.slane %v106_v27, 7  ;;  %v6348_v59 = vsel %vm161_vm0, 0.0, %v6329_v29  ;;  %v1083_v0 = vld [vmem:[#allocation5 + $0x380] sm:$0xff]  ;;  %v107_v27 = vld [vmem:[#allocation2 + $0x150] sm:$0xff] }
 0x10b   :  { %1981 = vmatprep.mubr.f32.mxu0 %v5759_v52  ;;  %4723 = vmatpush1.bf16.msra.mxu0 %v4722_v15  ;;  %v760_v15 = vrot.slane %v6314_v46, 1  ;;  %v6327_v52 = vsel %vm161_vm0, %v597_v55, 0.0 }
 0x10c   :  { %4724 = vmatprep.subr.bf16.mxu0 %v8125_v24  ;;  %v763_v28 = vrot.slane %v6327_v52, 1 }
 0x10d   :  { %1372 = vmatmul.mubr.f32.gmra.mrb[74].mxu1 %v6239_v10  ;;  %v6339_v55 = vsel %vm321_vm2, %v760_v15, %v761_v2  ;;  %v108_v15 = vld [vmem:[#allocation2 + $0x158] sm:$0xff] }
 0x10e   :  { %1982 = vmatmul.mubr.f32.gmra.mrb[10].mxu0 %v5742_v31  ;;  %1376 = vmatprep.mubr.f32.mxu1 %v6305_v12  ;;  %v1081_v31 = vld [vmem:[#allocation5 + $0x370] sm:$0xff]  ;;  %v1082_v12 = vld [vmem:[#allocation5 + $0x378] sm:$0xff]  ;;  %8186 = vst [vmem:[#allocation113_spill] sm:$0xff] %v6339_v55 }
 0x10f   :  { %1986 = vmatprep.mubr.f32.mxu0 %v5777_v3  ;;  %4726 = vmatpush1.bf16.msra.mxu0 %v4725_v17  ;;  %v4731_v39 = vpack.c.bf16 %v1082_v12, %v1081_v31  ;;  %v6344_v17 = vsel %vm161_vm0, %v6329_v29, %v600_v19  ;;  %v765_v31 = vrot.slane %v6348_v59, 1  ;;  %v6363_v3 = vrot.slane %v107_v27, 7  ;;  %v1088_v27 = vld [vmem:[#allocation5 + $0x3a8] sm:$0xff] }
 0x110   :  { %4727 = vmatprep.subr.bf16.mxu0 %v8125_v24  ;;  %v766_v12 = vrot.slane %v6344_v17, 1 }
 0x111   :  { %3999 = vmatmul.mubr.msk.f32.gmra.mrb[76].mxu1 %vm5560_vm1, %v6260_v58  ;;  %8188 = vst [vmem:[#allocation115_spill] sm:$0xff] %v6363_v3 }
 0x112   :  { %1987 = vmatmul.mubr.f32.gmra.mrb[12].mxu0 %v5762_v38  ;;  %1381 = vmatprep.mubr.f32.mxu1 %v6322_v60  ;;  %v4734_v38 = vpack.c.bf16 %v1084_v54, %v1083_v0  ;;  %v603_v60 = vrot.slane %v108_v15, 7  ;;  %v6382_v0 = vsel %vm161_vm0, 0.0, %v6363_v3  ;;  %v1087_v54 = vld [vmem:[#allocation5 + $0x3a0] sm:$0xff] }
 0x113   :  { %1991 = vmatprep.mubr.f32.mxu0 %v5800_v34  ;;  %4729 = vmatpush1.bf16.msra.mxu0 %v4728_v26  ;;  %v6356_v26 = vsel %vm321_vm2, %v761_v2, %v763_v28  ;;  %v6361_v34 = vsel %vm161_vm0, %v600_v19, 0.0  ;;  %v6373_v19 = vsel %vm321_vm2, %v765_v31, %v766_v12  ;;  %v109_v15 = vld [vmem:[#allocation2 + $0x160] sm:$0xff]  ;;  %v110_v31 = vld [vmem:[#allocation2 + $0x168] sm:$0xff] }
 0x114   :  { %4730 = vmatprep.subr.bf16.mxu0 %v8125_v24  ;;  %8187 = vst [vmem:[#allocation114_spill] sm:$0xff] %v6356_v26  ;;  %v768_v2 = vrot.slane %v6361_v34, 1 }
 0x115   :  { %1382 = vmatmul.mubr.f32.gmra.mrb[78].mxu1 %v6276_v62 }
 0x116   :  { %1992 = vmatmul.mubr.f32.gmra.mrb[14].mxu0 %v5783_v6  ;;  %1386 = vmatprep.mubr.f32.mxu1 %v6339_v55  ;;  %v1085_v6 = vld [vmem:[#allocation5 + $0x390] sm:$0xff]  ;;  %v1086_v55 = vld [vmem:[#allocation5 + $0x398] sm:$0xff] }
 0x117   :  { %1996 = vmatprep.mubr.f32.mxu0 %v5818_v50  ;;  %4732 = vmatpush1.bf16.msra.mxu0 %v4731_v39  ;;  %v4737_v28 = vpack.c.bf16 %v1086_v55, %v1085_v6  ;;  %v6378_v39 = vsel %vm161_vm0, %v6363_v3, %v603_v60  ;;  %v770_v6 = vrot.slane %v6382_v0, 1  ;;  %v6397_v50 = vrot.slane %v109_v15, 7 }
 0x118   :  { %4733 = vmatprep.subr.bf16.mxu0 %v8125_v24  ;;  %8189 = vst [vmem:[#allocation116_spill] sm:$0xff] %v6378_v39  ;;  %v771_v55 = vrot.slane %v6378_v39, 1 }
 0x119   :  { %4001 = vmatmul.mubr.msk.f32.gmra.mrb[80].mxu1 %vm5560_vm1, %v6295_v56  ;;  %8190 = vst [vmem:[#allocation117_spill] sm:$0xff] %v6397_v50 }
 0x11a   :  { %1997 = vmatmul.mubr.f32.gmra.mrb[16].mxu0 %v5803_v53  ;;  %1391 = vmatprep.mubr.f32.mxu1 %v6356_v26  ;;  %v4740_v53 = vpack.c.bf16 %v1088_v27, %v1087_v54  ;;  %v606_v26 = vrot.slane %v110_v31, 7  ;;  %v111_v54 = vld [vmem:[#allocation2 + $0x170] sm:$0xff]  ;;  %v112_v27 = vld [vmem:[#allocation2 + $0x178] sm:$0xff] }
 0x11b   :  { %2001 = vmatprep.mubr.f32.mxu0 %v5841_v21  ;;  %4735 = vmatpush1.bf16.msra.mxu0 %v4734_v38  ;;  %v6390_v38 = vsel %vm321_vm2, %v766_v12, %v768_v2  ;;  %v6395_v21 = vsel %vm161_vm0, %v603_v60, 0.0  ;;  %v6407_v12 = vsel %vm321_vm2, %v770_v6, %v771_v55 }
 0x11c   :  { %4736 = vmatprep.subr.bf16.mxu0 %v8125_v24  ;;  %8191 = vst [vmem:[#allocation118_spill] sm:$0xff] %v6407_v12  ;;  %v773_v60 = vrot.slane %v6395_v21, 1  ;;  %v6412_v2 = vsel %vm161_vm0, %v6397_v50, %v606_v26  ;;  %v6429_v6 = vsel %vm161_vm0, %v606_v26, 0.0 }
 0x11d   :  { %1392 = vmatmul.mubr.f32.gmra.mrb[82].mxu1 %v6310_v20  ;;  %8192 = vst [vmem:[#allocation119_spill] sm:$0xff] %v6412_v2  ;;  %v776_v31 = vrot.slane %v6412_v2, 1  ;;  %v778_v26 = vrot.slane %v6429_v6, 1 }
 0x11e   :  { %2002 = vmatmul.mubr.f32.gmra.mrb[18].mxu0 %v5824_v57  ;;  %1396 = vmatprep.mubr.f32.mxu1 %v6373_v19  ;;  %v609_v57 = vrot.slane %v112_v27, 7 }
 0x11f   :  { %2006 = vmatprep.mubr.f32.mxu0 %v5859_v14  ;;  %4738 = vmatpush1.bf16.msra.mxu0 %v4737_v28  ;;  %v6416_v28 = vsel %vm161_vm0, 0.0, %v6397_v50 }
 0x120   :  { %4739 = vmatprep.subr.bf16.mxu0 %v8125_v24  ;;  %v775_v15 = vrot.slane %v6416_v28, 1 }
 0x121   :  { %4003 = vmatmul.mubr.msk.f32.gmra.mrb[84].mxu1 %vm5560_vm1, %v6329_v29 }
 0x122   :  { %2007 = vmatmul.mubr.f32.gmra.mrb[20].mxu0 %v5844_v4  ;;  %1401 = vmatprep.mubr.f32.mxu1 %v6390_v38  ;;  %v6431_v4 = vrot.slane %v111_v54, 7 }
 0x123   :  { %2011 = vmatprep.mubr.f32.mxu0 %v5882_v22  ;;  %4741 = vmatpush1.bf16.msra.mxu0 %v4740_v53  ;;  %v6424_v53 = vsel %vm321_vm2, %v771_v55, %v773_v60  ;;  %v1089_v55 = vld [vmem:[#allocation5 + $0x3b0] sm:$0xff]  ;;  %v1090_v60 = vld [vmem:[#allocation5 + $0x3b8] sm:$0xff]  ;;  %v114_v22 = vld [vmem:[#allocation2 + $0x188] sm:$0xff] }
 0x124   :  { %4742 = vmatprep.subr.bf16.mxu0 %v8125_v24  ;;  %8193 = vst [vmem:[#allocation120_spill] sm:$0xff] %v6424_v53  ;;  %8194 = vst [vmem:[#allocation121_spill] sm:$0xff] %v6431_v4  ;;  %v4743_v54 = vpack.c.bf16 %v1090_v60, %v1089_v55  ;;  %v6445_v27 = vsel %vm161_vm0, %v6431_v4, %v609_v57 }
 0x125   :  { %1402 = vmatmul.mubr.f32.gmra.mrb[86].mxu1 %v6344_v17  ;;  %8196 = vst [vmem:[#allocation123_spill] sm:$0xff] %v6445_v27  ;;  %v781_v60 = vrot.slane %v6445_v27, 1 }
 0x126   :  { %2012 = vmatmul.mubr.f32.gmra.mrb[22].mxu0 %v5865_v49  ;;  %1406 = vmatprep.mubr.f32.mxu1 %v6407_v12  ;;  %v6440_v49 = vsel %vm321_vm2, %v775_v15, %v776_v31  ;;  %v6456_v15 = vsel %vm321_vm2, %v776_v31, %v778_v26 }
 0x127   :  { %2016 = vmatprep.mubr.f32.mxu0 %v5900_v44  ;;  %8195 = vst [vmem:[#allocation122_spill] sm:$0xff] %v6440_v49  ;;  %v6449_v44 = vsel %vm161_vm0, 0.0, %v6431_v4  ;;  %4744 = vmatpush1.bf16.msra.mxu0 %v4743_v54  ;;  %8197 = vst [vmem:[#allocation124_spill] sm:$0xff] %v6456_v15  ;;  %v612_v54 = vrot.slane %v114_v22, 7 }
 0x128   :  { %v780_v55 = vrot.slane %v6449_v44, 1  ;;  %4745 = vmatprep.subr.bf16.mxu0 %v8125_v24 }
 0x129   :  { %4005 = vmatmul.mubr.msk.f32.gmra.mrb[88].mxu1 %vm5560_vm1, %v6363_v3 }
 0x12a   :  { %2017 = vmatmul.mubr.f32.gmra.mrb[24].mxu0 %v5885_v18  ;;  %1411 = vmatprep.mubr.f32.mxu1 %v6424_v53  ;;  %v113_v18 = vld [vmem:[#allocation2 + $0x180] sm:$0xff]  ;;  %v6473_v31 = vsel %vm321_vm2, %v780_v55, %v781_v60 }
 0x12b   :  { %2021 = vmatprep.mubr.f32.mxu0 %v5923_v36  ;;  %v6462_v36 = vsel %vm161_vm0, %v609_v57, 0.0  ;;  %v6464_v14 = vrot.slane %v113_v18, 7  ;;  %8200 = vst [vmem:[#allocation127_spill] sm:$0xff] %v6473_v31  ;;  %v115_v18 = vld [vmem:[#allocation2 + $0x190] sm:$0xff] }
 0x12c   :  { %8198 = vst [vmem:[#allocation125_spill] sm:$0xff] %v6462_v36  ;;  %v783_v26 = vrot.slane %v6462_v36, 1 }
 0x12d   :  { %1412 = vmatmul.mubr.f32.gmra.mrb[90].mxu1 %v6378_v39  ;;  %8199 = vst [vmem:[#allocation126_spill] sm:$0xff] %v6464_v14  ;;  %v6478_v57 = vsel %vm161_vm0, %v6464_v14, %v612_v54  ;;  %v6482_v22 = vsel %vm161_vm0, 0.0, %v6464_v14 }
 0x12e   :  { %2022 = vmatmul.mubr.f32.gmra.mrb[26].mxu0 %v5906_v61  ;;  %1416 = vmatprep.mubr.f32.mxu1 %v6440_v49  ;;  %8201 = vst [vmem:[#allocation128_spill] sm:$0xff] %v6478_v57  ;;  %v6489_v55 = vsel %vm321_vm2, %v781_v60, %v783_v26  ;;  %v785_v61 = vrot.slane %v6482_v22, 1  ;;  %v1091_v60 = vld [vmem:[#allocation5 + $0x3c0] sm:$0xff]  ;;  %v1092_v26 = vld [vmem:[#allocation5 + $0x3c8] sm:$0xff] }
 0x12f   :  { %2026 = vmatprep.mubr.f32.mxu0 %v5941_v1  ;;  %8202 = vst [vmem:[#allocation129_spill] sm:$0xff] %v6489_v55  ;;  %v6494_v1 = vsel %vm161_vm0, %v612_v54, 0.0 }
 0x130   :  { %8203 = vst [vmem:[#allocation130_spill] sm:$0xff] %v6494_v1  ;;  %v788_v54 = vrot.slane %v6494_v1, 1 }
 0x131   :  { %4007 = vmatmul.mubr.msk.f32.gmra.mrb[92].mxu1 %vm5560_vm1, %v6397_v50 }
 0x132   :  { %2027 = vmatmul.mubr.f32.gmra.mrb[28].mxu0 %v5926_v33  ;;  %1421 = vmatprep.mubr.f32.mxu1 %v6456_v15  ;;  %v116_v33 = vld [vmem:[#allocation2 + $0x198] sm:$0xff]  ;;  %v6496_v15 = vrot.slane %v115_v18, 7  ;;  %v4746_v18 = vpack.c.bf16 %v1092_v26, %v1091_v60 }
 0x133   :  { %2031 = vmatprep.mubr.f32.mxu0 %v5963_v37  ;;  %v786_v37 = vrot.slane %v6478_v57, 1  ;;  %v615_v36 = vrot.slane %v116_v33, 7 }
 0x134   :  { %8204 = vst [vmem:[#allocation131_spill] sm:$0xff] %v6496_v15  ;;  %4747 = vmatpush1.bf16.msra.mxu0 %v4746_v18 }
 0x135   :  { %1422 = vmatmul.mubr.f32.gmra.mrb[94].mxu1 %v6412_v2  ;;  %v6510_v33 = vsel %vm161_vm0, %v6496_v15, %v615_v36  ;;  %4748 = vmatprep.subr.bf16.mxu0 %v8125_v24 }
 0x136   :  { %2032 = vmatmul.mubr.f32.gmra.mrb[30].mxu0 %v5947_v11  ;;  %1426 = vmatprep.mubr.f32.mxu1 %v6473_v31  ;;  %v6505_v11 = vsel %vm321_vm2, %v785_v61, %v786_v37  ;;  %8206 = vst [vmem:[#allocation133_spill] sm:$0xff] %v6510_v33  ;;  %v6521_v61 = vsel %vm321_vm2, %v786_v37, %v788_v54  ;;  %v791_v26 = vrot.slane %v6510_v33, 1 }
 0x137   :  { %2036 = vmatprep.mubr.f32.mxu0 %v5978_v23  ;;  %8205 = vst [vmem:[#allocation132_spill] sm:$0xff] %v6505_v11  ;;  %v6514_v23 = vsel %vm161_vm0, 0.0, %v6496_v15  ;;  %8207 = vst [vmem:[#allocation134_spill] sm:$0xff] %v6521_v61 }
 0x138   :  { %v790_v60 = vrot.slane %v6514_v23, 1 }
 0x139   :  { %4009 = vmatmul.mubr.msk.f32.gmra.mrb[96].mxu1 %vm5560_vm1, %v6431_v4 }
 0x13a   :  { %2037 = vmatmul.mubr.f32.gmra.mrb[32].mxu0 %v5966_v51  ;;  %1431 = vmatprep.mubr.f32.mxu1 %v6489_v55  ;;  %v117_v51 = vld [vmem:[#allocation2 + $0x1a0] sm:$0xff]  ;;  %v118_v55 = vld [vmem:[#allocation2 + $0x1a8] sm:$0xff]  ;;  %v6538_v37 = vsel %vm321_vm2, %v790_v60, %v791_v26  ;;  %v8213_v60 = vld [vmem:[#allocation76_spill] sm:$0xff] }
 0x13b   :  { %2041 = vmatprep.mubr.f32.mxu0 %v5998_v32  ;;  %v6527_v32 = vsel %vm161_vm0, %v615_v36, 0.0  ;;  %v6529_v1 = vrot.slane %v117_v51, 7  ;;  %v618_v18 = vrot.slane %v118_v55, 7  ;;  %8210 = vst [vmem:[#allocation137_spill] sm:$0xff] %v6538_v37  ;;  %v119_v55 = vld [vmem:[#allocation2 + $0x1b0] sm:$0xff] }
 0x13c   :  { %8208 = vst [vmem:[#allocation135_spill] sm:$0xff] %v6527_v32  ;;  %v793_v54 = vrot.slane %v6527_v32, 1  ;;  %v6561_v32 = vrot.slane %v119_v55, 7 }
 0x13d   :  { %1432 = vmatmul.mubr.f32.gmra.mrb[98].mxu1 %v6445_v27  ;;  %8209 = vst [vmem:[#allocation136_spill] sm:$0xff] %v6529_v1  ;;  %v6543_v36 = vsel %vm161_vm0, %v6529_v1, %v618_v18  ;;  %v6547_v51 = vsel %vm161_vm0, 0.0, %v6529_v1 }
 0x13e   :  { %2042 = vmatmul.mubr.f32.gmra.mrb[34].mxu0 %v5984_v41  ;;  %1436 = vmatprep.mubr.f32.mxu1 %v6505_v11  ;;  %8211 = vst [vmem:[#allocation138_spill] sm:$0xff] %v6543_v36  ;;  %8212 = vst [vmem:[#allocation139_spill] sm:$0xff] %v6547_v51  ;;  %v6554_v41 = vsel %vm321_vm2, %v791_v26, %v793_v54  ;;  %v1093_v26 = vld [vmem:[#allocation5 + $0x3d0] sm:$0xff]  ;;  %v1094_v54 = vld [vmem:[#allocation5 + $0x3d8] sm:$0xff] }
 0x13f   :  { %2046 = vmatprep.mubr.f32.mxu0 %v6013_v47  ;;  %8214 = vst [vmem:[#allocation140_spill] sm:$0xff] %v6554_v41  ;;  %v796_v47 = vrot.slane %v6543_v36, 1  ;;  %8216 = vst [vmem:[#allocation142_spill] sm:$0xff] %v6561_v32  ;;  %v4749_v55 = vpack.c.bf16 %v1094_v54, %v1093_v26  ;;  %v8224_v26 = vld [vmem:[#allocation82_spill] sm:$0xff] }
 0x141   :  { %4011 = vmatmul.mubr.msk.f32.gmra.mrb[100].mxu1 %vm5560_vm1, %v6464_v14  ;;  %4750 = vmatpush1.bf16.msra.mxu0 %v4749_v55 }
 0x142   :  { %2047 = vmatmul.mubr.f32.gmra.mrb[36].mxu0 %v6001_v30  ;;  %1441 = vmatprep.mubr.f32.mxu1 %v6521_v61  ;;  %v120_v30 = vld [vmem:[#allocation2 + $0x1b8] sm:$0xff]  ;;  %v6559_v61 = vsel %vm161_vm0, %v618_v18, 0.0 }
 0x143   :  { %2051 = vmatprep.mubr.f32.mxu0 %v6033_v35  ;;  %v795_v35 = vrot.slane %v6547_v51, 1  ;;  %8215 = vst [vmem:[#allocation141_spill] sm:$0xff] %v6559_v61  ;;  %v621_v11 = vrot.slane %v120_v30, 7  ;;  %v798_v18 = vrot.slane %v6559_v61, 1  ;;  %4751 = vmatprep.subr.bf16.mxu0 %v8125_v24 }
 0x145   :  { %1442 = vmatmul.mubr.f32.gmra.mrb[102].mxu1 %v6478_v57  ;;  %v6577_v30 = vsel %vm161_vm0, %v6561_v32, %v621_v11  ;;  %v6588_v54 = vsel %vm321_vm2, %v796_v47, %v798_v18  ;;  %v8229_v18 = vld [vmem:[#allocation80_spill] sm:$0xff] }
 0x146   :  { %2052 = vmatmul.mubr.f32.gmra.mrb[38].mxu0 %v6019_v25  ;;  %1446 = vmatprep.mubr.f32.mxu1 %v6538_v37  ;;  %v8217_v25 = vld [vmem:[#allocation74_spill] sm:$0xff]  ;;  %v6570_v37 = vsel %vm321_vm2, %v795_v35, %v796_v47  ;;  %8221 = vst [vmem:[#allocation145_spill] sm:$0xff] %v6577_v30  ;;  %v8223_v35 = vld [vmem:[#allocation77_spill] sm:$0xff]  ;;  %8225 = vst [vmem:[#allocation147_spill] sm:$0xff] %v6588_v54  ;;  %v801_v61 = vrot.slane %v6577_v30, 1 }
 0x147   :  { %2056 = vmatprep.mubr.f32.mxu0 %v8213_v60  ;;  %v8218_v60 = vld [vmem:[#allocation79_spill] sm:$0xff]  ;;  %8219 = vst [vmem:[#allocation143_spill] sm:$0xff] %v6570_v37 }
 0x149   :  { %4013 = vmatmul.mubr.msk.f32.gmra.mrb[104].mxu1 %vm5560_vm1, %v6496_v15  ;;  %v122_v15 = vld [vmem:[#allocation2 + $0x1c8] sm:$0xff] }
 0x14a   :  { %2057 = vmatmul.mubr.f32.gmra.mrb[40].mxu0 %v8217_v25  ;;  %1451 = vmatprep.mubr.f32.mxu1 %v6554_v41  ;;  %v6581_v25 = vsel %vm161_vm0, 0.0, %v6561_v32 }
 0x14b   :  { %2061 = vmatprep.mubr.f32.mxu0 %v8218_v60  ;;  %8222 = vst [vmem:[#allocation146_spill] sm:$0xff] %v6581_v25  ;;  %v121_v60 = vld [vmem:[#allocation2 + $0x1c0] sm:$0xff] }
 0x14c   :  { %v6573_v51 = vpop.f32.mrb[0].mxu1  ;;  %v6598_v55 = vrot.slane %v121_v60, 7 }
 0x14d   :  { %8220 = vst [vmem:[#allocation144_spill] sm:$0xff] %v6573_v51  ;;  %1452 = vmatmul.mubr.f32.gmra.mrb[106].mxu1 %v6510_v33  ;;  %v1190_v41 = vpop.f32.mrb[1].mxu1  ;;  %v800_v51 = vrot.slane %v6581_v25, 1 }
 0x14e   :  { %2062 = vmatmul.mubr.f32.gmra.mrb[42].mxu0 %v8223_v35  ;;  %1456 = vmatprep.mubr.f32.mxu1 %v6570_v37  ;;  %v6596_v41 = vsel %vm161_vm0, %v621_v11, 0.0  ;;  %8228 = vst [vmem:[#allocation150_spill] sm:$0xff] %v6598_v55  ;;  %v624_v35 = vrot.slane %v122_v15, 7  ;;  %v6618_v60 = vsel %vm161_vm0, 0.0, %v6598_v55 }
 0x14f   :  { %2066 = vmatprep.mubr.f32.mxu0 %v8224_v26  ;;  %8227 = vst [vmem:[#allocation149_spill] sm:$0xff] %v6596_v41  ;;  %v8230_v26 = vld [vmem:[#allocation85_spill] sm:$0xff]  ;;  %v6607_v37 = vsel %vm321_vm2, %v800_v51, %v801_v61  ;;  %v803_v11 = vrot.slane %v6596_v41, 1  ;;  %8234 = vst [vmem:[#allocation154_spill] sm:$0xff] %v6618_v60 }
 0x150   :  { %v6593_v33 = vpop.f32.mrb[2].mxu1  ;;  %8231 = vst [vmem:[#allocation151_spill] sm:$0xff] %v6607_v37  ;;  %v6614_v15 = vsel %vm161_vm0, %v6598_v55, %v624_v35 }
 0x151   :  { %8226 = vst [vmem:[#allocation148_spill] sm:$0xff] %v6593_v33  ;;  %4015 = vmatmul.mubr.msk.f32.gmra.mrb[108].mxu1 %vm5560_vm1, %v6529_v1  ;;  %v1195_v47 = vpop.f32.mrb[3].mxu1  ;;  %8233 = vst [vmem:[#allocation153_spill] sm:$0xff] %v6614_v15  ;;  %v6625_v51 = vsel %vm321_vm2, %v801_v61, %v803_v11  ;;  %v806_v41 = vrot.slane %v6614_v15, 1  ;;  %v6632_v1 = vsel %vm161_vm0, %v624_v35, 0.0  ;;  %v1095_v61 = vld [vmem:[#allocation5 + $0x3e0] sm:$0xff] }
 0x152   :  { %2067 = vmatmul.mubr.f32.gmra.mrb[44].mxu0 %v8229_v18  ;;  %1461 = vmatprep.mubr.f32.mxu1 %v6588_v54  ;;  %v123_v18 = vld [vmem:[#allocation2 + $0x1d0] sm:$0xff]  ;;  %v8235_v54 = vld [vmem:[#allocation83_spill] sm:$0xff]  ;;  %8236 = vst [vmem:[#allocation155_spill] sm:$0xff] %v6625_v51  ;;  %8238 = vst [vmem:[#allocation157_spill] sm:$0xff] %v6632_v1  ;;  %v808_v35 = vrot.slane %v6632_v1, 1 }
 0x153   :  { %2071 = vmatprep.mubr.f32.mxu0 %v8230_v26  ;;  %v124_v26 = vld [vmem:[#allocation2 + $0x1d8] sm:$0xff]  ;;  %v1096_v11 = vld [vmem:[#allocation5 + $0x3e8] sm:$0xff] }
 0x154   :  { %v6610_v33 = vpop.f32.mrb[4].mxu1 }
 0x155   :  { %8232 = vst [vmem:[#allocation152_spill] sm:$0xff] %v6610_v33  ;;  %1462 = vmatmul.mubr.f32.gmra.mrb[110].mxu1 %v6543_v36  ;;  %v1200_v47 = vpop.f32.mrb[5].mxu1  ;;  %v805_v33 = vrot.slane %v6618_v60, 1  ;;  %v627_v36 = vrot.slane %v124_v26, 7 }
 0x156   :  { %2072 = vmatmul.mubr.f32.gmra.mrb[46].mxu0 %v8235_v54  ;;  %1466 = vmatprep.mubr.f32.mxu1 %v6607_v37  ;;  %v6634_v47 = vrot.slane %v123_v18, 7  ;;  %v8241_v37 = vld [vmem:[#allocation91_spill] sm:$0xff]  ;;  %v4752_v18 = vpack.c.bf16 %v1096_v11, %v1095_v61  ;;  %v8247_v61 = vld [vmem:[#allocation94_spill] sm:$0xff]  ;;  %v6661_v11 = vsel %vm321_vm2, %v806_v41, %v808_v35  ;;  %v8252_v35 = vld [vmem:[#allocation92_spill] sm:$0xff] }
 0x157   :  { %2076 = vmatprep.mubr.f32.mxu0 %v6118_v7  ;;  %v8240_v7 = vld [vmem:[#allocation86_spill] sm:$0xff]  ;;  %8248 = vst [vmem:[#allocation163_spill] sm:$0xff] %v6661_v11 }
 0x158   :  { %v6629_v25 = vpop.f32.mrb[6].mxu1  ;;  %8239 = vst [vmem:[#allocation158_spill] sm:$0xff] %v6634_v47  ;;  %v6650_v60 = vsel %vm161_vm0, %v6634_v47, %v627_v36  ;;  %4753 = vmatpush1.bf16.msra.mxu0 %v4752_v18 }
 0x159   :  { %8237 = vst [vmem:[#allocation156_spill] sm:$0xff] %v6629_v25  ;;  %4017 = vmatmul.mubr.msk.f32.gmra.mrb[112].mxu1 %vm5560_vm1, %v6561_v32  ;;  %v1205_v54 = vpop.f32.mrb[7].mxu1  ;;  %v6643_v25 = vsel %vm321_vm2, %v805_v33, %v806_v41  ;;  %8244 = vst [vmem:[#allocation161_spill] sm:$0xff] %v6650_v60  ;;  %v8246_v33 = vld [vmem:[#allocation89_spill] sm:$0xff]  ;;  %v811_v1 = vrot.slane %v6650_v60, 1  ;;  %4754 = vmatprep.subr.bf16.mxu0 %v8125_v24 }
 0x15a   :  { %2077 = vmatmul.mubr.f32.gmra.mrb[48].mxu0 %v8240_v7  ;;  %1471 = vmatprep.mubr.f32.mxu1 %v6625_v51  ;;  %8242 = vst [vmem:[#allocation159_spill] sm:$0xff] %v6643_v25  ;;  %v6654_v54 = vsel %vm161_vm0, 0.0, %v6634_v47  ;;  %v126_v51 = vld [vmem:[#allocation2 + $0x1e8] sm:$0xff] }
 0x15b   :  { %2081 = vmatprep.mubr.f32.mxu0 %v8241_v37  ;;  %8245 = vst [vmem:[#allocation162_spill] sm:$0xff] %v6654_v54  ;;  %v125_v37 = vld [vmem:[#allocation2 + $0x1e0] sm:$0xff] }
 0x15c   :  { %v6646_v26 = vpop.f32.mrb[8].mxu1  ;;  %v6671_v18 = vrot.slane %v125_v37, 7 }
 0x15d   :  { %8243 = vst [vmem:[#allocation160_spill] sm:$0xff] %v6646_v26  ;;  %1472 = vmatmul.mubr.f32.gmra.mrb[114].mxu1 %v6577_v30  ;;  %v1210_v7 = vpop.f32.mrb[9].mxu1  ;;  %v810_v26 = vrot.slane %v6654_v54, 1 }
 0x15e   :  { %2082 = vmatmul.mubr.f32.gmra.mrb[50].mxu0 %v8246_v33  ;;  %1476 = vmatprep.mubr.f32.mxu1 %v6643_v25  ;;  %v6669_v7 = vsel %vm161_vm0, %v627_v36, 0.0  ;;  %8251 = vst [vmem:[#allocation166_spill] sm:$0xff] %v6671_v18  ;;  %v630_v33 = vrot.slane %v126_v51, 7  ;;  %v6691_v51 = vsel %vm161_vm0, 0.0, %v6671_v18 }
 0x15f   :  { %2086 = vmatprep.mubr.f32.mxu0 %v8247_v61  ;;  %8250 = vst [vmem:[#allocation165_spill] sm:$0xff] %v6669_v7  ;;  %v6680_v24 = vsel %vm321_vm2, %v810_v26, %v811_v1  ;;  %v813_v36 = vrot.slane %v6669_v7, 1  ;;  %8256 = vst [vmem:[#allocation170_spill] sm:$0xff] %v6691_v51  ;;  %v8257_v26 = vld [vmem:[#allocation95_spill] sm:$0xff]  ;;  %v815_v61 = vrot.slane %v6691_v51, 1  ;;  %v1097_v51 = vld [vmem:[#allocation5 + $0x3f0] sm:$0xff] }
 0x160   :  { %v6666_v32 = vpop.f32.mrb[10].mxu1  ;;  %8253 = vst [vmem:[#allocation167_spill] sm:$0xff] %v6680_v24  ;;  %v6687_v37 = vsel %vm161_vm0, %v6671_v18, %v630_v33 }
 0x161   :  { %8249 = vst [vmem:[#allocation164_spill] sm:$0xff] %v6666_v32  ;;  %4019 = vmatmul.mubr.msk.f32.gmra.mrb[116].mxu1 %vm5560_vm1, %v6598_v55  ;;  %v1215_v41 = vpop.f32.mrb[11].mxu1  ;;  %8255 = vst [vmem:[#allocation169_spill] sm:$0xff] %v6687_v37  ;;  %v1098_v55 = vld [vmem:[#allocation5 + $0x3f8] sm:$0xff] }
 0x162   :  { %2087 = vmatmul.mubr.f32.gmra.mrb[52].mxu0 %v8252_v35  ;;  %1481 = vmatprep.mubr.f32.mxu1 %v6661_v11  ;;  %v273_v35 = vsel %vm161_vm0, 0.0, %v6170_v16  ;;  %v816_v11 = vrot.slane %v6687_v37, 1  ;;  %v6708_v16 = vsel %vm161_vm0, %v630_v33, 0.0 }
 0x163   :  { %2091 = vmatprep.mubr.f32.mxu0 %v6174_v9  ;;  %v8258_v9 = vld [vmem:[#allocation100_spill] sm:$0xff]  ;;  %v548_v25 = vrot.slane %v273_v35, 2 }
 0x164   :  { %v6683_v32 = vpop.f32.mrb[12].mxu1  ;;  %v6720_v33 = vsel %vm321_vm2, %v815_v61, %v816_v11 }
 0x165   :  { %8254 = vst [vmem:[#allocation168_spill] sm:$0xff] %v6683_v32  ;;  %1482 = vmatmul.mubr.f32.gmra.mrb[118].mxu1 %v6614_v15  ;;  %v1220_v41 = vpop.f32.mrb[13].mxu1  ;;  %v6700_v32 = vsel %vm321_vm2, %v811_v1, %v813_v36  ;;  %v8265_v15 = vld [vmem:[#allocation103_spill] sm:$0xff] }
 0x166   :  { %2092 = vmatmul.mubr.f32.gmra.mrb[54].mxu0 %v8257_v26  ;;  %1486 = vmatprep.mubr.f32.mxu1 %v6680_v24  ;;  %8259 = vst [vmem:[#allocation171_spill] sm:$0xff] %v6700_v32  ;;  %v8261_v41 = vld [vmem:[#allocation102_spill] sm:$0xff]  ;;  %v8264_v24 = vld [vmem:[#allocation99_spill] sm:$0xff] }
 0x167   :  { %2096 = vmatprep.mubr.f32.mxu0 %v8258_v9  ;;  %v549_v54 = vrot.slane %v8261_v41, 2  ;;  %v8262_v9 = vld [vmem:[#allocation96_spill] sm:$0xff]  ;;  %v542_v30 = vrot.slane %v8261_v41, 1  ;;  %v851_v41 = vrot.slane %v6212_v8, 2 }
 0x168   :  { %v6704_v7 = vpop.f32.mrb[14].mxu1  ;;  %v8263_v1 = vrot.slane %v8262_v9, 7  ;;  %8266 = vst [vmem:[#allocation96_spill] sm:$0xff] %v6720_v33 }
 0x169   :  { %8260 = vst [vmem:[#allocation172_spill] sm:$0xff] %v6704_v7  ;;  %4021 = vmatmul.mubr.msk.f32.gmra.mrb[120].mxu1 %vm5560_vm1, %v6634_v47  ;;  %v1225_v26 = vpop.f32.mrb[15].mxu1  ;;  %v541_v7 = vrot.slane %v273_v35, 1  ;;  %v4755_v47 = vpack.c.bf16 %v1098_v55, %v1097_v51 }
 0x16a   :  { %v289_v36 = vsel %vm161_vm0, %v8263_v1, 0.0  ;;  %2097 = vmatmul.mubr.f32.gmra.mrb[56].mxu0 %v8264_v24  ;;  %1491 = vmatprep.mubr.f32.mxu1 %v6700_v32  ;;  %v818_v26 = vrot.slane %v6708_v16, 1  ;;  %v6727_v1 = vsel %vm430_vm3, %v548_v25, %v549_v54  ;;  %v8268_v32 = vld [vmem:[#allocation101_spill] sm:$0xff] }
 0x16b   :  { %2101 = vmatprep.mubr.f32.mxu0 %v8265_v15  ;;  %v551_v24 = vrot.slane %v289_v36, 2  ;;  %4756 = vmatpush1.bf16.msra.mxu0 %v4755_v47  ;;  %v6734_v61 = vsel %vm321_vm2, %v541_v7, %v542_v30  ;;  %v544_v51 = vrot.slane %v289_v36, 1 }
 0x16c   :  { %v6724_v9 = vpop.f32.mrb[16].mxu1  ;;  %8269 = vst [vmem:[#allocation173_spill] sm:$0xff] %v6734_v61  ;;  %v6737_v55 = vsel %vm321_vm2, %v816_v11, %v818_v26 }
 0x16d   :  { %8267 = vst [vmem:[#allocation103_spill] sm:$0xff] %v6724_v9  ;;  %1492 = vmatmul.mubr.f32.gmra.mrb[122].mxu1 %v6650_v60  ;;  %v1230_v35 = vpop.f32.mrb[17].mxu1  ;;  %8270 = vst [vmem:[#allocation174_spill] sm:$0xff] %v6737_v55  ;;  %v6742_v9 = vsel %vm430_vm3, %v549_v54, %v551_v24  ;;  %v6753_v11 = vsel %vm321_vm2, %v542_v30, %v544_v51  ;;  %v8276_v24 = vld [vmem:[#allocation105_spill] sm:$0xff] }
 0x16e   :  { %2102 = vmatmul.mubr.f32.gmra.mrb[58].mxu0 %v8268_v32  ;;  %1496 = vmatprep.mubr.f32.mxu1 %v6720_v33  ;;  %8272 = vst [vmem:[#allocation176_spill] sm:$0xff] %v6742_v9  ;;  %v8273_v35 = vld [vmem:[#allocation104_spill] sm:$0xff]  ;;  %v853_v36 = vrot.slane %v8276_v24, 2  ;;  %v856_v24 = vrot.slane %v6239_v10, 2 }
 0x16f   :  { %2106 = vmatprep.mubr.f32.mxu0 %v6727_v1  ;;  %v850_v47 = vrot.slane %v8273_v35, 2  ;;  %8274 = vst [vmem:[#allocation104_spill] sm:$0xff] %v6753_v11  ;;  %v1101_v35 = vld [vmem:[#allocation5 + $0x410] sm:$0xff] }
 0x170   :  { %v6739_v25 = vpop.f32.mrb[18].mxu1  ;;  %v854_v51 = vsel %vm430_vm3, %v851_v41, %v853_v36 }
 0x171   :  { %8271 = vst [vmem:[#allocation175_spill] sm:$0xff] %v6739_v25  ;;  %4023 = vmatmul.mubr.msk.f32.gmra.mrb[124].mxu1 %vm5560_vm1, %v6671_v18  ;;  %v1235_v32 = vpop.f32.mrb[19].mxu1  ;;  %v852_v7 = vsel %vm430_vm3, %v850_v47, %v851_v41  ;;  %v855_v47 = vrot.slane %v6243_v13, 2  ;;  %v8278_v25 = vld [vmem:[#allocation16_spill] sm:$0xff]  ;;  %v858_v13 = vrot.slane %v6258_v48, 2  ;;  %v860_v48 = vrot.slane %v6280_v63, 2 }
 0x172   :  { %2107 = vmatmul.mubr.f32.gmra.mrb[60].mxu0 %v6734_v61  ;;  %1501 = vmatprep.mubr.f32.mxu1 %v6737_v55  ;;  %v1102_v32 = vld [vmem:[#allocation5 + $0x418] sm:$0xff]  ;;  %v1103_v61 = vld [vmem:[#allocation5 + $0x420] sm:$0xff]  ;;  %v863_v63 = vrot.slane %v6293_v43, 2  ;;  %v865_v43 = vrot.slane %v6314_v46, 2 }
 0x173   :  { %2111 = vmatprep.mubr.f32.mxu0 %v6742_v9  ;;  %v1104_v9 = vld [vmem:[#allocation5 + $0x428] sm:$0xff]  ;;  %v6776_v41 = vsel %vm430_vm3, %v855_v47, %v856_v24 }
 0x174   :  { %v6755_v54 = vpop.f32.mrb[20].mxu1  ;;  %v4765_v36 = vpack.c.bf16 %v1104_v9, %v1103_v61  ;;  %v861_v9 = vrot.slane %v6276_v62, 2 }
 0x175   :  { %8275 = vst [vmem:[#allocation177_spill] sm:$0xff] %v6755_v54  ;;  %1502 = vmatmul.mubr.f32.gmra.mrb[126].mxu1 %v6687_v37  ;;  %v1240_v26 = vpop.f32.mrb[21].mxu1  ;;  %v4761_v54 = vpack.c.bf16 %v1102_v32, %v1101_v35  ;;  %v1105_v32 = vld [vmem:[#allocation5 + $0x430] sm:$0xff] }
 0x176   :  { %2112 = vmatmul.mubr.f32.gmra.mrb[62].mxu0 %v6753_v11  ;;  %4057 = vmatprep.mubr.msk.f32.mxu1 %vm5560_vm1, %v6199_v5  ;;  %v8279_v11 = vld [vmem:[#allocation106_spill] sm:$0xff] }
 0x177   :  { %2116 = vmatprep.mubr.f32.mxu0 %v852_v7 }
 0x178   :  { %v6764_v30 = vpop.f32.mrb[22].mxu1 }
 0x179   :  { %8277 = vst [vmem:[#allocation105_spill] sm:$0xff] %v6764_v30  ;;  %1732 = vmatmul.mubr.f32.vlgmr.msra.gmra.mrb[64].mxu1 %v8278_v25  ;;  %v1245_v26 = vpop.f32.mrb[23].mxu1  ;;  %v3112_v30 = vld [vmem:[#allocation7 + $0x8] sm:$0xff] }
 0x17a   :  { %2117 = vmatmul.mubr.f32.gmra.mrb[64].mxu0 %v8279_v11  ;;  %4760 = vmatpush3.bf16.msra.mxu1 %v6246_v42  ;;  %v1106_v26 = vld [vmem:[#allocation5 + $0x438] sm:$0xff]  ;;  %v8281_v11 = vld [vmem:[#allocation107_spill] sm:$0xff]  ;;  %v6788_v42 = vsel %vm430_vm3, %v856_v24, %v858_v13  ;;  %v6798_v24 = vsel %vm430_vm3, %v860_v48, %v861_v9  ;;  %v6809_v48 = vsel %vm430_vm3, %v861_v9, %v863_v63 }
 0x17b   :  { %1736 = vmatprep.mubr.f32.mxu1 %v6212_v8  ;;  %2121 = vmatprep.mubr.f32.mxu0 %v854_v51  ;;  %v4769_v61 = vpack.c.bf16 %v1106_v26, %v1105_v32  ;;  %v1109_v32 = vld [vmem:[#allocation5 + $0x450] sm:$0xff]  ;;  %v1110_v26 = vld [vmem:[#allocation5 + $0x458] sm:$0xff] }
 0x17c   :  { %v6773_v5 = vpop.f32.mrb[24].mxu1  ;;  %4762 = vmatprep.subr.bf16.mxu1 %v4761_v54 }
 0x17d   :  { %8280 = vst [vmem:[#allocation16_spill] sm:$0xff] %v6773_v5  ;;  %1737 = vmatmul.mubr.f32.gmra.mrb[66].mxu1 %v8278_v25  ;;  %v1250_v35 = vpop.f32.mrb[25].mxu1  ;;  %v8283_v5 = vld [vmem:[#allocation108_spill] sm:$0xff] }
 0x17e   :  { %2122 = vmatmul.mubr.f32.gmra.mrb[66].mxu0 %v8281_v11  ;;  %4059 = vmatprep.mubr.msk.f32.mxu1 %vm5560_vm1, %v6227_v40  ;;  %v1107_v35 = vld [vmem:[#allocation5 + $0x440] sm:$0xff]  ;;  %v1108_v11 = vld [vmem:[#allocation5 + $0x448] sm:$0xff] }
 0x17f   :  { %2126 = vmatprep.mubr.f32.mxu0 %v6776_v41  ;;  %4764 = vmatpush3.bf16.msra.mxu1 %v4761_v54  ;;  %v4773_v13 = vpack.c.bf16 %v1108_v11, %v1107_v35  ;;  %v4777_v35 = vpack.c.bf16 %v1110_v26, %v1109_v32  ;;  %v1113_v26 = vld [vmem:[#allocation5 + $0x470] sm:$0xff] }
 0x180   :  { %v6785_v8 = vpop.f32.mrb[26].mxu1  ;;  %4766 = vmatprep.subr.bf16.mxu1 %v4765_v36 }
 0x181   :  { %8282 = vst [vmem:[#allocation106_spill] sm:$0xff] %v6785_v8  ;;  %1742 = vmatmul.mubr.f32.gmra.mrb[68].mxu1 %v852_v7  ;;  %v1255_v47 = vpop.f32.mrb[27].mxu1  ;;  %v8287_v8 = vld [vmem:[#allocation111_spill] sm:$0xff] }
 0x182   :  { %2127 = vmatmul.mubr.f32.gmra.mrb[68].mxu0 %v8283_v5  ;;  %1746 = vmatprep.mubr.f32.mxu1 %v6239_v10  ;;  %v8285_v47 = vld [vmem:[#allocation109_spill] sm:$0xff] }
 0x183   :  { %2131 = vmatprep.mubr.f32.mxu0 %v6788_v42  ;;  %4768 = vmatpush3.bf16.msra.mxu1 %v4765_v36 }
 0x184   :  { %v6795_v54 = vpop.f32.mrb[28].mxu1  ;;  %4770 = vmatprep.subr.bf16.mxu1 %v4769_v61 }
 0x185   :  { %8284 = vst [vmem:[#allocation107_spill] sm:$0xff] %v6795_v54  ;;  %1747 = vmatmul.mubr.f32.gmra.mrb[70].mxu1 %v854_v51  ;;  %v1260_v7 = vpop.f32.mrb[29].mxu1  ;;  %v866_v51 = vrot.slane %v6310_v20, 2  ;;  %v1112_v54 = vld [vmem:[#allocation5 + $0x468] sm:$0xff] }
 0x186   :  { %2132 = vmatmul.mubr.f32.gmra.mrb[70].mxu0 %v8285_v47  ;;  %4061 = vmatprep.mubr.msk.f32.mxu1 %vm5560_vm1, %v6260_v58  ;;  %v1111_v7 = vld [vmem:[#allocation5 + $0x460] sm:$0xff] }
 0x187   :  { %2136 = vmatprep.mubr.f32.mxu0 %v6798_v24  ;;  %4772 = vmatpush3.bf16.msra.mxu1 %v4769_v61  ;;  %v6820_v46 = vsel %vm430_vm3, %v865_v43, %v866_v51  ;;  %v868_v61 = vrot.slane %v6327_v52, 2  ;;  %v4781_v63 = vpack.c.bf16 %v1112_v54, %v1111_v7  ;;  %v870_v54 = vrot.slane %v6348_v59, 2 }
 0x188   :  { %v6806_v36 = vpop.f32.mrb[30].mxu1  ;;  %4774 = vmatprep.subr.bf16.mxu1 %v4773_v13  ;;  %v871_v43 = vrot.slane %v6344_v17, 2 }
 0x189   :  { %8286 = vst [vmem:[#allocation108_spill] sm:$0xff] %v6806_v36  ;;  %1752 = vmatmul.mubr.f32.gmra.mrb[72].mxu1 %v6776_v41  ;;  %v1265_v11 = vpop.f32.mrb[31].mxu1  ;;  %v8289_v36 = vld [vmem:[#allocation112_spill] sm:$0xff]  ;;  %v6832_v52 = vsel %vm430_vm3, %v866_v51, %v868_v61 }
 0x18a   :  { %2137 = vmatmul.mubr.f32.gmra.mrb[72].mxu0 %v8287_v8  ;;  %1756 = vmatprep.mubr.f32.mxu1 %v6276_v62  ;;  %v1114_v11 = vld [vmem:[#allocation5 + $0x478] sm:$0xff]  ;;  %v6843_v59 = vsel %vm430_vm3, %v870_v54, %v871_v43 }
 0x18b   :  { %2141 = vmatprep.mubr.f32.mxu0 %v6809_v48  ;;  %4776 = vmatpush3.bf16.msra.mxu1 %v4773_v13  ;;  %v4785_v7 = vpack.c.bf16 %v1114_v11, %v1113_v26  ;;  %v8293_v11 = vld [vmem:[#allocation114_spill] sm:$0xff] }
 0x18c   :  { %v6817_v9 = vpop.f32.mrb[32].mxu1  ;;  %4778 = vmatprep.subr.bf16.mxu1 %v4777_v35 }
 0x18d   :  { %8288 = vst [vmem:[#allocation109_spill] sm:$0xff] %v6817_v9  ;;  %1757 = vmatmul.mubr.f32.gmra.mrb[74].mxu1 %v6788_v42  ;;  %v1270_v32 = vpop.f32.mrb[33].mxu1  ;;  %v3111_v9 = vld [vmem:[#allocation7] sm:$0xff] }
 0x18e   :  { %2142 = vmatmul.mubr.f32.gmra.mrb[74].mxu0 %v8289_v36  ;;  %4063 = vmatprep.mubr.msk.f32.mxu1 %vm5560_vm1, %v6295_v56  ;;  %v8291_v56 = vld [vmem:[#allocation113_spill] sm:$0xff]  ;;  %v6846_v61 = vpack.c.bf16 %v3112_v30, %v3111_v9  ;;  %v876_v30 = vrot.slane %v6378_v39, 2 }
 0x18f   :  { %2146 = vmatprep.mubr.f32.mxu0 %v6820_v46  ;;  %4780 = vmatpush3.bf16.msra.mxu1 %v4777_v35  ;;  %v873_v35 = vrot.slane %v6361_v34, 2  ;;  %v875_v34 = vrot.slane %v6382_v0, 2  ;;  %v878_v0 = vrot.slane %v6395_v21, 2  ;;  %v881_v21 = vrot.slane %v6412_v2, 2 }
 0x190   :  { %v6829_v13 = vpop.f32.mrb[34].mxu1  ;;  %4782 = vmatprep.subr.bf16.mxu1 %v4781_v63 }
 0x191   :  { %8290 = vst [vmem:[#allocation111_spill] sm:$0xff] %v6829_v13  ;;  %1762 = vmatmul.mubr.f32.gmra.mrb[76].mxu1 %v6798_v24  ;;  %v1275_v32 = vpop.f32.mrb[35].mxu1  ;;  %v6857_v54 = vsel %vm430_vm3, %v871_v43, %v873_v35  ;;  %v6869_v43 = vsel %vm430_vm3, %v875_v34, %v876_v30  ;;  %v880_v34 = vrot.slane %v6416_v28, 2  ;;  %v8307_v13 = vld [vmem:[#allocation133_spill] sm:$0xff] }
 0x192   :  { %2147 = vmatmul.mubr.f32.gmra.mrb[76].mxu0 %v8291_v56  ;;  %1766 = vmatprep.mubr.f32.mxu1 %v6310_v20 }
 0x193   :  { %2151 = vmatprep.mubr.f32.mxu0 %v6832_v52  ;;  %4784 = vmatpush3.bf16.msra.mxu1 %v4781_v63 }
 0x194   :  { %v6840_v51 = vpop.f32.mrb[36].mxu1  ;;  %4786 = vmatprep.subr.bf16.mxu1 %v4785_v7 }
 0x195   :  { %8292 = vst [vmem:[#allocation112_spill] sm:$0xff] %v6840_v51  ;;  %1767 = vmatmul.mubr.f32.gmra.mrb[78].mxu1 %v6809_v48  ;;  %v1280_v26 = vpop.f32.mrb[37].mxu1  ;;  %v8305_v51 = vld [vmem:[#allocation129_spill] sm:$0xff] }
 0x196   :  { %2152 = vmatmul.mubr.f32.gmra.mrb[78].mxu0 %v8293_v11  ;;  %4065 = vmatprep.mubr.msk.f32.mxu1 %vm5560_vm1, %v6329_v29  ;;  %v6881_v26 = vsel %vm430_vm3, %v876_v30, %v878_v0  ;;  %v883_v30 = vrot.slane %v6429_v6, 2  ;;  %v886_v6 = vrot.slane %v6445_v27, 2 }
 0x197   :  { %2156 = vmatprep.mubr.f32.mxu0 %v6843_v59  ;;  %4788 = vmatpush3.bf16.msra.mxu1 %v4785_v7 }
 0x198   :  { %v6854_v63 = vpop.f32.mrb[38].mxu1  ;;  %4790 = vmatprep.subr.bf16.mxu1 %v6846_v61 }
 0x199   :  { %8294 = vst [vmem:[#allocation113_spill] sm:$0xff] %v6854_v63  ;;  %1772 = vmatmul.mubr.f32.gmra.mrb[80].mxu1 %v6820_v46  ;;  %v1285_v9 = vpop.f32.mrb[39].mxu1 }
 0x19a   :  { %2157 = vmatmul.mubr.f32.gmra.mrb[80].mxu0 %v6373_v19  ;;  %1776 = vmatprep.mubr.f32.mxu1 %v6344_v17 }
 0x19b   :  { %2161 = vmatprep.mubr.f32.mxu0 %v6857_v54 }
 0x19c   :  { %v6866_v7 = vpop.f32.mrb[40].mxu1 }
 0x19d   :  { %8295 = vst [vmem:[#allocation114_spill] sm:$0xff] %v6866_v7  ;;  %1777 = vmatmul.mubr.f32.gmra.mrb[82].mxu1 %v6832_v52  ;;  %v1290_v32 = vpop.f32.mrb[41].mxu1  ;;  %v8301_v7 = vld [vmem:[#allocation124_spill] sm:$0xff] }
 0x19e   :  { %2162 = vmatmul.mubr.f32.gmra.mrb[82].mxu0 %v6390_v38  ;;  %4067 = vmatprep.mubr.msk.f32.mxu1 %vm5560_vm1, %v6363_v3 }
 0x19f   :  { %2166 = vmatprep.mubr.f32.mxu0 %v6869_v43 }
 0x1a0   :  { %v6878_v35 = vpop.f32.mrb[42].mxu1 }
 0x1a1   :  { %8296 = vst [vmem:[#allocation178_spill] sm:$0xff] %v6878_v35  ;;  %1782 = vmatmul.mubr.f32.gmra.mrb[84].mxu1 %v6843_v59  ;;  %v1295_v9 = vpop.f32.mrb[43].mxu1  ;;  %v6892_v35 = vsel %vm430_vm3, %v880_v34, %v881_v21  ;;  %v885_v34 = vrot.slane %v6449_v44, 2 }
 0x1a2   :  { %2167 = vmatmul.mubr.f32.gmra.mrb[84].mxu0 %v6407_v12  ;;  %1786 = vmatprep.mubr.f32.mxu1 %v6378_v39  ;;  %v6904_v9 = vsel %vm430_vm3, %v881_v21, %v883_v30  ;;  %v8300_v21 = vld [vmem:[#allocation125_spill] sm:$0xff]  ;;  %v3120_v12 = vld [vmem:[#allocation7 + $0x48] sm:$0xff] }
 0x1a3   :  { %2171 = vmatprep.mubr.f32.mxu0 %v6881_v26  ;;  %v888_v30 = vrot.slane %v8300_v21, 2  ;;  %v891_v21 = vrot.slane %v6478_v57, 2 }
 0x1a4   :  { %v6889_v32 = vpop.f32.mrb[44].mxu1 }
 0x1a5   :  { %8297 = vst [vmem:[#allocation179_spill] sm:$0xff] %v6889_v32  ;;  %1787 = vmatmul.mubr.f32.gmra.mrb[86].mxu1 %v6857_v54  ;;  %v1300_v28 = vpop.f32.mrb[45].mxu1 }
 0x1a6   :  { %2172 = vmatmul.mubr.f32.gmra.mrb[86].mxu0 %v6424_v53  ;;  %4069 = vmatprep.mubr.msk.f32.mxu1 %vm5560_vm1, %v6397_v50  ;;  %v8343_v53 = vld [vmem:[#allocation167_spill] sm:$0xff] }
 0x1a7   :  { %2176 = vmatprep.mubr.f32.mxu0 %v6892_v35 }
 0x1a8   :  { %v6901_v0 = vpop.f32.mrb[46].mxu1 }
 0x1a9   :  { %8298 = vst [vmem:[#allocation180_spill] sm:$0xff] %v6901_v0  ;;  %1792 = vmatmul.mubr.f32.gmra.mrb[88].mxu1 %v6869_v43  ;;  %v1305_v28 = vpop.f32.mrb[47].mxu1  ;;  %v6915_v0 = vsel %vm430_vm3, %v885_v34, %v886_v6  ;;  %v890_v34 = vrot.slane %v6482_v22, 2 }
 0x1aa   :  { %2177 = vmatmul.mubr.f32.gmra.mrb[88].mxu0 %v6440_v49  ;;  %1796 = vmatprep.mubr.f32.mxu1 %v6412_v2  ;;  %v8320_v2 = vld [vmem:[#allocation136_spill] sm:$0xff] }
 0x1ab   :  { %2181 = vmatprep.mubr.f32.mxu0 %v6904_v9 }
 0x1ac   :  { %v6912_v32 = vpop.f32.mrb[48].mxu1 }
 0x1ad   :  { %8299 = vst [vmem:[#allocation181_spill] sm:$0xff] %v6912_v32  ;;  %1797 = vmatmul.mubr.f32.gmra.mrb[90].mxu1 %v6881_v26  ;;  %v1310_v44 = vpop.f32.mrb[49].mxu1  ;;  %v6927_v32 = vsel %vm430_vm3, %v886_v6, %v888_v30  ;;  %v8304_v6 = vld [vmem:[#allocation130_spill] sm:$0xff] }
 0x1ae   :  { %2182 = vmatmul.mubr.f32.gmra.mrb[90].mxu0 %v8301_v7  ;;  %4071 = vmatprep.mubr.msk.f32.mxu1 %vm5560_vm1, %v6431_v4  ;;  %v893_v30 = vrot.slane %v8304_v6, 2  ;;  %v896_v6 = vrot.slane %v8307_v13, 2  ;;  %v8312_v4 = vld [vmem:[#allocation131_spill] sm:$0xff] }
 0x1af   :  { %2186 = vmatprep.mubr.f32.mxu0 %v6915_v0  ;;  %v8324_v7 = vld [vmem:[#allocation143_spill] sm:$0xff] }
 0x1b0   :  { %v6924_v28 = vpop.f32.mrb[50].mxu1 }
 0x1b1   :  { %8302 = vst [vmem:[#allocation125_spill] sm:$0xff] %v6924_v28  ;;  %1802 = vmatmul.mubr.f32.gmra.mrb[92].mxu1 %v6892_v35  ;;  %v1315_v44 = vpop.f32.mrb[51].mxu1  ;;  %v6938_v28 = vsel %vm430_vm3, %v890_v34, %v891_v21  ;;  %v895_v34 = vrot.slane %v6514_v23, 2 }
 0x1b2   :  { %2187 = vmatmul.mubr.f32.gmra.mrb[92].mxu0 %v6473_v31  ;;  %1806 = vmatprep.mubr.f32.mxu1 %v6445_v27  ;;  %v8308_v27 = vld [vmem:[#allocation132_spill] sm:$0xff]  ;;  %v8316_v31 = vld [vmem:[#allocation137_spill] sm:$0xff] }
 0x1b3   :  { %2191 = vmatprep.mubr.f32.mxu0 %v6927_v32 }
 0x1b4   :  { %v6935_v63 = vpop.f32.mrb[52].mxu1 }
 0x1b5   :  { %8303 = vst [vmem:[#allocation182_spill] sm:$0xff] %v6935_v63  ;;  %1807 = vmatmul.mubr.f32.gmra.mrb[94].mxu1 %v6904_v9  ;;  %v1320_v22 = vpop.f32.mrb[53].mxu1  ;;  %v6950_v63 = vsel %vm430_vm3, %v891_v21, %v893_v30  ;;  %v8310_v21 = vld [vmem:[#allocation135_spill] sm:$0xff] }
 0x1b6   :  { %2192 = vmatmul.mubr.f32.gmra.mrb[94].mxu0 %v8305_v51  ;;  %4073 = vmatprep.mubr.msk.f32.mxu1 %vm5560_vm1, %v6464_v14  ;;  %v898_v30 = vrot.slane %v8310_v21, 2  ;;  %v8311_v51 = vld [vmem:[#allocation134_spill] sm:$0xff] }
 0x1b7   :  { %2196 = vmatprep.mubr.f32.mxu0 %v6938_v28 }
 0x1b8   :  { %v6947_v44 = vpop.f32.mrb[54].mxu1 }
 0x1b9   :  { %8306 = vst [vmem:[#allocation130_spill] sm:$0xff] %v6947_v44  ;;  %1812 = vmatmul.mubr.f32.gmra.mrb[96].mxu1 %v6915_v0  ;;  %v1325_v22 = vpop.f32.mrb[55].mxu1  ;;  %v6961_v44 = vsel %vm430_vm3, %v895_v34, %v896_v6  ;;  %v8314_v34 = vld [vmem:[#allocation139_spill] sm:$0xff] }
 0x1ba   :  { %2197 = vmatmul.mubr.f32.gmra.mrb[96].mxu0 %v8308_v27  ;;  %1816 = vmatprep.mubr.f32.mxu1 %v6478_v57  ;;  %v900_v57 = vrot.slane %v8314_v34, 2  ;;  %v8315_v27 = vld [vmem:[#allocation138_spill] sm:$0xff] }
 0x1bb   :  { %2201 = vmatprep.mubr.f32.mxu0 %v6950_v63  ;;  %v901_v21 = vrot.slane %v8315_v27, 2 }
 0x1bc   :  { %v6958_v14 = vpop.f32.mrb[56].mxu1 }
 0x1bd   :  { %8309 = vst [vmem:[#allocation183_spill] sm:$0xff] %v6958_v14  ;;  %1817 = vmatmul.mubr.f32.gmra.mrb[98].mxu1 %v6927_v32  ;;  %v1330_v23 = vpop.f32.mrb[57].mxu1  ;;  %v6973_v14 = vsel %vm430_vm3, %v896_v6, %v898_v30  ;;  %v8318_v6 = vld [vmem:[#allocation141_spill] sm:$0xff] }
 0x1be   :  { %2202 = vmatmul.mubr.f32.gmra.mrb[98].mxu0 %v8311_v51  ;;  %4075 = vmatprep.mubr.msk.f32.mxu1 %vm5560_vm1, %v8312_v4  ;;  %v903_v30 = vrot.slane %v8318_v6, 2  ;;  %v8319_v51 = vld [vmem:[#allocation140_spill] sm:$0xff] }
 0x1bf   :  { %2206 = vmatprep.mubr.f32.mxu0 %v6961_v44 }
 0x1c0   :  { %v6970_v22 = vpop.f32.mrb[58].mxu1 }
 0x1c1   :  { %8313 = vst [vmem:[#allocation135_spill] sm:$0xff] %v6970_v22  ;;  %1822 = vmatmul.mubr.f32.gmra.mrb[100].mxu1 %v6938_v28  ;;  %v1335_v23 = vpop.f32.mrb[59].mxu1  ;;  %v6984_v22 = vsel %vm430_vm3, %v900_v57, %v901_v21  ;;  %v8322_v57 = vld [vmem:[#allocation146_spill] sm:$0xff] }
 0x1c2   :  { %2207 = vmatmul.mubr.f32.gmra.mrb[100].mxu0 %v8316_v31  ;;  %1826 = vmatprep.mubr.f32.mxu1 %v8307_v13  ;;  %v905_v13 = vrot.slane %v8322_v57, 2  ;;  %v8323_v31 = vld [vmem:[#allocation145_spill] sm:$0xff] }
 0x1c3   :  { %2211 = vmatprep.mubr.f32.mxu0 %v6973_v14  ;;  %v906_v6 = vrot.slane %v8323_v31, 2 }
 0x1c4   :  { %v6981_v4 = vpop.f32.mrb[60].mxu1 }
 0x1c5   :  { %8317 = vst [vmem:[#allocation139_spill] sm:$0xff] %v6981_v4  ;;  %1827 = vmatmul.mubr.f32.gmra.mrb[102].mxu1 %v6950_v63  ;;  %v1340_v34 = vpop.f32.mrb[61].mxu1  ;;  %v6996_v4 = vsel %vm430_vm3, %v901_v21, %v903_v30  ;;  %v8326_v21 = vld [vmem:[#allocation147_spill] sm:$0xff]  ;;  %v8327_v30 = vld [vmem:[#allocation142_spill] sm:$0xff] }
 0x1c6   :  { %2212 = vmatmul.mubr.f32.gmra.mrb[102].mxu0 %v8319_v51  ;;  %4077 = vmatprep.mubr.msk.f32.mxu1 %vm5560_vm1, %v8320_v2  ;;  %v7005_v2 = vsel %vm430_vm3, %v905_v13, %v906_v6 }
 0x1c7   :  { %2216 = vmatprep.mubr.f32.mxu0 %v6984_v22 }
 0x1c8   :  { %v6993_v23 = vpop.f32.mrb[62].mxu1 }
 0x1c9   :  { %8321 = vst [vmem:[#allocation141_spill] sm:$0xff] %v6993_v23  ;;  %1832 = vmatmul.mubr.f32.gmra.mrb[104].mxu1 %v6961_v44  ;;  %v1345_v34 = vpop.f32.mrb[63].mxu1  ;;  %v8325_v23 = vld [vmem:[#allocation149_spill] sm:$0xff] }
 0x1ca   :  { %2217 = vmatmul.mubr.f32.gmra.mrb[104].mxu0 %v8324_v7  ;;  %1836 = vmatprep.mubr.f32.mxu1 %v8315_v27  ;;  %v908_v51 = vrot.slane %v8325_v23, 2  ;;  %v8328_v34 = vld [vmem:[#allocation154_spill] sm:$0xff]  ;;  %v8329_v7 = vld [vmem:[#allocation153_spill] sm:$0xff]  ;;  %v8330_v23 = vld [vmem:[#allocation151_spill] sm:$0xff] }
 0x1cb   :  { %2221 = vmatprep.mubr.f32.mxu0 %v6996_v4  ;;  %v910_v27 = vrot.slane %v8328_v34, 2  ;;  %v911_v13 = vrot.slane %v8329_v7, 2 }
 0x1cc   :  { %v7015_v57 = vsel %vm430_vm3, %v906_v6, %v908_v51  ;;  %v8332_v51 = vld [vmem:[#allocation155_spill] sm:$0xff]  ;;  %v8333_v6 = vld [vmem:[#allocation150_spill] sm:$0xff] }
 0x1cd   :  { %1837 = vmatmul.mubr.f32.gmra.mrb[106].mxu1 %v6973_v14 }
 0x1ce   :  { %2222 = vmatmul.mubr.f32.gmra.mrb[106].mxu0 %v8326_v21  ;;  %4079 = vmatprep.mubr.msk.f32.mxu1 %vm5560_vm1, %v8327_v30  ;;  %v7024_v21 = vsel %vm430_vm3, %v910_v27, %v911_v13  ;;  %v8331_v30 = vld [vmem:[#allocation157_spill] sm:$0xff]  ;;  %v916_v27 = vrot.slane %v6650_v60, 2 }
 0x1cf   :  { %2226 = vmatprep.mubr.f32.mxu0 %v7005_v2  ;;  %v913_v50 = vrot.slane %v8331_v30, 2  ;;  %v8335_v30 = vld [vmem:[#allocation159_spill] sm:$0xff] }
 0x1d1   :  { %1842 = vmatmul.mubr.f32.gmra.mrb[108].mxu1 %v6984_v22  ;;  %v7034_v34 = vsel %vm430_vm3, %v911_v13, %v913_v50  ;;  %v8337_v50 = vld [vmem:[#allocation163_spill] sm:$0xff]  ;;  %v7051_v13 = vld [vmem:[#allocation2 + $0x1f0] sm:$0xff] }
 0x1d2   :  { %2227 = vmatmul.mubr.f32.gmra.mrb[108].mxu0 %v8330_v23  ;;  %1846 = vmatprep.mubr.f32.mxu1 %v8323_v31  ;;  %v8334_v31 = vld [vmem:[#allocation162_spill] sm:$0xff]  ;;  %8339 = vst [vmem:[#allocation146_spill] sm:$0xff] %v7051_v13 }
 0x1d3   :  { %2231 = vmatprep.mubr.f32.mxu0 %v7015_v57  ;;  %v915_v23 = vrot.slane %v8334_v31, 2  ;;  %v8338_v31 = vld [vmem:[#allocation158_spill] sm:$0xff] }
 0x1d5   :  { %1847 = vmatmul.mubr.f32.gmra.mrb[110].mxu1 %v6996_v4 }
 0x1d6   :  { %2232 = vmatmul.mubr.f32.gmra.mrb[110].mxu0 %v8332_v51  ;;  %4081 = vmatprep.mubr.msk.f32.mxu1 %vm5560_vm1, %v8333_v6  ;;  %v7043_v51 = vsel %vm430_vm3, %v915_v23, %v916_v27  ;;  %v8336_v6 = vld [vmem:[#allocation165_spill] sm:$0xff]  ;;  %v8341_v23 = vld [vmem:[#allocation170_spill] sm:$0xff] }
 0x1d7   :  { %2236 = vmatprep.mubr.f32.mxu0 %v7024_v21  ;;  %v918_v49 = vrot.slane %v8336_v6, 2  ;;  %v920_v39 = vrot.slane %v8341_v23, 2  ;;  %v921_v6 = vrot.slane %v6687_v37, 2 }
 0x1d9   :  { %1852 = vmatmul.mubr.f32.gmra.mrb[112].mxu1 %v7005_v2 }
 0x1da   :  { %2237 = vmatmul.mubr.f32.gmra.mrb[112].mxu0 %v8335_v30  ;;  %1856 = vmatprep.mubr.f32.mxu1 %v8329_v7  ;;  %v7053_v30 = vld [vmem:[#allocation2 + $0x1f8] sm:$0xff]  ;;  %v7057_v7 = vsel %vm430_vm3, %v916_v27, %v918_v49  ;;  %v7070_v49 = vsel %vm430_vm3, %v920_v39, %v921_v6  ;;  %v923_v27 = vrot.slane %v6708_v16, 2 }
 0x1db   :  { %2241 = vmatprep.mubr.f32.mxu0 %v7034_v34  ;;  %8340 = vst [vmem:[#allocation149_spill] sm:$0xff] %v7053_v30 }
 0x1dc   :  { %v7086_v39 = vsel %vm430_vm3, %v921_v6, %v923_v27 }
 0x1dd   :  { %1857 = vmatmul.mubr.f32.gmra.mrb[114].mxu1 %v7015_v57 }
 0x1de   :  { %2242 = vmatmul.mubr.f32.gmra.mrb[114].mxu0 %v8337_v50  ;;  %4083 = vmatprep.mubr.msk.f32.mxu1 %vm5560_vm1, %v8338_v31  ;;  %v7063_v50 = vrot.slane %v7051_v13, 7  ;;  %v633_v31 = vrot.slane %v7053_v30, 7  ;;  %v8345_v13 = vld [vmem:[#allocation171_spill] sm:$0xff] }
 0x1df   :  { %2246 = vmatprep.mubr.f32.mxu0 %v7043_v51 }
 0x1e0   :  { %8342 = vst [vmem:[#allocation154_spill] sm:$0xff] %v7063_v50  ;;  %v7076_v23 = vsel %vm161_vm0, %v7063_v50, %v633_v31  ;;  %v698_v30 = vsel %vm161_vm0, 0.0, %v7063_v50 }
 0x1e1   :  { %1862 = vmatmul.mubr.f32.gmra.mrb[116].mxu1 %v7024_v21  ;;  %8344 = vst [vmem:[#allocation157_spill] sm:$0xff] %v7076_v23  ;;  %v964_v16 = vrot.slane %v698_v30, 2 }
 0x1e2   :  { %2247 = vmatmul.mubr.f32.gmra.mrb[116].mxu0 %v8343_v53  ;;  %1866 = vmatprep.mubr.f32.mxu1 %v6650_v60  ;;  %v965_v60 = vrot.slane %v7076_v23, 2  ;;  %v714_v53 = vsel %vm161_vm0, %v633_v31, 0.0 }
 0x1e3   :  { %2251 = vmatprep.mubr.f32.mxu0 %v7057_v7  ;;  %v967_v6 = vrot.slane %v714_v53, 2 }
 0x1e4   :  { %v7096_v3 = vsel %vm430_vm3, %v964_v16, %v965_v60 }
 0x1e5   :  { %1867 = vmatmul.mubr.f32.gmra.mrb[118].mxu1 %v7034_v34  ;;  %v7108_v27 = vsel %vm430_vm3, %v965_v60, %v967_v6  ;;  %v8349_v60 = vld [vmem:[#allocation20_spill] sm:$0xff] }
 0x1e6   :  { %2252 = vmatmul.mubr.f32.gmra.mrb[118].mxu0 %v8345_v13  ;;  %4085 = vmatprep.mubr.msk.f32.mxu1 %vm5560_vm1, %v6671_v18  ;;  %v957_v13 = vrot.slane %v698_v30, 1  ;;  %v958_v18 = vrot.slane %v7076_v23, 1  ;;  %v960_v30 = vrot.slane %v714_v53, 1  ;;  %v8348_v53 = vld [vmem:[#allocation22_spill] sm:$0xff] }
 0x1e7   :  { %2256 = vmatprep.mubr.f32.mxu0 %v7070_v49 }
 0x1e8   :  { %v7105_v31 = vsel %vm321_vm2, %v957_v13, %v958_v18  ;;  %v7115_v16 = vsel %vm321_vm2, %v958_v18, %v960_v30  ;;  %v3114_v13 = vld [vmem:[#allocation7 + $0x18] sm:$0xff]  ;;  %v8352_v18 = vld [vmem:[#allocation23_spill] sm:$0xff]  ;;  %v8353_v30 = vld [vmem:[#allocation28_spill] sm:$0xff] }
 0x1e9   :  { %1872 = vmatmul.mubr.f32.gmra.mrb[120].mxu1 %v7043_v51  ;;  %8346 = vst [vmem:[#allocation162_spill] sm:$0xff] %v7105_v31  ;;  %8347 = vst [vmem:[#allocation165_spill] sm:$0xff] %v7115_v16 }
 0x1ea   :  { %2257 = vmatmul.mubr.f32.gmra.mrb[120].mxu0 %v6720_v33  ;;  %1876 = vmatprep.mubr.f32.mxu1 %v6687_v37  ;;  %v8350_v37 = vld [vmem:[#allocation25_spill] sm:$0xff]  ;;  %v8357_v33 = vld [vmem:[#allocation26_spill] sm:$0xff] }
 0x1eb   :  { %2261 = vmatprep.mubr.f32.mxu0 %v7086_v39 }
 0x1ed   :  { %1877 = vmatmul.mubr.f32.gmra.mrb[122].mxu1 %v7057_v7 }
 0x1ee   :  { %2262 = vmatmul.mubr.f32.gmra.mrb[122].mxu0 %v6737_v55  ;;  %4087 = vmatprep.mubr.msk.f32.mxu1 %vm5560_vm1, %v7063_v50  ;;  %v3113_v50 = vld [vmem:[#allocation7 + $0x10] sm:$0xff]  ;;  %v8351_v55 = vld [vmem:[#allocation17_spill] sm:$0xff] }
 0x1ef   :  { %2266 = vmatprep.mubr.f32.mxu0 %v7096_v3  ;;  %v4793_v6 = vpack.c.bf16 %v3114_v13, %v3113_v50  ;;  %v3118_v50 = vld [vmem:[#allocation7 + $0x38] sm:$0xff]  ;;  %v8355_v13 = vld [vmem:[#allocation18_spill] sm:$0xff] }
 0x1f1   :  { %1882 = vmatmul.mubr.f32.gmra.mrb[124].mxu1 %v7070_v49 }
 0x1f2   :  { %2267 = vmatmul.mubr.f32.gmra.mrb[124].mxu0 %v7105_v31  ;;  %1886 = vmatprep.mubr.f32.mxu1 %v7076_v23  ;;  %v3115_v31 = vld [vmem:[#allocation7 + $0x20] sm:$0xff]  ;;  %v3116_v23 = vld [vmem:[#allocation7 + $0x28] sm:$0xff] }
 0x1f3   :  { %2271 = vmatprep.mubr.f32.mxu0 %v7108_v27 }
 0x1f5   :  { %1887 = vmatmul.mubr.f32.gmra.mrb[126].mxu1 %v7086_v39 }
 0x1f6   :  { %2272 = vmatmul.mubr.f32.gmra.mrb[126].mxu0 %v7115_v16  ;;  %4341 = vmatprep.mubr.f32.mxu1 %v8348_v53  ;;  %v4797_v16 = vpack.c.bf16 %v3116_v23, %v3115_v31  ;;  %v8354_v53 = vld [vmem:[#allocation31_spill] sm:$0xff]  ;;  %v8360_v23 = vld [vmem:[#allocation40_spill] sm:$0xff]  ;;  %v8361_v31 = vld [vmem:[#allocation29_spill] sm:$0xff] }
 0x1f7   :  { %2341 = vmatprep.mubr.f32.mxu0 %v8349_v60  ;;  %v3117_v60 = vld [vmem:[#allocation7 + $0x30] sm:$0xff] }
 0x1f9   :  { %4342 = vmatmul.mubr.f32.vlgmr.msra.gmra.mrb[128].mxu1 %v8350_v37  ;;  %v8356_v37 = vld [vmem:[#allocation34_spill] sm:$0xff] }
 0x1fa   :  { %4089 = vmatmul.mubr.msk.f32.vlgmr.msra.gmra.mrb[0].mxu0 %vm5560_vm1, %v8351_v55  ;;  %4792 = vmatpush3.bf16.msra.mxu1 %v6846_v61  ;;  %v4801_v55 = vpack.c.bf16 %v3118_v50, %v3117_v60  ;;  %v8358_v61 = vld [vmem:[#allocation37_spill] sm:$0xff]  ;;  %v8364_v50 = vld [vmem:[#allocation46_spill] sm:$0xff] }
 0x1fb   :  { %2346 = vmatprep.mubr.f32.mxu0 %v8352_v18  ;;  %4344 = vmatprep.mubr.f32.mxu1 %v8353_v30  ;;  %v3119_v18 = vld [vmem:[#allocation7 + $0x40] sm:$0xff]  ;;  %v8359_v30 = vld [vmem:[#allocation19_spill] sm:$0xff]  ;;  %v8363_v60 = vld [vmem:[#allocation21_spill] sm:$0xff] }
 0x1fc   :  { %4794 = vmatprep.subr.bf16.mxu1 %v4793_v6 }
 0x1fd   :  { %4345 = vmatmul.mubr.f32.gmra.mrb[130].mxu1 %v8354_v53  ;;  %v4805_v53 = vpack.c.bf16 %v3120_v12, %v3119_v18  ;;  %v8368_v12 = vld [vmem:[#allocation52_spill] sm:$0xff]  ;;  %v8369_v18 = vld [vmem:[#allocation35_spill] sm:$0xff] }
 0x1fe   :  { %2347 = vmatmul.mubr.f32.gmra.mrb[2].mxu0 %v8355_v13  ;;  %4347 = vmatprep.mubr.f32.mxu1 %v8356_v37  ;;  %v8362_v13 = vld [vmem:[#allocation43_spill] sm:$0xff]  ;;  %v8365_v37 = vld [vmem:[#allocation32_spill] sm:$0xff] }
 0x1ff   :  { %2351 = vmatprep.mubr.f32.mxu0 %v8357_v33  ;;  %4796 = vmatpush3.bf16.msra.mxu1 %v4793_v6  ;;  %v3121_v33 = vld [vmem:[#allocation7 + $0x50] sm:$0xff]  ;;  %v3122_v6 = vld [vmem:[#allocation7 + $0x58] sm:$0xff] }
 0x200   :  { %4798 = vmatprep.subr.bf16.mxu1 %v4797_v16 }
 0x201   :  { %4348 = vmatmul.mubr.f32.gmra.mrb[132].mxu1 %v8358_v61  ;;  %v4809_v61 = vpack.c.bf16 %v3122_v6, %v3121_v33  ;;  %v8371_v33 = vld [vmem:[#allocation27_spill] sm:$0xff]  ;;  %v8372_v6 = vld [vmem:[#allocation58_spill] sm:$0xff] }
 0x202   :  { %4091 = vmatmul.mubr.msk.f32.gmra.mrb[4].mxu0 %vm5560_vm1, %v8359_v30  ;;  %4350 = vmatprep.mubr.f32.mxu1 %v8360_v23  ;;  %v8366_v30 = vld [vmem:[#allocation49_spill] sm:$0xff]  ;;  %v3123_v23 = vld [vmem:[#allocation7 + $0x60] sm:$0xff] }
 0x203   :  { %2356 = vmatprep.mubr.f32.mxu0 %v8361_v31  ;;  %4800 = vmatpush3.bf16.msra.mxu1 %v4797_v16  ;;  %v3124_v31 = vld [vmem:[#allocation7 + $0x68] sm:$0xff]  ;;  %v8367_v16 = vld [vmem:[#allocation24_spill] sm:$0xff] }
 0x204   :  { %4802 = vmatprep.subr.bf16.mxu1 %v4801_v55 }
 0x205   :  { %4351 = vmatmul.mubr.f32.gmra.mrb[134].mxu1 %v8362_v13  ;;  %v4813_v13 = vpack.c.bf16 %v3124_v31, %v3123_v23  ;;  %v8377_v23 = vld [vmem:[#allocation41_spill] sm:$0xff]  ;;  %v8378_v31 = vld [vmem:[#allocation67_spill] sm:$0xff] }
 0x206   :  { %2357 = vmatmul.mubr.f32.gmra.mrb[6].mxu0 %v8363_v60  ;;  %4353 = vmatprep.mubr.f32.mxu1 %v8364_v50  ;;  %v8370_v60 = vld [vmem:[#allocation55_spill] sm:$0xff]  ;;  %v3126_v50 = vld [vmem:[#allocation7 + $0x78] sm:$0xff] }
 0x207   :  { %2361 = vmatprep.mubr.f32.mxu0 %v8365_v37  ;;  %4804 = vmatpush3.bf16.msra.mxu1 %v4801_v55  ;;  %v3125_v55 = vld [vmem:[#allocation7 + $0x70] sm:$0xff]  ;;  %v8373_v37 = vld [vmem:[#allocation38_spill] sm:$0xff] }
 0x208   :  { %4806 = vmatprep.subr.bf16.mxu1 %v4805_v53 }
 0x209   :  { %4354 = vmatmul.mubr.f32.gmra.mrb[136].mxu1 %v8366_v30  ;;  %v4817_v30 = vpack.c.bf16 %v3126_v50, %v3125_v55  ;;  %v8382_v55 = vld [vmem:[#allocation73_spill] sm:$0xff]  ;;  %v8383_v50 = vld [vmem:[#allocation36_spill] sm:$0xff] }
 0x20a   :  { %4093 = vmatmul.mubr.msk.f32.gmra.mrb[8].mxu0 %vm5560_vm1, %v8367_v16  ;;  %4356 = vmatprep.mubr.f32.mxu1 %v8368_v12  ;;  %v8374_v16 = vld [vmem:[#allocation61_spill] sm:$0xff]  ;;  %v8375_v12 = vld [vmem:[#allocation30_spill] sm:$0xff] }
 0x20b   :  { %2366 = vmatprep.mubr.f32.mxu0 %v8369_v18  ;;  %4808 = vmatpush3.bf16.msra.mxu1 %v4805_v53  ;;  %v8376_v53 = vld [vmem:[#allocation64_spill] sm:$0xff]  ;;  %v8379_v18 = vld [vmem:[#allocation33_spill] sm:$0xff] }
 0x20c   :  { %4810 = vmatprep.subr.bf16.mxu1 %v4809_v61 }
 0x20d   :  { %4357 = vmatmul.mubr.f32.gmra.mrb[138].mxu1 %v8370_v60  ;;  %v8380_v60 = vld [vmem:[#allocation70_spill] sm:$0xff] }
 0x20e   :  { %2367 = vmatmul.mubr.f32.gmra.mrb[10].mxu0 %v8371_v33  ;;  %4359 = vmatprep.mubr.f32.mxu1 %v8372_v6  ;;  %v8384_v33 = vld [vmem:[#allocation76_spill] sm:$0xff]  ;;  %v8385_v6 = vld [vmem:[#allocation47_spill] sm:$0xff] }
 0x20f   :  { %2371 = vmatprep.mubr.f32.mxu0 %v8373_v37  ;;  %4812 = vmatpush3.bf16.msra.mxu1 %v4809_v61  ;;  %v8381_v61 = vld [vmem:[#allocation44_spill] sm:$0xff]  ;;  %v8387_v37 = vld [vmem:[#allocation39_spill] sm:$0xff] }
 0x210   :  { %4814 = vmatprep.subr.bf16.mxu1 %v4813_v13 }
 0x211   :  { %4360 = vmatmul.mubr.f32.gmra.mrb[140].mxu1 %v8374_v16  ;;  %v8388_v16 = vld [vmem:[#allocation82_spill] sm:$0xff] }
 0x212   :  { %4095 = vmatmul.mubr.msk.f32.gmra.mrb[12].mxu0 %vm5560_vm1, %v8375_v12  ;;  %4362 = vmatprep.mubr.f32.mxu1 %v8376_v53  ;;  %v8389_v12 = vld [vmem:[#allocation50_spill] sm:$0xff]  ;;  %v8390_v53 = vld [vmem:[#allocation85_spill] sm:$0xff] }
 0x213   :  { %2376 = vmatprep.mubr.f32.mxu0 %v8377_v23  ;;  %4816 = vmatpush3.bf16.msra.mxu1 %v4813_v13  ;;  %v8386_v13 = vld [vmem:[#allocation79_spill] sm:$0xff]  ;;  %v8392_v23 = vld [vmem:[#allocation88_spill] sm:$0xff] }
 0x214   :  { %4818 = vmatprep.subr.bf16.mxu1 %v4817_v30 }
 0x215   :  { %4363 = vmatmul.mubr.f32.gmra.mrb[142].mxu1 %v8378_v31  ;;  %v8393_v31 = vld [vmem:[#allocation53_spill] sm:$0xff] }
 0x216   :  { %2377 = vmatmul.mubr.f32.gmra.mrb[14].mxu0 %v8379_v18  ;;  %4365 = vmatprep.mubr.f32.mxu1 %v8380_v60  ;;  %v8394_v18 = vld [vmem:[#allocation91_spill] sm:$0xff]  ;;  %v8395_v60 = vld [vmem:[#allocation45_spill] sm:$0xff] }
 0x217   :  { %2381 = vmatprep.mubr.f32.mxu0 %v8381_v61  ;;  %4820 = vmatpush3.bf16.msra.mxu1 %v4817_v30  ;;  %v8391_v30 = vld [vmem:[#allocation42_spill] sm:$0xff] }
 0x218   :  { %v8396_v61 = vld [vmem:[#allocation94_spill] sm:$0xff] }
 0x219   :  { %4366 = vmatmul.mubr.f32.gmra.mrb[144].mxu1 %v8382_v55  ;;  %v8397_v55 = vld [vmem:[#allocation56_spill] sm:$0xff] }
 0x21a   :  { %4097 = vmatmul.mubr.msk.f32.gmra.mrb[16].mxu0 %vm5560_vm1, %v8383_v50  ;;  %4368 = vmatprep.mubr.f32.mxu1 %v8384_v33  ;;  %v8398_v50 = vld [vmem:[#allocation98_spill] sm:$0xff]  ;;  %v8399_v33 = vld [vmem:[#allocation48_spill] sm:$0xff] }
 0x21b   :  { %2386 = vmatprep.mubr.f32.mxu0 %v8385_v6  ;;  %v8400_v6 = vld [vmem:[#allocation100_spill] sm:$0xff] }
 0x21d   :  { %4369 = vmatmul.mubr.f32.gmra.mrb[146].mxu1 %v8386_v13  ;;  %v8401_v13 = vld [vmem:[#allocation59_spill] sm:$0xff] }
 0x21e   :  { %2387 = vmatmul.mubr.f32.gmra.mrb[18].mxu0 %v8387_v37  ;;  %4371 = vmatprep.mubr.f32.mxu1 %v8388_v16  ;;  %v8402_v37 = vld [vmem:[#allocation51_spill] sm:$0xff]  ;;  %v8403_v16 = vld [vmem:[#allocation62_spill] sm:$0xff] }
 0x21f   :  { %2391 = vmatprep.mubr.f32.mxu0 %v8389_v12  ;;  %v8404_v12 = vld [vmem:[#allocation176_spill] sm:$0xff] }
 0x221   :  { %4372 = vmatmul.mubr.f32.gmra.mrb[148].mxu1 %v8390_v53  ;;  %v8405_v53 = vld [vmem:[#allocation54_spill] sm:$0xff] }
 0x222   :  { %4099 = vmatmul.mubr.msk.f32.gmra.mrb[20].mxu0 %vm5560_vm1, %v8391_v30  ;;  %4374 = vmatprep.mubr.f32.mxu1 %v8392_v23  ;;  %v8406_v30 = vld [vmem:[#allocation65_spill] sm:$0xff] }
 0x223   :  { %2396 = vmatprep.mubr.f32.mxu0 %v8393_v31  ;;  %v8407_v23 = vld [vmem:[#allocation57_spill] sm:$0xff]  ;;  %v8410_v31 = vld [vmem:[#allocation71_spill] sm:$0xff] }
 0x225   :  { %4375 = vmatmul.mubr.f32.gmra.mrb[150].mxu1 %v8394_v18  ;;  %v8411_v18 = vld [vmem:[#allocation63_spill] sm:$0xff] }
 0x226   :  { %2397 = vmatmul.mubr.f32.gmra.mrb[22].mxu0 %v8395_v60  ;;  %4377 = vmatprep.mubr.f32.mxu1 %v8396_v61  ;;  %v8412_v60 = vld [vmem:[#allocation74_spill] sm:$0xff] }
 0x227   :  { %2401 = vmatprep.mubr.f32.mxu0 %v8397_v55 }
 0x229   :  { %4378 = vmatmul.mubr.f32.gmra.mrb[152].mxu1 %v8398_v50  ;;  %v8421_v50 = vld [vmem:[#allocation78_spill] sm:$0xff] }
 0x22a   :  { %4101 = vmatmul.mubr.msk.f32.gmra.mrb[24].mxu0 %vm5560_vm1, %v8399_v33  ;;  %4380 = vmatprep.mubr.f32.mxu1 %v8400_v6  ;;  %v8424_v6 = vld [vmem:[#allocation92_spill] sm:$0xff] }
 0x22b   :  { %2406 = vmatprep.mubr.f32.mxu0 %v8401_v13 }
 0x22d   :  { %4381 = vmatmul.mubr.f32.gmra.mrb[154].mxu1 %v8265_v15  ;;  %v8408_v15 = vld [vmem:[#allocation68_spill] sm:$0xff] }
 0x22e   :  { %2407 = vmatmul.mubr.f32.gmra.mrb[26].mxu0 %v8402_v37  ;;  %4383 = vmatprep.mubr.f32.mxu1 %v6727_v1  ;;  %v8409_v1 = vld [vmem:[#allocation60_spill] sm:$0xff] }
 0x22f   :  { %2411 = vmatprep.mubr.f32.mxu0 %v8403_v16  ;;  %v8425_v37 = vld [vmem:[#allocation84_spill] sm:$0xff] }
 0x231   :  { %4384 = vmatmul.mubr.f32.gmra.mrb[156].mxu1 %v8404_v12  ;;  %v8428_v12 = vld [vmem:[#allocation99_spill] sm:$0xff] }
 0x232   :  { %4103 = vmatmul.mubr.msk.f32.gmra.mrb[28].mxu0 %vm5560_vm1, %v8405_v53  ;;  %4386 = vmatprep.mubr.f32.mxu1 %v8278_v25 }
 0x233   :  { %2416 = vmatprep.mubr.f32.mxu0 %v8406_v30  ;;  %v8429_v30 = vld [vmem:[#allocation90_spill] sm:$0xff] }
 0x235   :  { %4387 = vmatmul.mubr.f32.gmra.mrb[158].mxu1 %v8278_v25 }
 0x236   :  { %2417 = vmatmul.mubr.f32.gmra.mrb[30].mxu0 %v8407_v23  ;;  %4389 = vmatprep.mubr.f32.mxu1 %v6776_v41  ;;  %v8413_v41 = vld [vmem:[#allocation66_spill] sm:$0xff] }
 0x237   :  { %2421 = vmatprep.mubr.f32.mxu0 %v8408_v15  ;;  %v8432_v15 = vld [vmem:[#allocation173_spill] sm:$0xff] }
 0x239   :  { %4390 = vmatmul.mubr.f32.gmra.mrb[160].mxu1 %v6788_v42  ;;  %v8414_v42 = vld [vmem:[#allocation77_spill] sm:$0xff] }
 0x23a   :  { %4105 = vmatmul.mubr.msk.f32.gmra.mrb[32].mxu0 %vm5560_vm1, %v8409_v1  ;;  %4392 = vmatprep.mubr.f32.mxu1 %v6798_v24  ;;  %v8415_v24 = vld [vmem:[#allocation69_spill] sm:$0xff] }
 0x23b   :  { %2426 = vmatprep.mubr.f32.mxu0 %v8410_v31  ;;  %v8433_v31 = vld [vmem:[#allocation97_spill] sm:$0xff] }
 0x23d   :  { %4393 = vmatmul.mubr.f32.gmra.mrb[162].mxu1 %v6809_v48  ;;  %v8416_v48 = vld [vmem:[#allocation80_spill] sm:$0xff] }
 0x23e   :  { %2427 = vmatmul.mubr.f32.gmra.mrb[34].mxu0 %v8411_v18  ;;  %4395 = vmatprep.mubr.f32.mxu1 %v6820_v46  ;;  %v8417_v46 = vld [vmem:[#allocation72_spill] sm:$0xff] }
 0x23f   :  { %2431 = vmatprep.mubr.f32.mxu0 %v8412_v60  ;;  %v8436_v60 = vld [vmem:[#allocation15_spill] sm:$0xff] }
 0x241   :  { %4396 = vmatmul.mubr.f32.gmra.mrb[164].mxu1 %v6832_v52  ;;  %v8418_v52 = vld [vmem:[#allocation83_spill] sm:$0xff] }
 0x242   :  { %4107 = vmatmul.mubr.msk.f32.gmra.mrb[36].mxu0 %vm5560_vm1, %v8413_v41  ;;  %4398 = vmatprep.mubr.f32.mxu1 %v6843_v59 }
 0x243   :  { %2436 = vmatprep.mubr.f32.mxu0 %v8414_v42  ;;  %v8437_v42 = vmov 0.0  }
 0x245   :  { %4399 = vmatmul.mubr.f32.gmra.mrb[166].mxu1 %v6857_v54  ;;  %v8419_v54 = vld [vmem:[#allocation75_spill] sm:$0xff] }
 0x246   :  { %2437 = vmatmul.mubr.f32.gmra.mrb[38].mxu0 %v8415_v24  ;;  %4401 = vmatprep.mubr.f32.mxu1 %v6869_v43  ;;  %v8420_v43 = vld [vmem:[#allocation86_spill] sm:$0xff] }
 0x247   :  { %2441 = vmatprep.mubr.f32.mxu0 %v8416_v48  ;;  %v5247_v48 = vld [vmem:[#allocation2 + $0x8] sm:$0xff] }
 0x249   :  { %4402 = vmatmul.mubr.f32.gmra.mrb[168].mxu1 %v6881_v26 }
 0x24a   :  { %4109 = vmatmul.mubr.msk.f32.gmra.mrb[40].mxu0 %vm5560_vm1, %v8417_v46  ;;  %4404 = vmatprep.mubr.f32.mxu1 %v6892_v35  ;;  %v8422_v35 = vld [vmem:[#allocation89_spill] sm:$0xff]  ;;  %v5248_v46 = vld [vmem:[#allocation2 + $0x10] sm:$0xff] }
 0x24b   :  { %2446 = vmatprep.mubr.f32.mxu0 %v8418_v52 }
 0x24c   :  { %v7228_v59 = vpop.f32.mrb[64].mxu1 }
 0x24d   :  { %v1735_v61 = vpop.f32.mrb[65].mxu1  ;;  %4405 = vmatmul.mubr.f32.gmra.mrb[170].mxu1 %v6904_v9 }
 0x24e   :  { %2447 = vmatmul.mubr.f32.gmra.mrb[42].mxu0 %v8419_v54  ;;  %4407 = vmatprep.mubr.f32.mxu1 %v6915_v0  ;;  %v8423_v0 = vld [vmem:[#allocation81_spill] sm:$0xff] }
 0x24f   :  { %2451 = vmatprep.mubr.f32.mxu0 %v8420_v43  ;;  %v5249_v61 = vld [vmem:[#allocation2 + $0x18] sm:$0xff] }
 0x250   :  { %v7234_v26 = vpop.f32.mrb[66].mxu1 }
 0x251   :  { %v1740_v55 = vpop.f32.mrb[67].mxu1  ;;  %4408 = vmatmul.mubr.f32.gmra.mrb[172].mxu1 %v6927_v32 }
 0x252   :  { %4111 = vmatmul.mubr.msk.f32.gmra.mrb[44].mxu0 %vm5560_vm1, %v8421_v50  ;;  %4410 = vmatprep.mubr.f32.mxu1 %v6938_v28  ;;  %v8426_v28 = vld [vmem:[#allocation95_spill] sm:$0xff]  ;;  %v5253_v50 = vld [vmem:[#allocation2 + $0x38] sm:$0xff] }
 0x253   :  { %2456 = vmatprep.mubr.f32.mxu0 %v8422_v35  ;;  %v5251_v55 = vld [vmem:[#allocation2 + $0x28] sm:$0xff] }
 0x254   :  { %v7242_v9 = vpop.f32.mrb[68].mxu1 }
 0x255   :  { %v1745_v33 = vpop.f32.mrb[69].mxu1  ;;  %4411 = vmatmul.mubr.f32.gmra.mrb[174].mxu1 %v6950_v63 }
 0x256   :  { %2457 = vmatmul.mubr.f32.gmra.mrb[46].mxu0 %v8423_v0  ;;  %4413 = vmatprep.mubr.f32.mxu1 %v6961_v44  ;;  %v8427_v44 = vld [vmem:[#allocation87_spill] sm:$0xff] }
 0x257   :  { %2461 = vmatprep.mubr.f32.mxu0 %v8424_v6  ;;  %v5255_v0 = vld [vmem:[#allocation2 + $0x48] sm:$0xff] }
 0x258   :  { %v7248_v32 = vpop.f32.mrb[70].mxu1 }
 0x259   :  { %v1750_v13 = vpop.f32.mrb[71].mxu1  ;;  %4414 = vmatmul.mubr.f32.gmra.mrb[176].mxu1 %v6973_v14 }
 0x25a   :  { %4113 = vmatmul.mubr.msk.f32.gmra.mrb[48].mxu0 %vm5560_vm1, %v8425_v37  ;;  %4416 = vmatprep.mubr.f32.mxu1 %v6984_v22  ;;  %v8430_v22 = vld [vmem:[#allocation101_spill] sm:$0xff] }
 0x25b   :  { %2466 = vmatprep.mubr.f32.mxu0 %v8426_v28  ;;  %v5257_v13 = vld [vmem:[#allocation2 + $0x58] sm:$0xff] }
 0x25c   :  { %v7256_v63 = vpop.f32.mrb[72].mxu1 }
 0x25d   :  { %v1755_v16 = vpop.f32.mrb[73].mxu1  ;;  %4417 = vmatmul.mubr.f32.gmra.mrb[178].mxu1 %v6996_v4 }
 0x25e   :  { %2467 = vmatmul.mubr.f32.gmra.mrb[50].mxu0 %v8427_v44  ;;  %4419 = vmatprep.mubr.f32.mxu1 %v7005_v2  ;;  %v8431_v2 = vld [vmem:[#allocation93_spill] sm:$0xff]  ;;  %v5259_v16 = vld [vmem:[#allocation2 + $0x68] sm:$0xff] }
 0x25f   :  { %2471 = vmatprep.mubr.f32.mxu0 %v8428_v12  ;;  %v5261_v12 = vld [vmem:[#allocation2 + $0x78] sm:$0xff] }
 0x260   :  { %v7262_v14 = vpop.f32.mrb[74].mxu1 }
 0x261   :  { %v1760_v53 = vpop.f32.mrb[75].mxu1  ;;  %4420 = vmatmul.mubr.f32.gmra.mrb[180].mxu1 %v7015_v57 }
 0x262   :  { %4115 = vmatmul.mubr.msk.f32.gmra.mrb[52].mxu0 %vm5560_vm1, %v8429_v30  ;;  %4422 = vmatprep.mubr.f32.mxu1 %v7024_v21  ;;  %v8434_v21 = vld [vmem:[#allocation104_spill] sm:$0xff]  ;;  %v8440_v53 = vld [vmem:[#allocation118_spill] sm:$0xff] }
 0x263   :  { %2476 = vmatprep.mubr.f32.mxu0 %v8430_v22 }
 0x264   :  { %v7270_v4 = vpop.f32.mrb[76].mxu1 }
 0x265   :  { %v1765_v23 = vpop.f32.mrb[77].mxu1  ;;  %4423 = vmatmul.mubr.f32.gmra.mrb[182].mxu1 %v7034_v34 }
 0x266   :  { %2477 = vmatmul.mubr.f32.gmra.mrb[54].mxu0 %v8431_v2  ;;  %4425 = vmatprep.mubr.f32.mxu1 %v7043_v51  ;;  %v8435_v51 = vld [vmem:[#allocation102_spill] sm:$0xff]  ;;  %v5263_v23 = vld [vmem:[#allocation2 + $0x88] sm:$0xff]  ;;  %v8443_v2 = vld [vmem:[#allocation120_spill] sm:$0xff] }
 0x267   :  { %2481 = vmatprep.mubr.f32.mxu0 %v8432_v15 }
 0x268   :  { %v7276_v57 = vpop.f32.mrb[78].mxu1 }
 0x269   :  { %v1770_v1 = vpop.f32.mrb[79].mxu1  ;;  %4426 = vmatmul.mubr.f32.gmra.mrb[184].mxu1 %v7057_v7 }
 0x26a   :  { %4117 = vmatmul.mubr.msk.f32.gmra.mrb[56].mxu0 %vm5560_vm1, %v8433_v31  ;;  %4428 = vmatprep.mubr.f32.mxu1 %v7070_v49  ;;  %v5265_v1 = vld [vmem:[#allocation2 + $0x98] sm:$0xff]  ;;  %v8445_v31 = vld [vmem:[#allocation116_spill] sm:$0xff] }
 0x26b   :  { %2486 = vmatprep.mubr.f32.mxu0 %v8434_v21  ;;  %v5266_v21 = vld [vmem:[#allocation2 + $0xa0] sm:$0xff] }
 0x26c   :  { %v7284_v34 = vpop.f32.mrb[80].mxu1 }
 0x26d   :  { %v1775_v18 = vpop.f32.mrb[81].mxu1  ;;  %4429 = vmatmul.mubr.f32.gmra.mrb[186].mxu1 %v7086_v39 }
 0x26e   :  { %2487 = vmatmul.mubr.f32.gmra.mrb[58].mxu0 %v8435_v51  ;;  %4431 = vmatprep.mubr.f32.mxu1 %v7096_v3  ;;  %v5246_v3 = vld [vmem:[#allocation2] sm:$0xff] }
 0x26f   :  { %2491 = vmatprep.mubr.f32.mxu0 %v8436_v60  ;;  %v8446_v18 = vld [vmem:[#allocation122_spill] sm:$0xff] }
 0x270   :  { %v7290_v7 = vpop.f32.mrb[82].mxu1 }
 0x271   :  { %v1780_v41 = vpop.f32.mrb[83].mxu1  ;;  %4432 = vmatmul.mubr.f32.gmra.mrb[188].mxu1 %v7108_v27 }
 0x272   :  { %2492 = vmatmul.mubr.f32.gmra.mrb[60].mxu0 %v8437_v42  ;;  %4434 = vmatprep.mubr.f32.mxu1 %v8278_v25 }
 0x273   :  { %2496 = vmatprep.mubr.f32.mxu0 %v8436_v60 }
 0x274   :  { %v7296_v49 = vpop.f32.mrb[84].mxu1 }
 0x275   :  { %v1785_v39 = vpop.f32.mrb[85].mxu1  ;;  %4435 = vmatmul.mubr.f32.gmra.mrb[190].mxu1 %v8278_v25 }
 0x276   :  { %2497 = vmatmul.mubr.f32.gmra.mrb[62].mxu0 %v8437_v42  ;;  %4469 = vmatprep.mubr.f32.mxu1 %v5246_v3  ;;  %v5267_v39 = vld [vmem:[#allocation2 + $0xa8] sm:$0xff]  ;;  %v8448_v3 = vld [vmem:[#allocation117_spill] sm:$0xff] }
 0x277   :  { %2501 = vmatprep.mubr.f32.mxu0 %v8283_v5  ;;  %v5250_v5 = vld [vmem:[#allocation2 + $0x20] sm:$0xff] }
 0x278   :  { %v7301_v24 = vpop.f32.mrb[86].mxu1 }
 0x279   :  { %v1790_v27 = vpop.f32.mrb[87].mxu1  ;;  %4470 = vmatmul.mubr.f32.vlgmr.msra.gmra.mrb[192].mxu1 %v5247_v48  ;;  %v8449_v48 = vld [vmem:[#allocation124_spill] sm:$0xff] }
 0x27a   :  { %4119 = vmatmul.mubr.msk.f32.gmra.mrb[64].mxu0 %vm5560_vm1, %v6227_v40  ;;  %4472 = vmatprep.mubr.f32.mxu1 %v5248_v46  ;;  %v5252_v40 = vld [vmem:[#allocation2 + $0x30] sm:$0xff] }
 0x27b   :  { %2506 = vmatprep.mubr.f32.mxu0 %v8285_v47  ;;  %v5268_v27 = vld [vmem:[#allocation2 + $0xb0] sm:$0xff] }
 0x27c   :  { %v7307_v25 = vpop.f32.mrb[88].mxu1 }
 0x27d   :  { %v1795_v52 = vpop.f32.mrb[89].mxu1  ;;  %4473 = vmatmul.mubr.f32.gmra.mrb[194].mxu1 %v5249_v61  ;;  %v5269_v61 = vld [vmem:[#allocation2 + $0xb8] sm:$0xff] }
 0x27e   :  { %2507 = vmatmul.mubr.f32.gmra.mrb[66].mxu0 %v6239_v10  ;;  %4475 = vmatprep.mubr.f32.mxu1 %v5250_v5  ;;  %v8451_v5 = vld [vmem:[#allocation119_spill] sm:$0xff] }
 0x27f   :  { %2511 = vmatprep.mubr.f32.mxu0 %v8287_v8  ;;  %v5254_v8 = vld [vmem:[#allocation2 + $0x40] sm:$0xff] }
 0x280   :  { %v7311_v54 = vpop.f32.mrb[90].mxu1 }
 0x281   :  { %v1800_v43 = vpop.f32.mrb[91].mxu1  ;;  %4476 = vmatmul.mubr.f32.gmra.mrb[196].mxu1 %v5251_v55  ;;  %v8452_v55 = vld [vmem:[#allocation127_spill] sm:$0xff] }
 0x282   :  { %4121 = vmatmul.mubr.msk.f32.gmra.mrb[68].mxu0 %vm5560_vm1, %v6260_v58  ;;  %4478 = vmatprep.mubr.f32.mxu1 %v5252_v40  ;;  %v8438_v58 = vld [vmem:[#allocation110_spill] sm:$0xff] }
 0x283   :  { %2516 = vmatprep.mubr.f32.mxu0 %v8289_v36  ;;  %v5256_v36 = vld [vmem:[#allocation2 + $0x50] sm:$0xff]  ;;  %v5270_v43 = vld [vmem:[#allocation2 + $0xc0] sm:$0xff] }
 0x284   :  { %v7317_v47 = vpop.f32.mrb[92].mxu1 }
 0x285   :  { %v1805_v10 = vpop.f32.mrb[93].mxu1  ;;  %4479 = vmatmul.mubr.f32.gmra.mrb[198].mxu1 %v5253_v50  ;;  %v5271_v50 = vld [vmem:[#allocation2 + $0xc8] sm:$0xff] }
 0x286   :  { %2517 = vmatmul.mubr.f32.gmra.mrb[70].mxu0 %v6276_v62  ;;  %4481 = vmatprep.mubr.f32.mxu1 %v5254_v8  ;;  %v8454_v8 = vld [vmem:[#allocation121_spill] sm:$0xff] }
 0x287   :  { %2521 = vmatprep.mubr.f32.mxu0 %v8291_v56  ;;  %v5258_v56 = vld [vmem:[#allocation2 + $0x60] sm:$0xff] }
 0x288   :  { %v7321_v35 = vpop.f32.mrb[94].mxu1 }
 0x289   :  { %v1810_v33 = vpop.f32.mrb[95].mxu1  ;;  %4482 = vmatmul.mubr.f32.gmra.mrb[200].mxu1 %v5255_v0  ;;  %v8455_v0 = vld [vmem:[#allocation129_spill] sm:$0xff] }
 0x28a   :  { %4123 = vmatmul.mubr.msk.f32.gmra.mrb[72].mxu0 %vm5560_vm1, %v8438_v58  ;;  %4484 = vmatprep.mubr.f32.mxu1 %v5256_v36  ;;  %v5272_v33 = vld [vmem:[#allocation2 + $0xd0] sm:$0xff] }
 0x28b   :  { %2526 = vmatprep.mubr.f32.mxu0 %v8293_v11  ;;  %v5260_v11 = vld [vmem:[#allocation2 + $0x70] sm:$0xff] }
 0x28c   :  { %v7327_v6 = vpop.f32.mrb[96].mxu1 }
 0x28d   :  { %v1815_v62 = vpop.f32.mrb[97].mxu1  ;;  %4485 = vmatmul.mubr.f32.gmra.mrb[202].mxu1 %v5257_v13  ;;  %v8457_v13 = vld [vmem:[#allocation123_spill] sm:$0xff] }
 0x28e   :  { %2527 = vmatmul.mubr.f32.gmra.mrb[74].mxu0 %v6310_v20  ;;  %4487 = vmatprep.mubr.f32.mxu1 %v5258_v56  ;;  %v5273_v62 = vld [vmem:[#allocation2 + $0xd8] sm:$0xff]  ;;  %v5274_v56 = vld [vmem:[#allocation2 + $0xe0] sm:$0xff] }
 0x28f   :  { %2531 = vmatprep.mubr.f32.mxu0 %v6373_v19  ;;  %v5262_v19 = vld [vmem:[#allocation2 + $0x80] sm:$0xff] }
 0x290   :  { %v7331_v37 = vpop.f32.mrb[98].mxu1 }
 0x291   :  { %v1820_v28 = vpop.f32.mrb[99].mxu1  ;;  %4488 = vmatmul.mubr.f32.gmra.mrb[204].mxu1 %v5259_v16 }
 0x292   :  { %4125 = vmatmul.mubr.msk.f32.gmra.mrb[76].mxu0 %vm5560_vm1, %v6329_v29  ;;  %4490 = vmatprep.mubr.f32.mxu1 %v5260_v11  ;;  %v8442_v29 = vld [vmem:[#allocation115_spill] sm:$0xff]  ;;  %v8458_v28 = vld [vmem:[#allocation132_spill] sm:$0xff] }
 0x293   :  { %2536 = vmatprep.mubr.f32.mxu0 %v6390_v38  ;;  %v5264_v38 = vld [vmem:[#allocation2 + $0x90] sm:$0xff] }
 0x294   :  { %v7337_v44 = vpop.f32.mrb[100].mxu1 }
 0x295   :  { %8439 = vst [vmem:[#allocation170_spill] sm:$0xff] %v7337_v44  ;;  %v1825_v20 = vpop.f32.mrb[101].mxu1  ;;  %4491 = vmatmul.mubr.f32.gmra.mrb[206].mxu1 %v5261_v12  ;;  %v8460_v12 = vld [vmem:[#allocation126_spill] sm:$0xff] }
 0x296   :  { %2537 = vmatmul.mubr.f32.gmra.mrb[78].mxu0 %v6344_v17  ;;  %4493 = vmatprep.mubr.f32.mxu1 %v5262_v19  ;;  %v5275_v20 = vld [vmem:[#allocation2 + $0xe8] sm:$0xff]  ;;  %v5276_v19 = vld [vmem:[#allocation2 + $0xf0] sm:$0xff] }
 0x297   :  { %2541 = vmatprep.mubr.f32.mxu0 %v8440_v53  ;;  %v8461_v53 = vld [vmem:[#allocation134_spill] sm:$0xff] }
 0x298   :  { %v7341_v30 = vpop.f32.mrb[102].mxu1 }
 0x299   :  { %8441 = vst [vmem:[#allocation22_spill] sm:$0xff] %v7341_v30  ;;  %v1830_v22 = vpop.f32.mrb[103].mxu1  ;;  %4494 = vmatmul.mubr.f32.gmra.mrb[208].mxu1 %v5263_v23 }
 0x29a   :  { %4127 = vmatmul.mubr.msk.f32.gmra.mrb[80].mxu0 %vm5560_vm1, %v8442_v29  ;;  %4496 = vmatprep.mubr.f32.mxu1 %v5264_v38  ;;  %v5277_v29 = vld [vmem:[#allocation2 + $0xf8] sm:$0xff]  ;;  %v8463_v38 = vld [vmem:[#allocation128_spill] sm:$0xff] }
 0x29b   :  { %2546 = vmatprep.mubr.f32.mxu0 %v8443_v2  ;;  %v5278_v2 = vld [vmem:[#allocation2 + $0x100] sm:$0xff] }
 0x29c   :  { %v7347_v15 = vpop.f32.mrb[104].mxu1 }
 0x29d   :  { %8444 = vst [vmem:[#allocation20_spill] sm:$0xff] %v7347_v15  ;;  %v1835_v17 = vpop.f32.mrb[105].mxu1  ;;  %4497 = vmatmul.mubr.f32.gmra.mrb[210].mxu1 %v5265_v1 }
 0x29e   :  { %2547 = vmatmul.mubr.f32.gmra.mrb[82].mxu0 %v8445_v31  ;;  %4499 = vmatprep.mubr.f32.mxu1 %v5266_v21  ;;  %v8464_v17 = vld [vmem:[#allocation137_spill] sm:$0xff]  ;;  %v5279_v21 = vld [vmem:[#allocation2 + $0x108] sm:$0xff] }
 0x29f   :  { %2551 = vmatprep.mubr.f32.mxu0 %v8446_v18  ;;  %v8466_v18 = vld [vmem:[#allocation131_spill] sm:$0xff] }
 0x2a0   :  { %v7351_v51 = vpop.f32.mrb[106].mxu1 }
 0x2a1   :  { %8447 = vst [vmem:[#allocation25_spill] sm:$0xff] %v7351_v51  ;;  %v1840_v41 = vpop.f32.mrb[107].mxu1  ;;  %4500 = vmatmul.mubr.f32.gmra.mrb[212].mxu1 %v5267_v39  ;;  %v8467_v39 = vld [vmem:[#allocation140_spill] sm:$0xff] }
 0x2a2   :  { %4129 = vmatmul.mubr.msk.f32.gmra.mrb[84].mxu0 %vm5560_vm1, %v8448_v3  ;;  %4502 = vmatprep.mubr.f32.mxu1 %v5268_v27  ;;  %v5280_v41 = vld [vmem:[#allocation2 + $0x110] sm:$0xff] }
 0x2a3   :  { %2556 = vmatprep.mubr.f32.mxu0 %v8449_v48  ;;  %v5281_v48 = vld [vmem:[#allocation2 + $0x118] sm:$0xff] }
 0x2a4   :  { %v7357_v46 = vpop.f32.mrb[108].mxu1 }
 0x2a5   :  { %8450 = vst [vmem:[#allocation17_spill] sm:$0xff] %v7357_v46  ;;  %v1845_v52 = vpop.f32.mrb[109].mxu1  ;;  %4503 = vmatmul.mubr.f32.gmra.mrb[214].mxu1 %v5269_v61  ;;  %v5282_v61 = vld [vmem:[#allocation2 + $0x120] sm:$0xff] }
 0x2a6   :  { %2557 = vmatmul.mubr.f32.gmra.mrb[86].mxu0 %v8451_v5  ;;  %4505 = vmatprep.mubr.f32.mxu1 %v5270_v43  ;;  %v8469_v52 = vld [vmem:[#allocation133_spill] sm:$0xff]  ;;  %v8470_v5 = vld [vmem:[#allocation143_spill] sm:$0xff] }
 0x2a7   :  { %2561 = vmatprep.mubr.f32.mxu0 %v8452_v55 }
 0x2a8   :  { %v7361_v40 = vpop.f32.mrb[110].mxu1 }
 0x2a9   :  { %8453 = vst [vmem:[#allocation23_spill] sm:$0xff] %v7361_v40  ;;  %v1850_v10 = vpop.f32.mrb[111].mxu1  ;;  %4506 = vmatmul.mubr.f32.gmra.mrb[216].mxu1 %v5271_v50  ;;  %v8472_v50 = vld [vmem:[#allocation136_spill] sm:$0xff] }
 0x2aa   :  { %4131 = vmatmul.mubr.msk.f32.gmra.mrb[88].mxu0 %vm5560_vm1, %v8454_v8  ;;  %4508 = vmatprep.mubr.f32.mxu1 %v5272_v33  ;;  %v5283_v10 = vld [vmem:[#allocation2 + $0x128] sm:$0xff]  ;;  %v5284_v8 = vld [vmem:[#allocation2 + $0x130] sm:$0xff] }
 0x2ab   :  { %2566 = vmatprep.mubr.f32.mxu0 %v8455_v0  ;;  %v8473_v33 = vld [vmem:[#allocation147_spill] sm:$0xff] }
 0x2ac   :  { %v7367_v58 = vpop.f32.mrb[112].mxu1 }
 0x2ad   :  { %8456 = vst [vmem:[#allocation28_spill] sm:$0xff] %v7367_v58  ;;  %v1855_v36 = vpop.f32.mrb[113].mxu1  ;;  %4509 = vmatmul.mubr.f32.gmra.mrb[218].mxu1 %v5273_v62  ;;  %v5285_v62 = vld [vmem:[#allocation2 + $0x138] sm:$0xff] }
 0x2ae   :  { %2567 = vmatmul.mubr.f32.gmra.mrb[90].mxu0 %v8457_v13  ;;  %4511 = vmatprep.mubr.f32.mxu1 %v5274_v56  ;;  %v8475_v13 = vld [vmem:[#allocation138_spill] sm:$0xff] }
 0x2af   :  { %2571 = vmatprep.mubr.f32.mxu0 %v8458_v28  ;;  %v5286_v56 = vld [vmem:[#allocation2 + $0x140] sm:$0xff]  ;;  %v8476_v28 = vld [vmem:[#allocation151_spill] sm:$0xff] }
 0x2b0   :  { %v7371_v16 = vpop.f32.mrb[114].mxu1 }
 0x2b1   :  { %8459 = vst [vmem:[#allocation31_spill] sm:$0xff] %v7371_v16  ;;  %v1860_v11 = vpop.f32.mrb[115].mxu1  ;;  %4512 = vmatmul.mubr.f32.gmra.mrb[220].mxu1 %v5275_v20  ;;  %v7406_v20 = vld [vmem:[%s7857_s2] ss:$0 sm:$0xff] }
 0x2b2   :  { %4133 = vmatmul.mubr.msk.f32.gmra.mrb[92].mxu0 %vm5560_vm1, %v8460_v12  ;;  %4514 = vmatprep.mubr.f32.mxu1 %v5276_v19  ;;  %v5287_v19 = vld [vmem:[#allocation2 + $0x148] sm:$0xff] }
 0x2b3   :  { %2576 = vmatprep.mubr.f32.mxu0 %v8461_v53  ;;  %v8478_v53 = vld [vmem:[#allocation142_spill] sm:$0xff] }
 0x2b4   :  { %v7377_v22 = vpop.f32.mrb[116].mxu1 }
 0x2b5   :  { %8462 = vst [vmem:[#allocation18_spill] sm:$0xff] %v7377_v22  ;;  %v1865_v23 = vpop.f32.mrb[117].mxu1  ;;  %4515 = vmatmul.mubr.f32.gmra.mrb[222].mxu1 %v5277_v29  ;;  %v8479_v29 = vld [vmem:[#allocation155_spill] sm:$0xff] }
 0x2b6   :  { %2577 = vmatmul.mubr.f32.gmra.mrb[94].mxu0 %v8463_v38  ;;  %4517 = vmatprep.mubr.f32.mxu1 %v5278_v2  ;;  %v5288_v23 = vld [vmem:[#allocation2 + $0x150] sm:$0xff] }
 0x2b7   :  { %2581 = vmatprep.mubr.f32.mxu0 %v8464_v17  ;;  %v8480_v38 = vld [vmem:[#allocation144_spill] sm:$0xff] }
 0x2b8   :  { %v7381_v1 = vpop.f32.mrb[118].mxu1  ;;  %v1189_v2 = vadd.f32 %v7406_v20, %v8480_v38 }
 0x2b9   :  { %8465 = vst [vmem:[#allocation34_spill] sm:$0xff] %v7381_v1  ;;  %v1870_v31 = vpop.f32.mrb[119].mxu1  ;;  %4518 = vmatmul.mubr.f32.gmra.mrb[224].mxu1 %v5279_v21  ;;  %v5289_v21 = vld [vmem:[#allocation2 + $0x158] sm:$0xff] }
 0x2ba   :  { %4135 = vmatmul.mubr.msk.f32.gmra.mrb[96].mxu0 %vm5560_vm1, %v8466_v18  ;;  %4520 = vmatprep.mubr.f32.mxu1 %v5280_v41 }
 0x2bb   :  { %2586 = vmatprep.mubr.f32.mxu0 %v8467_v39 }
 0x2bc   :  { %v7387_v3 = vpop.f32.mrb[120].mxu1 }
 0x2bd   :  { %8468 = vst [vmem:[#allocation26_spill] sm:$0xff] %v7387_v3  ;;  %v1875_v27 = vpop.f32.mrb[121].mxu1  ;;  %4521 = vmatmul.mubr.f32.gmra.mrb[226].mxu1 %v5281_v48  ;;  %v5290_v48 = vld [vmem:[#allocation2 + $0x160] sm:$0xff] }
 0x2be   :  { %2587 = vmatmul.mubr.f32.gmra.mrb[98].mxu0 %v8469_v52  ;;  %4523 = vmatprep.mubr.f32.mxu1 %v5282_v61  ;;  %v8481_v27 = vld [vmem:[#allocation145_spill] sm:$0xff]  ;;  %v8482_v52 = vld [vmem:[#allocation159_spill] sm:$0xff]  ;;  %v8483_v61 = vld [vmem:[#allocation148_spill] sm:$0xff] }
 0x2bf   :  { %2591 = vmatprep.mubr.f32.mxu0 %v8470_v5  ;;  %v1194_v5 = vadd.f32 %v7406_v20, %v8483_v61  ;;  %v8489_v61 = vld [vmem:[#allocation156_spill] sm:$0xff] }
 0x2c0   :  { %v7391_v43 = vpop.f32.mrb[122].mxu1 }
 0x2c1   :  { %8471 = vst [vmem:[#allocation37_spill] sm:$0xff] %v7391_v43  ;;  %v1880_v55 = vpop.f32.mrb[123].mxu1  ;;  %4524 = vmatmul.mubr.f32.gmra.mrb[228].mxu1 %v5283_v10 }
 0x2c2   :  { %4137 = vmatmul.mubr.msk.f32.gmra.mrb[100].mxu0 %vm5560_vm1, %v8472_v50  ;;  %4526 = vmatprep.mubr.f32.mxu1 %v5284_v8  ;;  %v5291_v8 = vld [vmem:[#allocation2 + $0x168] sm:$0xff] }
 0x2c3   :  { %2596 = vmatprep.mubr.f32.mxu0 %v8473_v33 }
 0x2c4   :  { %v7397_v0 = vpop.f32.mrb[124].mxu1 }
 0x2c5   :  { %8474 = vst [vmem:[#allocation19_spill] sm:$0xff] %v7397_v0  ;;  %v1885_v36 = vpop.f32.mrb[125].mxu1  ;;  %4527 = vmatmul.mubr.f32.gmra.mrb[230].mxu1 %v5285_v62 }
 0x2c6   :  { %2597 = vmatmul.mubr.f32.gmra.mrb[102].mxu0 %v8475_v13  ;;  %4529 = vmatprep.mubr.f32.mxu1 %v5286_v56  ;;  %v8484_v13 = vld [vmem:[#allocation150_spill] sm:$0xff]  ;;  %v5292_v56 = vld [vmem:[#allocation2 + $0x170] sm:$0xff] }
 0x2c7   :  { %2601 = vmatprep.mubr.f32.mxu0 %v8476_v28  ;;  %v8485_v28 = vld [vmem:[#allocation163_spill] sm:$0xff] }
 0x2c8   :  { %v7401_v11 = vpop.f32.mrb[126].mxu1 }
 0x2c9   :  { %8477 = vst [vmem:[#allocation40_spill] sm:$0xff] %v7401_v11  ;;  %v1890_v12 = vpop.f32.mrb[127].mxu1  ;;  %4530 = vmatmul.mubr.f32.gmra.mrb[232].mxu1 %v5287_v19 }
 0x2ca   :  { %4139 = vmatmul.mubr.msk.f32.gmra.mrb[104].mxu0 %vm5560_vm1, %v8478_v53  ;;  %4532 = vmatprep.mubr.f32.mxu1 %v5288_v23  ;;  %v8486_v12 = vld [vmem:[#allocation152_spill] sm:$0xff] }
 0x2cb   :  { %2606 = vmatprep.mubr.f32.mxu0 %v8479_v29  ;;  %v1199_v19 = vadd.f32 %v7406_v20, %v8486_v12 }
 0x2cc   :  { %v4343_v17 = vpop.f32.mrb[128].mxu1 }
 0x2cd   :  { %v2343_v31 = vpop.f32.mrb[0].mxu0  ;;  %4533 = vmatmul.mubr.f32.gmra.mrb[234].mxu1 %v5289_v21  ;;  %v2728_v18 = vpop.f32.mrb[129].mxu1 }
 0x2ce   :  { %v4854_v41 = vadd.f32 %v2343_v31, %v1189_v2  ;;  %v2345_v39 = vpop.f32.mrb[1].mxu0  ;;  %2607 = vmatmul.mubr.f32.gmra.mrb[106].mxu0 %v8481_v27  ;;  %4535 = vmatprep.mubr.f32.mxu1 %v5290_v48  ;;  %v5293_v2 = vld [vmem:[#allocation2 + $0x178] sm:$0xff]  ;;  %v5294_v48 = vld [vmem:[#allocation2 + $0x180] sm:$0xff] }
 0x2cf   :  { %2611 = vmatprep.mubr.f32.mxu0 %v8482_v52  ;;  %v8487_v27 = vld [vmem:[#allocation153_spill] sm:$0xff]  ;;  %v8488_v52 = vld [vmem:[#allocation167_spill] sm:$0xff] }
 0x2d0   :  { %v2729_v55 = vadd.f32 %v4854_v41, %v2728_v18  ;;  %v4346_v10 = vpop.f32.mrb[130].mxu1 }
 0x2d1   :  { %v2348_v50 = vpop.f32.mrb[2].mxu0  ;;  %4536 = vmatmul.mubr.f32.gmra.mrb[236].mxu1 %v5291_v8  ;;  %v2738_v33 = vpop.f32.mrb[131].mxu1 }
 0x2d2   :  { %3047 = vst [vmem:[#allocation8] sm:$0xff] %v2729_v55  ;;  %v4856_v36 = vadd.f32 %v2348_v50, %v1194_v5  ;;  %v2350_v62 = vpop.f32.mrb[3].mxu0  ;;  %4141 = vmatmul.mubr.msk.f32.gmra.mrb[108].mxu0 %vm5560_vm1, %v8484_v13  ;;  %4538 = vmatprep.mubr.f32.mxu1 %v5292_v56  ;;  %v3588_v29 = vmul.f32 %v2729_v55, %v2729_v55 }
 0x2d3   :  { %2616 = vmatprep.mubr.f32.mxu0 %v8485_v28  ;;  %v5295_v62 = vld [vmem:[#allocation2 + $0x188] sm:$0xff] }
 0x2d4   :  { %v2734_v53 = vadd.f32 %v4856_v36, %v4343_v17  ;;  %v7424_v23 = vpop.f32.mrb[132].mxu1  ;;  %v1204_v17 = vadd.f32 %v7406_v20, %v8489_v61 }
 0x2d5   :  { %v2353_v38 = vpop.f32.mrb[4].mxu0  ;;  %4539 = vmatmul.mubr.f32.gmra.mrb[238].mxu1 %v5293_v2  ;;  %v2748_v31 = vpop.f32.mrb[133].mxu1 }
 0x2d6   :  { %3048 = vst [vmem:[#allocation8 + $0x8] sm:$0xff] %v2734_v53  ;;  %v3519_v21 = vadd.f32 %v2734_v53, %v2729_v55  ;;  %v3589_v18 = vmul.f32 %v2734_v53, %v2734_v53  ;;  %v4858_v41 = vadd.f32 %v2353_v38, %v1199_v19  ;;  %v2355_v39 = vpop.f32.mrb[5].mxu0  ;;  %2617 = vmatmul.mubr.f32.gmra.mrb[110].mxu0 %v8487_v27  ;;  %v8490_v19 = vld [vmem:[#allocation158_spill] sm:$0xff]  ;;  %v5296_v53 = vld [vmem:[#allocation2 + $0x190] sm:$0xff] }
 0x2d7   :  { %4541 = vmatprep.mubr.f32.mxu1 %v5294_v48  ;;  %2621 = vmatprep.mubr.f32.mxu0 %v8488_v52 }
 0x2d8   :  { %v3652_v5 = vadd.f32 %v3589_v18, %v3588_v29  ;;  %v2739_v50 = vadd.f32 %v4858_v41, %v2738_v33  ;;  %v7430_v8 = vpop.f32.mrb[134].mxu1  ;;  %v8491_v29 = vld [vmem:[#allocation171_spill] sm:$0xff]  ;;  %v8492_v33 = vld [vmem:[#allocation160_spill] sm:$0xff] }
 0x2d9   :  { %v2358_v36 = vpop.f32.mrb[6].mxu0  ;;  %4542 = vmatmul.mubr.f32.gmra.mrb[240].mxu1 %v5295_v62  ;;  %v7432_v55 = vpop.f32.mrb[135].mxu1  ;;  %v1209_v38 = vadd.f32 %v7406_v20, %v8492_v33  ;;  %v8494_v62 = vld [vmem:[#allocation96_spill] sm:$0xff] }
 0x2da   :  { %3049 = vst [vmem:[#allocation8 + $0x10] sm:$0xff] %v2739_v50  ;;  %v3520_v13 = vadd.f32 %v3519_v21, %v2739_v50  ;;  %v3590_v56 = vmul.f32 %v2739_v50, %v2739_v50  ;;  %v4860_v28 = vadd.f32 %v2358_v36, %v1204_v17  ;;  %v2360_v12 = vpop.f32.mrb[7].mxu0  ;;  %4143 = vmatmul.mubr.msk.f32.gmra.mrb[112].mxu0 %vm5560_vm1, %v8490_v19  ;;  %v5297_v21 = vld [vmem:[#allocation2 + $0x198] sm:$0xff]  ;;  %v5298_v36 = vld [vmem:[#allocation2 + $0x1a0] sm:$0xff] }
 0x2db   :  { %4544 = vmatprep.mubr.f32.mxu1 %v5296_v53  ;;  %2626 = vmatprep.mubr.f32.mxu0 %v8491_v29  ;;  %v8493_v50 = vld [vmem:[#allocation161_spill] sm:$0xff]  ;;  %v5299_v53 = vld [vmem:[#allocation2 + $0x1a8] sm:$0xff] }
 0x2dc   :  { %v3653_v2 = vadd.f32 %v3652_v5, %v3590_v56  ;;  %v2744_v18 = vadd.f32 %v4860_v28, %v4346_v10  ;;  %v7440_v41 = vpop.f32.mrb[136].mxu1  ;;  %v8495_v5 = vld [vmem:[#allocation164_spill] sm:$0xff] }
 0x2dd   :  { %v2363_v39 = vpop.f32.mrb[8].mxu0  ;;  %4545 = vmatmul.mubr.f32.gmra.mrb[242].mxu1 %v5297_v21  ;;  %v7442_v27 = vpop.f32.mrb[137].mxu1  ;;  %v1214_v10 = vadd.f32 %v7406_v20, %v8495_v5  ;;  %v5300_v21 = vld [vmem:[#allocation2 + $0x1b0] sm:$0xff] }
 0x2de   :  { %3050 = vst [vmem:[#allocation8 + $0x18] sm:$0xff] %v2744_v18  ;;  %v3521_v48 = vadd.f32 %v3520_v13, %v2744_v18  ;;  %v3591_v52 = vmul.f32 %v2744_v18, %v2744_v18  ;;  %v4862_v61 = vadd.f32 %v2363_v39, %v1209_v38  ;;  %v2365_v17 = vpop.f32.mrb[9].mxu0  ;;  %2627 = vmatmul.mubr.f32.gmra.mrb[114].mxu0 %v8493_v50  ;;  %v8496_v39 = vld [vmem:[#allocation166_spill] sm:$0xff] }
 0x2df   :  { %4547 = vmatprep.mubr.f32.mxu1 %v5298_v36  ;;  %2631 = vmatprep.mubr.f32.mxu0 %v8494_v62  ;;  %v5301_v36 = vld [vmem:[#allocation2 + $0x1b8] sm:$0xff] }
 0x2e0   :  { %v3654_v56 = vadd.f32 %v3653_v2, %v3591_v52  ;;  %v2749_v28 = vadd.f32 %v4862_v61, %v2748_v31  ;;  %v7448_v12 = vpop.f32.mrb[138].mxu1  ;;  %v8497_v2 = vld [vmem:[#allocation174_spill] sm:$0xff]  ;;  %v8498_v31 = vld [vmem:[#allocation168_spill] sm:$0xff] }
 0x2e1   :  { %v2368_v19 = vpop.f32.mrb[10].mxu0  ;;  %4548 = vmatmul.mubr.f32.gmra.mrb[244].mxu1 %v5299_v53  ;;  %v7450_v13 = vpop.f32.mrb[139].mxu1  ;;  %v1219_v52 = vadd.f32 %v7406_v20, %v8498_v31  ;;  %v8499_v53 = vld [vmem:[#allocation169_spill] sm:$0xff]  ;;  %v5303_v31 = vld [vmem:[#allocation2 + $0x1c8] sm:$0xff] }
 0x2e2   :  { %3051 = vst [vmem:[#allocation8 + $0x20] sm:$0xff] %v2749_v28  ;;  %v3522_v29 = vadd.f32 %v3521_v48, %v2749_v28  ;;  %v3592_v33 = vmul.f32 %v2749_v28, %v2749_v28  ;;  %v4864_v38 = vadd.f32 %v2368_v19, %v1214_v10  ;;  %v2370_v18 = vpop.f32.mrb[11].mxu0  ;;  %4145 = vmatmul.mubr.msk.f32.gmra.mrb[116].mxu0 %vm5560_vm1, %v8496_v39  ;;  %v8500_v39 = vld [vmem:[#allocation162_spill] sm:$0xff] }
 0x2e3   :  { %4550 = vmatprep.mubr.f32.mxu1 %v5300_v21  ;;  %2636 = vmatprep.mubr.f32.mxu0 %v8497_v2  ;;  %v5302_v18 = vld [vmem:[#allocation2 + $0x1c0] sm:$0xff] }
 0x2e4   :  { %v3655_v61 = vadd.f32 %v3654_v56, %v3592_v33  ;;  %v2754_v17 = vadd.f32 %v4864_v38, %v7424_v23  ;;  %v7459_v50 = vpop.f32.mrb[140].mxu1  ;;  %v8501_v56 = vld [vmem:[#allocation172_spill] sm:$0xff] }
 0x2e5   :  { %v2373_v48 = vpop.f32.mrb[12].mxu0  ;;  %4551 = vmatmul.mubr.f32.gmra.mrb[246].mxu1 %v5301_v36  ;;  %v7461_v62 = vpop.f32.mrb[141].mxu1  ;;  %v1224_v23 = vadd.f32 %v7406_v20, %v8501_v56  ;;  %v5305_v56 = vld [vmem:[#allocation2 + $0x1d8] sm:$0xff] }
 0x2e6   :  { %3052 = vst [vmem:[#allocation8 + $0x28] sm:$0xff] %v2754_v17  ;;  %v3523_v5 = vadd.f32 %v3522_v29, %v2754_v17  ;;  %v3593_v10 = vmul.f32 %v2754_v17, %v2754_v17  ;;  %v4866_v28 = vadd.f32 %v2373_v48, %v1219_v52  ;;  %v2375_v19 = vpop.f32.mrb[13].mxu0  ;;  %2637 = vmatmul.mubr.f32.gmra.mrb[118].mxu0 %v8499_v53  ;;  %v5304_v53 = vld [vmem:[#allocation2 + $0x1d0] sm:$0xff] }
 0x2e7   :  { %4553 = vmatprep.mubr.f32.mxu1 %v5302_v18  ;;  %2641 = vmatprep.mubr.f32.mxu0 %v8500_v39  ;;  %v8502_v19 = vld [vmem:[#allocation154_spill] sm:$0xff] }
 0x2e8   :  { %v3656_v33 = vadd.f32 %v3655_v61, %v3593_v10  ;;  %v2759_v38 = vadd.f32 %v4866_v28, %v7432_v55  ;;  %v7468_v21 = vpop.f32.mrb[142].mxu1  ;;  %v8503_v61 = vld [vmem:[#allocation165_spill] sm:$0xff]  ;;  %v8504_v55 = vld [vmem:[#allocation103_spill] sm:$0xff] }
 0x2e9   :  { %v2378_v2 = vpop.f32.mrb[14].mxu0  ;;  %4554 = vmatmul.mubr.f32.gmra.mrb[248].mxu1 %v5303_v31  ;;  %v7470_v29 = vpop.f32.mrb[143].mxu1  ;;  %v1229_v10 = vadd.f32 %v7406_v20, %v8504_v55  ;;  %v5307_v55 = vld [vmem:[#allocation2 + $0x1e8] sm:$0xff] }
 0x2ea   :  { %3053 = vst [vmem:[#allocation8 + $0x30] sm:$0xff] %v2759_v38  ;;  %v3524_v52 = vadd.f32 %v3523_v5, %v2759_v38  ;;  %v3594_v17 = vmul.f32 %v2759_v38, %v2759_v38  ;;  %v4868_v48 = vadd.f32 %v2378_v2, %v1224_v23  ;;  %v2380_v36 = vpop.f32.mrb[15].mxu0  ;;  %4147 = vmatmul.mubr.msk.f32.gmra.mrb[120].mxu0 %vm5560_vm1, %v8502_v19  ;;  %v5306_v19 = vld [vmem:[#allocation2 + $0x1e0] sm:$0xff] }
 0x2eb   :  { %4556 = vmatprep.mubr.f32.mxu1 %v5304_v53  ;;  %2646 = vmatprep.mubr.f32.mxu0 %v8503_v61  ;;  %v8505_v36 = vld [vmem:[#allocation157_spill] sm:$0xff] }
 0x2ec   :  { %v3657_v28 = vadd.f32 %v3656_v33, %v3594_v17  ;;  %v2764_v18 = vadd.f32 %v4868_v48, %v7430_v8  ;;  %v7479_v39 = vpop.f32.mrb[144].mxu1  ;;  %v8506_v33 = vld [vmem:[#allocation175_spill] sm:$0xff] }
 0x2ed   :  { %v2383_v5 = vpop.f32.mrb[16].mxu0  ;;  %4557 = vmatmul.mubr.f32.gmra.mrb[250].mxu1 %v5305_v56  ;;  %v7481_v23 = vpop.f32.mrb[145].mxu1  ;;  %v1234_v8 = vadd.f32 %v7406_v20, %v8506_v33  ;;  %v8509_v33 = vld [vmem:[#allocation149_spill] sm:$0xff] }
 0x2ee   :  { %3054 = vst [vmem:[#allocation8 + $0x38] sm:$0xff] %v2764_v18  ;;  %v3525_v45 = vadd.f32 %v3524_v52, %v2764_v18  ;;  %v3595_v38 = vmul.f32 %v2764_v18, %v2764_v18  ;;  %v4870_v2 = vadd.f32 %v2383_v5, %v1229_v10  ;;  %v2385_v31 = vpop.f32.mrb[17].mxu0  ;;  %2647 = vmatmul.mubr.f32.gmra.mrb[122].mxu0 %v8505_v36 }
 0x2ef   :  { %4559 = vmatprep.mubr.f32.mxu1 %v5306_v19  ;;  %2651 = vmatprep.mubr.f32.mxu0 %v8436_v60  ;;  %v8507_v31 = vld [vmem:[#allocation146_spill] sm:$0xff] }
 0x2f0   :  { %v3658_v17 = vadd.f32 %v3657_v28, %v3595_v38  ;;  %v2769_v48 = vadd.f32 %v4870_v2, %v7442_v27  ;;  %v7488_v53 = vpop.f32.mrb[146].mxu1  ;;  %v8508_v28 = vld [vmem:[#allocation177_spill] sm:$0xff] }
 0x2f1   :  { %v2388_v61 = vpop.f32.mrb[18].mxu0  ;;  %4560 = vmatmul.mubr.f32.gmra.mrb[252].mxu1 %v5307_v55  ;;  %v7490_v52 = vpop.f32.mrb[147].mxu1  ;;  %v1239_v27 = vadd.f32 %v7406_v20, %v8508_v28 }
 0x2f2   :  { %3055 = vst [vmem:[#allocation8 + $0x40] sm:$0xff] %v2769_v48  ;;  %v3526_v10 = vadd.f32 %v3525_v45, %v2769_v48  ;;  %v3596_v18 = vmul.f32 %v2769_v48, %v2769_v48  ;;  %v4872_v5 = vadd.f32 %v2388_v61, %v1234_v8  ;;  %v2390_v56 = vpop.f32.mrb[19].mxu0  ;;  %2652 = vmatmul.mubr.f32.gmra.mrb[124].mxu0 %v8437_v42 }
 0x2f3   :  { %4562 = vmatprep.mubr.f32.mxu1 %v8507_v31  ;;  %2656 = vmatprep.mubr.f32.mxu0 %v8436_v60  ;;  %v8510_v60 = vld [vmem:[#allocation105_spill] sm:$0xff] }
 0x2f4   :  { %v3659_v38 = vadd.f32 %v3658_v17, %v3596_v18  ;;  %v2774_v2 = vadd.f32 %v4872_v5, %v7440_v41  ;;  %v7498_v36 = vpop.f32.mrb[148].mxu1  ;;  %v1244_v56 = vadd.f32 %v7406_v20, %v8510_v60 }
 0x2f5   :  { %v2393_v19 = vpop.f32.mrb[20].mxu0  ;;  %4563 = vmatmul.mubr.f32.gmra.mrb[254].mxu1 %v8509_v33  ;;  %v7501_v45 = vpop.f32.mrb[149].mxu1 }
 0x2f6   :  { %3056 = vst [vmem:[#allocation8 + $0x48] sm:$0xff] %v2774_v2  ;;  %v3527_v8 = vadd.f32 %v3526_v10, %v2774_v2  ;;  %v3597_v48 = vmul.f32 %v2774_v2, %v2774_v2  ;;  %v4874_v61 = vadd.f32 %v2393_v19, %v1239_v27  ;;  %v2395_v55 = vpop.f32.mrb[21].mxu0  ;;  %2657 = vmatmul.mubr.f32.gmra.mrb[126].mxu0 %v8437_v42  ;;  %v8511_v27 = vld [vmem:[#allocation16_spill] sm:$0xff] }
 0x2f7   :  { %v1249_v19 = vadd.f32 %v7406_v20, %v8511_v27 }
 0x2f8   :  { %v3660_v17 = vadd.f32 %v3659_v38, %v3597_v48  ;;  %v2779_v41 = vadd.f32 %v4874_v61, %v7450_v13  ;;  %v7507_v18 = vpop.f32.mrb[150].mxu1 }
 0x2f9   :  { %v2398_v5 = vpop.f32.mrb[22].mxu0  ;;  %v7509_v31 = vpop.f32.mrb[151].mxu1 }
 0x2fa   :  { %3057 = vst [vmem:[#allocation8 + $0x50] sm:$0xff] %v2779_v41  ;;  %v3528_v28 = vadd.f32 %v3527_v8, %v2779_v41  ;;  %v3598_v33 = vmul.f32 %v2779_v41, %v2779_v41  ;;  %v4876_v10 = vadd.f32 %v2398_v5, %v1244_v56  ;;  %v2400_v2 = vpop.f32.mrb[23].mxu0  ;;  %v8512_v8 = vld [vmem:[#allocation106_spill] sm:$0xff] }
 0x2fb   :  { %v1254_v56 = vadd.f32 %v7406_v20, %v8512_v8 }
 0x2fc   :  { %v3661_v42 = vadd.f32 %v3660_v17, %v3598_v33  ;;  %v2784_v55 = vadd.f32 %v4876_v10, %v7448_v12  ;;  %v7514_v60 = vpop.f32.mrb[152].mxu1 }
 0x2fd   :  { %v2403_v38 = vpop.f32.mrb[24].mxu0  ;;  %v7516_v13 = vpop.f32.mrb[153].mxu1 }
 0x2fe   :  { %3058 = vst [vmem:[#allocation8 + $0x58] sm:$0xff] %v2784_v55  ;;  %v3529_v48 = vadd.f32 %v3528_v28, %v2784_v55  ;;  %v3599_v61 = vmul.f32 %v2784_v55, %v2784_v55  ;;  %v4878_v11 = vadd.f32 %v2403_v38, %v1249_v19  ;;  %v2405_v0 = vpop.f32.mrb[25].mxu0  ;;  %v8513_v28 = vld [vmem:[#allocation107_spill] sm:$0xff] }
 0x2ff   :  { %v1259_v19 = vadd.f32 %v7406_v20, %v8513_v28 }
 0x300   :  { %v3662_v41 = vadd.f32 %v3661_v42, %v3599_v61  ;;  %v2789_v5 = vadd.f32 %v4878_v11, %v7461_v62  ;;  %v7521_v2 = vpop.f32.mrb[154].mxu1 }
 0x301   :  { %v2408_v17 = vpop.f32.mrb[26].mxu0  ;;  %v7523_v12 = vpop.f32.mrb[155].mxu1 }
 0x302   :  { %3059 = vst [vmem:[#allocation8 + $0x60] sm:$0xff] %v2789_v5  ;;  %v3530_v33 = vadd.f32 %v3529_v48, %v2789_v5  ;;  %v3600_v10 = vmul.f32 %v2789_v5, %v2789_v5  ;;  %v4880_v27 = vadd.f32 %v2408_v17, %v1254_v56  ;;  %v2410_v43 = vpop.f32.mrb[27].mxu0  ;;  %v8514_v48 = vld [vmem:[#allocation108_spill] sm:$0xff] }
 0x303   :  { %v1264_v56 = vadd.f32 %v7406_v20, %v8514_v48 }
 0x304   :  { %v3663_v0 = vadd.f32 %v3662_v41, %v3600_v10  ;;  %v2794_v55 = vadd.f32 %v4880_v27, %v7459_v50  ;;  %v7528_v38 = vpop.f32.mrb[156].mxu1 }
 0x305   :  { %v2413_v42 = vpop.f32.mrb[28].mxu0  ;;  %v7530_v11 = vpop.f32.mrb[157].mxu1 }
 0x306   :  { %3060 = vst [vmem:[#allocation8 + $0x68] sm:$0xff] %v2794_v55  ;;  %v3531_v62 = vadd.f32 %v3530_v33, %v2794_v55  ;;  %v3601_v61 = vmul.f32 %v2794_v55, %v2794_v55  ;;  %v4882_v8 = vadd.f32 %v2413_v42, %v1259_v19  ;;  %v2415_v3 = vpop.f32.mrb[29].mxu0  ;;  %v8515_v33 = vld [vmem:[#allocation109_spill] sm:$0xff] }
 0x307   :  { %v1269_v19 = vadd.f32 %v7406_v20, %v8515_v33 }
 0x308   :  { %v3664_v43 = vadd.f32 %v3663_v0, %v3601_v61  ;;  %v2799_v5 = vadd.f32 %v4882_v8, %v7470_v29  ;;  %v7535_v17 = vpop.f32.mrb[158].mxu1 }
 0x309   :  { %v2418_v41 = vpop.f32.mrb[30].mxu0  ;;  %v7537_v50 = vpop.f32.mrb[159].mxu1 }
 0x30a   :  { %3061 = vst [vmem:[#allocation8 + $0x70] sm:$0xff] %v2799_v5  ;;  %v3532_v10 = vadd.f32 %v3531_v62, %v2799_v5  ;;  %v3602_v27 = vmul.f32 %v2799_v5, %v2799_v5  ;;  %v4884_v28 = vadd.f32 %v2418_v41, %v1264_v56  ;;  %v2420_v1 = vpop.f32.mrb[31].mxu0  ;;  %v8516_v62 = vld [vmem:[#allocation111_spill] sm:$0xff] }
 0x30b   :  { %v1274_v56 = vadd.f32 %v7406_v20, %v8516_v62 }
 0x30c   :  { %v3665_v3 = vadd.f32 %v3664_v43, %v3602_v27  ;;  %v2804_v55 = vadd.f32 %v4884_v28, %v7468_v21  ;;  %v7542_v42 = vpop.f32.mrb[160].mxu1 }
 0x30d   :  { %v2423_v0 = vpop.f32.mrb[32].mxu0  ;;  %v7544_v29 = vpop.f32.mrb[161].mxu1 }
 0x30e   :  { %3062 = vst [vmem:[#allocation8 + $0x78] sm:$0xff] %v2804_v55  ;;  %v3533_v61 = vadd.f32 %v3532_v10, %v2804_v55  ;;  %v3603_v8 = vmul.f32 %v2804_v55, %v2804_v55  ;;  %v4886_v48 = vadd.f32 %v2423_v0, %v1269_v19  ;;  %v2425_v22 = vpop.f32.mrb[33].mxu0  ;;  %v8517_v10 = vld [vmem:[#allocation112_spill] sm:$0xff] }
 0x30f   :  { %v1279_v19 = vadd.f32 %v7406_v20, %v8517_v10 }
 0x310   :  { %v3666_v1 = vadd.f32 %v3665_v3, %v3603_v8  ;;  %v2809_v5 = vadd.f32 %v4886_v48, %v7481_v23  ;;  %v7549_v41 = vpop.f32.mrb[162].mxu1 }
 0x311   :  { %v2428_v43 = vpop.f32.mrb[34].mxu0  ;;  %v7551_v21 = vpop.f32.mrb[163].mxu1 }
 0x312   :  { %3063 = vst [vmem:[#allocation8 + $0x80] sm:$0xff] %v2809_v5  ;;  %v3534_v27 = vadd.f32 %v3533_v61, %v2809_v5  ;;  %v3604_v28 = vmul.f32 %v2809_v5, %v2809_v5  ;;  %v4888_v33 = vadd.f32 %v2428_v43, %v1274_v56  ;;  %v2430_v16 = vpop.f32.mrb[35].mxu0  ;;  %v8518_v61 = vld [vmem:[#allocation113_spill] sm:$0xff] }
 0x313   :  { %v1284_v56 = vadd.f32 %v7406_v20, %v8518_v61 }
 0x314   :  { %v3667_v22 = vadd.f32 %v3666_v1, %v3604_v28  ;;  %v2814_v55 = vadd.f32 %v4888_v33, %v7479_v39  ;;  %v7556_v0 = vpop.f32.mrb[164].mxu1 }
 0x315   :  { %v2433_v3 = vpop.f32.mrb[36].mxu0  ;;  %v7558_v23 = vpop.f32.mrb[165].mxu1 }
 0x316   :  { %3064 = vst [vmem:[#allocation8 + $0x88] sm:$0xff] %v2814_v55  ;;  %v3535_v8 = vadd.f32 %v3534_v27, %v2814_v55  ;;  %v3605_v48 = vmul.f32 %v2814_v55, %v2814_v55  ;;  %v4890_v62 = vadd.f32 %v2433_v3, %v1279_v19  ;;  %v2435_v58 = vpop.f32.mrb[37].mxu0  ;;  %v8519_v27 = vld [vmem:[#allocation114_spill] sm:$0xff] }
 0x317   :  { %v1289_v19 = vadd.f32 %v7406_v20, %v8519_v27 }
 0x318   :  { %v3668_v16 = vadd.f32 %v3667_v22, %v3605_v48  ;;  %v2819_v5 = vadd.f32 %v4890_v62, %v7490_v52  ;;  %v7563_v43 = vpop.f32.mrb[166].mxu1 }
 0x319   :  { %v2438_v1 = vpop.f32.mrb[38].mxu0  ;;  %v7565_v39 = vpop.f32.mrb[167].mxu1 }
 0x31a   :  { %3065 = vst [vmem:[#allocation8 + $0x90] sm:$0xff] %v2819_v5  ;;  %v3536_v28 = vadd.f32 %v3535_v8, %v2819_v5  ;;  %v3606_v33 = vmul.f32 %v2819_v5, %v2819_v5  ;;  %v4892_v10 = vadd.f32 %v2438_v1, %v1284_v56  ;;  %v2440_v40 = vpop.f32.mrb[39].mxu0  ;;  %v8520_v8 = vld [vmem:[#allocation178_spill] sm:$0xff] }
 0x31b   :  { %v1294_v56 = vadd.f32 %v7406_v20, %v8520_v8 }
 0x31c   :  { %v3669_v58 = vadd.f32 %v3668_v16, %v3606_v33  ;;  %v2824_v55 = vadd.f32 %v4892_v10, %v7488_v53  ;;  %v7570_v3 = vpop.f32.mrb[168].mxu1 }
 0x31d   :  { %v2443_v22 = vpop.f32.mrb[40].mxu0  ;;  %v7572_v52 = vpop.f32.mrb[169].mxu1 }
 0x31e   :  { %3066 = vst [vmem:[#allocation8 + $0x98] sm:$0xff] %v2824_v55  ;;  %v3537_v48 = vadd.f32 %v3536_v28, %v2824_v55  ;;  %v3607_v62 = vmul.f32 %v2824_v55, %v2824_v55  ;;  %v4894_v61 = vadd.f32 %v2443_v22, %v1289_v19  ;;  %v2445_v46 = vpop.f32.mrb[41].mxu0  ;;  %v8521_v28 = vld [vmem:[#allocation179_spill] sm:$0xff] }
 0x31f   :  { %v1299_v19 = vadd.f32 %v7406_v20, %v8521_v28 }
 0x320   :  { %v3670_v40 = vadd.f32 %v3669_v58, %v3607_v62  ;;  %v2829_v5 = vadd.f32 %v4894_v61, %v7501_v45  ;;  %v7577_v1 = vpop.f32.mrb[170].mxu1 }
 0x321   :  { %v2448_v16 = vpop.f32.mrb[42].mxu0  ;;  %v7579_v53 = vpop.f32.mrb[171].mxu1 }
 0x322   :  { %3067 = vst [vmem:[#allocation8 + $0xa0] sm:$0xff] %v2829_v5  ;;  %v3538_v33 = vadd.f32 %v3537_v48, %v2829_v5  ;;  %v3608_v10 = vmul.f32 %v2829_v5, %v2829_v5  ;;  %v4896_v27 = vadd.f32 %v2448_v16, %v1294_v56  ;;  %v2450_v51 = vpop.f32.mrb[43].mxu0  ;;  %v8522_v48 = vld [vmem:[#allocation180_spill] sm:$0xff] }
 0x323   :  { %v1304_v56 = vadd.f32 %v7406_v20, %v8522_v48 }
 0x324   :  { %v3671_v46 = vadd.f32 %v3670_v40, %v3608_v10  ;;  %v2834_v55 = vadd.f32 %v4896_v27, %v7498_v36  ;;  %v7584_v22 = vpop.f32.mrb[172].mxu1 }
 0x325   :  { %v2453_v58 = vpop.f32.mrb[44].mxu0  ;;  %v7586_v45 = vpop.f32.mrb[173].mxu1 }
 0x326   :  { %3068 = vst [vmem:[#allocation8 + $0xa8] sm:$0xff] %v2834_v55  ;;  %v3539_v62 = vadd.f32 %v3538_v33, %v2834_v55  ;;  %v3609_v61 = vmul.f32 %v2834_v55, %v2834_v55  ;;  %v4898_v8 = vadd.f32 %v2453_v58, %v1299_v19  ;;  %v2455_v15 = vpop.f32.mrb[45].mxu0  ;;  %v8523_v33 = vld [vmem:[#allocation181_spill] sm:$0xff] }
 0x327   :  { %v1309_v19 = vadd.f32 %v7406_v20, %v8523_v33 }
 0x328   :  { %v3672_v51 = vadd.f32 %v3671_v46, %v3609_v61  ;;  %v2839_v5 = vadd.f32 %v4898_v8, %v7509_v31  ;;  %v7591_v16 = vpop.f32.mrb[174].mxu1 }
 0x329   :  { %v2458_v40 = vpop.f32.mrb[46].mxu0  ;;  %v7593_v36 = vpop.f32.mrb[175].mxu1 }
 0x32a   :  { %3069 = vst [vmem:[#allocation8 + $0xb0] sm:$0xff] %v2839_v5  ;;  %v3540_v10 = vadd.f32 %v3539_v62, %v2839_v5  ;;  %v3610_v27 = vmul.f32 %v2839_v5, %v2839_v5  ;;  %v4900_v28 = vadd.f32 %v2458_v40, %v1304_v56  ;;  %v2460_v30 = vpop.f32.mrb[47].mxu0  ;;  %v8525_v62 = vld [vmem:[#allocation125_spill] sm:$0xff] }
 0x32b   :  { %v1314_v56 = vadd.f32 %v7406_v20, %v8525_v62 }
 0x32c   :  { %v3673_v15 = vadd.f32 %v3672_v51, %v3610_v27  ;;  %v2844_v55 = vadd.f32 %v4900_v28, %v7507_v18  ;;  %v7598_v58 = vpop.f32.mrb[176].mxu1 }
 0x32d   :  { %8524 = vst [vmem:[#allocation29_spill] sm:$0xff] %v7598_v58  ;;  %v2463_v46 = vpop.f32.mrb[48].mxu0  ;;  %v7600_v31 = vpop.f32.mrb[177].mxu1 }
 0x32e   :  { %3070 = vst [vmem:[#allocation8 + $0xb8] sm:$0xff] %v2844_v55  ;;  %v3541_v61 = vadd.f32 %v3540_v10, %v2844_v55  ;;  %v3611_v8 = vmul.f32 %v2844_v55, %v2844_v55  ;;  %v4902_v48 = vadd.f32 %v2463_v46, %v1309_v19  ;;  %v2465_v44 = vpop.f32.mrb[49].mxu0  ;;  %v8527_v10 = vld [vmem:[#allocation182_spill] sm:$0xff] }
 0x32f   :  { %v1319_v19 = vadd.f32 %v7406_v20, %v8527_v10 }
 0x330   :  { %v3674_v30 = vadd.f32 %v3673_v15, %v3611_v8  ;;  %v2849_v5 = vadd.f32 %v4902_v48, %v7516_v13  ;;  %v7605_v40 = vpop.f32.mrb[178].mxu1 }
 0x331   :  { %8526 = vst [vmem:[#allocation43_spill] sm:$0xff] %v7605_v40  ;;  %v2468_v51 = vpop.f32.mrb[50].mxu0  ;;  %v7607_v18 = vpop.f32.mrb[179].mxu1 }
 0x332   :  { %3071 = vst [vmem:[#allocation8 + $0xc0] sm:$0xff] %v2849_v5  ;;  %v3542_v27 = vadd.f32 %v3541_v61, %v2849_v5  ;;  %v3612_v28 = vmul.f32 %v2849_v5, %v2849_v5  ;;  %v4904_v33 = vadd.f32 %v2468_v51, %v1314_v56  ;;  %v2470_v58 = vpop.f32.mrb[51].mxu0  ;;  %v8529_v61 = vld [vmem:[#allocation130_spill] sm:$0xff] }
 0x333   :  { %v1324_v56 = vadd.f32 %v7406_v20, %v8529_v61 }
 0x334   :  { %v3675_v44 = vadd.f32 %v3674_v30, %v3612_v28  ;;  %v2854_v55 = vadd.f32 %v4904_v33, %v7514_v60  ;;  %v7612_v46 = vpop.f32.mrb[180].mxu1 }
 0x335   :  { %8528 = vst [vmem:[#allocation21_spill] sm:$0xff] %v7612_v46  ;;  %v2473_v15 = vpop.f32.mrb[52].mxu0  ;;  %v7614_v13 = vpop.f32.mrb[181].mxu1 }
 0x336   :  { %3072 = vst [vmem:[#allocation8 + $0xc8] sm:$0xff] %v2854_v55  ;;  %v3543_v8 = vadd.f32 %v3542_v27, %v2854_v55  ;;  %v3613_v48 = vmul.f32 %v2854_v55, %v2854_v55  ;;  %v4906_v62 = vadd.f32 %v2473_v15, %v1319_v19  ;;  %v2475_v40 = vpop.f32.mrb[53].mxu0  ;;  %v8531_v27 = vld [vmem:[#allocation183_spill] sm:$0xff] }
 0x337   :  { %v1329_v19 = vadd.f32 %v7406_v20, %v8531_v27 }
 0x338   :  { %v3676_v58 = vadd.f32 %v3675_v44, %v3613_v48  ;;  %v2859_v5 = vadd.f32 %v4906_v62, %v7523_v12  ;;  %v7619_v51 = vpop.f32.mrb[182].mxu1 }
 0x339   :  { %8530 = vst [vmem:[#allocation46_spill] sm:$0xff] %v7619_v51  ;;  %v2478_v30 = vpop.f32.mrb[54].mxu0  ;;  %v7621_v60 = vpop.f32.mrb[183].mxu1 }
 0x33a   :  { %3073 = vst [vmem:[#allocation8 + $0xd0] sm:$0xff] %v2859_v5  ;;  %v3544_v28 = vadd.f32 %v3543_v8, %v2859_v5  ;;  %v3614_v33 = vmul.f32 %v2859_v5, %v2859_v5  ;;  %v4908_v10 = vadd.f32 %v2478_v30, %v1324_v56  ;;  %v2480_v46 = vpop.f32.mrb[55].mxu0  ;;  %v8533_v8 = vld [vmem:[#allocation135_spill] sm:$0xff] }
 0x33b   :  { %v1334_v56 = vadd.f32 %v7406_v20, %v8533_v8 }
 0x33c   :  { %v3677_v40 = vadd.f32 %v3676_v58, %v3614_v33  ;;  %v2864_v55 = vadd.f32 %v4908_v10, %v7521_v2  ;;  %v7626_v15 = vpop.f32.mrb[184].mxu1 }
 0x33d   :  { %8532 = vst [vmem:[#allocation32_spill] sm:$0xff] %v7626_v15  ;;  %v2483_v44 = vpop.f32.mrb[56].mxu0  ;;  %v7628_v12 = vpop.f32.mrb[185].mxu1 }
 0x33e   :  { %3074 = vst [vmem:[#allocation8 + $0xd8] sm:$0xff] %v2864_v55  ;;  %v3545_v48 = vadd.f32 %v3544_v28, %v2864_v55  ;;  %v3615_v62 = vmul.f32 %v2864_v55, %v2864_v55  ;;  %v4910_v61 = vadd.f32 %v2483_v44, %v1329_v19  ;;  %v2485_v51 = vpop.f32.mrb[57].mxu0  ;;  %v8535_v28 = vld [vmem:[#allocation139_spill] sm:$0xff] }
 0x33f   :  { %v1339_v19 = vadd.f32 %v7406_v20, %v8535_v28 }
 0x340   :  { %v3678_v46 = vadd.f32 %v3677_v40, %v3615_v62  ;;  %v2869_v5 = vadd.f32 %v4910_v61, %v7530_v11  ;;  %v7633_v30 = vpop.f32.mrb[186].mxu1 }
 0x341   :  { %8534 = vst [vmem:[#allocation49_spill] sm:$0xff] %v7633_v30  ;;  %v2488_v58 = vpop.f32.mrb[58].mxu0  ;;  %v7635_v2 = vpop.f32.mrb[187].mxu1 }
 0x342   :  { %3075 = vst [vmem:[#allocation8 + $0xe0] sm:$0xff] %v2869_v5  ;;  %v3546_v33 = vadd.f32 %v3545_v48, %v2869_v5  ;;  %v3616_v10 = vmul.f32 %v2869_v5, %v2869_v5  ;;  %v4912_v27 = vadd.f32 %v2488_v58, %v1334_v56  ;;  %v2490_v15 = vpop.f32.mrb[59].mxu0  ;;  %v8538_v48 = vld [vmem:[#allocation141_spill] sm:$0xff] }
 0x343   :  { %v1344_v56 = vadd.f32 %v7406_v20, %v8538_v48 }
 0x344   :  { %v3679_v51 = vadd.f32 %v3678_v46, %v3616_v10  ;;  %v2874_v55 = vadd.f32 %v4912_v27, %v7528_v38  ;;  %v7640_v44 = vpop.f32.mrb[188].mxu1 }
 0x345   :  { %8536 = vst [vmem:[#allocation24_spill] sm:$0xff] %v7640_v44  ;;  %v2493_v40 = vpop.f32.mrb[60].mxu0  ;;  %v7642_v11 = vpop.f32.mrb[189].mxu1 }
 0x346   :  { %8537 = vst [vmem:[#allocation52_spill] sm:$0xff] %v7642_v11  ;;  %3076 = vst [vmem:[#allocation8 + $0xe8] sm:$0xff] %v2874_v55  ;;  %v3547_v62 = vadd.f32 %v3546_v33, %v2874_v55  ;;  %v3617_v61 = vmul.f32 %v2874_v55, %v2874_v55  ;;  %v4914_v8 = vadd.f32 %v2493_v40, %v1339_v19  ;;  %v2495_v30 = vpop.f32.mrb[61].mxu0 }
 0x347   :  { %v7654_v30 = vld [vmem:[%s7859_s4] ss:$0 sm:$0xff]  ;;  %v4917_v33 = vadd.f32 %v7406_v20, %v7228_v59 }
 0x348   :  { %v3680_v15 = vadd.f32 %v3679_v51, %v3617_v61  ;;  %v2879_v5 = vadd.f32 %v4914_v8, %v7537_v50  ;;  %v7647_v58 = vpop.f32.mrb[190].mxu1 }
 0x349   :  { %8539 = vst [vmem:[#allocation35_spill] sm:$0xff] %v7647_v58  ;;  %v2498_v46 = vpop.f32.mrb[62].mxu0  ;;  %v7649_v38 = vpop.f32.mrb[191].mxu1 }
 0x34a   :  { %8540 = vst [vmem:[#allocation55_spill] sm:$0xff] %v7649_v38  ;;  %3077 = vst [vmem:[#allocation8 + $0xf0] sm:$0xff] %v2879_v5  ;;  %v3548_v10 = vadd.f32 %v3547_v62, %v2879_v5  ;;  %v3618_v27 = vmul.f32 %v2879_v5, %v2879_v5  ;;  %v4916_v28 = vadd.f32 %v2498_v46, %v1344_v56  ;;  %v2500_v44 = vpop.f32.mrb[63].mxu0 }
 0x34b   :  { %v4919_v5 = vadd.f32 %v7406_v20, %v7234_v26  ;;  %v4921_v26 = vadd.f32 %v7406_v20, %v7242_v9 }
 0x34c   :  { %v3681_v19 = vadd.f32 %v3680_v15, %v3618_v27  ;;  %v2884_v50 = vadd.f32 %v4916_v28, %v7535_v17  ;;  %v4471_v51 = vpop.f32.mrb[192].mxu1 }
 0x34d   :  { %v2503_v55 = vpop.f32.mrb[64].mxu0  ;;  %v3206_v40 = vadd.f32 %v4471_v51, %v7654_v30  ;;  %v3200_v61 = vpop.f32.mrb[193].mxu1 }
 0x34e   :  { %3078 = vst [vmem:[#allocation8 + $0xf8] sm:$0xff] %v2884_v50  ;;  %v3549_v62 = vadd.f32 %v3548_v10, %v2884_v50  ;;  %v3619_v8 = vmul.f32 %v2884_v50, %v2884_v50  ;;  %v4918_v44 = vadd.f32 %v4917_v33, %v2503_v55  ;;  %v2505_v48 = vpop.f32.mrb[65].mxu0  ;;  %v3201_v56 = vadd.f32 %v7654_v30, %v3200_v61 }
 0x34f   :  { %v3791_v46 = vmul.f32 %v3206_v40, %v3206_v40 }
 0x350   :  { %v3682_v59 = vadd.f32 %v3681_v19, %v3619_v8  ;;  %v2889_v15 = vadd.f32 %v4918_v44, %v7544_v29  ;;  %v3721_v17 = vadd.f32 %v3206_v40, %v3201_v56  ;;  %v3790_v27 = vmul.f32 %v3201_v56, %v3201_v56  ;;  %v4474_v28 = vpop.f32.mrb[194].mxu1 }
 0x351   :  { %v2508_v58 = vpop.f32.mrb[66].mxu0  ;;  %v3210_v51 = vpop.f32.mrb[195].mxu1  ;;  %v3216_v61 = vadd.f32 %v4474_v28, %v7654_v30 }
 0x352   :  { %3079 = vst [vmem:[#allocation8 + $0x100] sm:$0xff] %v2889_v15  ;;  %v3550_v38 = vadd.f32 %v3549_v62, %v2889_v15  ;;  %v3620_v10 = vmul.f32 %v2889_v15, %v2889_v15  ;;  %v3854_v50 = vadd.f32 %v3791_v46, %v3790_v27  ;;  %v4920_v33 = vadd.f32 %v4919_v5, %v2508_v58  ;;  %v2510_v55 = vpop.f32.mrb[67].mxu0 }
 0x353   :  { %v3211_v48 = vadd.f32 %v7654_v30, %v3210_v51  ;;  %v3793_v27 = vmul.f32 %v3216_v61, %v3216_v61 }
 0x354   :  { %v3683_v19 = vadd.f32 %v3682_v59, %v3620_v10  ;;  %v2894_v29 = vadd.f32 %v4920_v33, %v7542_v42  ;;  %v4477_v40 = vpop.f32.mrb[196].mxu1  ;;  %v4923_v42 = vadd.f32 %v7406_v20, %v7248_v32 }
 0x355   :  { %v3722_v8 = vadd.f32 %v3721_v17, %v3211_v48  ;;  %v3792_v44 = vmul.f32 %v3211_v48, %v3211_v48  ;;  %v2513_v56 = vpop.f32.mrb[68].mxu0  ;;  %v3220_v11 = vpop.f32.mrb[197].mxu1  ;;  %v3226_v9 = vadd.f32 %v4477_v40, %v7654_v30 }
 0x356   :  { %3080 = vst [vmem:[#allocation8 + $0x108] sm:$0xff] %v2894_v29  ;;  %v3551_v62 = vadd.f32 %v3550_v38, %v2894_v29  ;;  %v3621_v46 = vmul.f32 %v2894_v29, %v2894_v29  ;;  %v4922_v58 = vadd.f32 %v4921_v26, %v2513_v56  ;;  %v2515_v5 = vpop.f32.mrb[69].mxu0  ;;  %v3221_v15 = vadd.f32 %v7654_v30, %v3220_v11 }
 0x357   :  { %v3723_v28 = vadd.f32 %v3722_v8, %v3216_v61  ;;  %v3855_v51 = vadd.f32 %v3854_v50, %v3792_v44  ;;  %v3795_v40 = vmul.f32 %v3226_v9, %v3226_v9 }
 0x358   :  { %v3684_v59 = vadd.f32 %v3683_v19, %v3621_v46  ;;  %v2899_v17 = vadd.f32 %v4922_v58, %v7551_v21  ;;  %v3794_v10 = vmul.f32 %v3221_v15, %v3221_v15  ;;  %v4480_v33 = vpop.f32.mrb[198].mxu1  ;;  %v4925_v21 = vadd.f32 %v7406_v20, %v7256_v63 }
 0x359   :  { %v3856_v55 = vadd.f32 %v3855_v51, %v3793_v27  ;;  %v3724_v38 = vadd.f32 %v3723_v28, %v3221_v15  ;;  %v2518_v48 = vpop.f32.mrb[70].mxu0  ;;  %v3230_v26 = vpop.f32.mrb[199].mxu1  ;;  %v3236_v32 = vadd.f32 %v4480_v33, %v7654_v30 }
 0x35a   :  { %3081 = vst [vmem:[#allocation8 + $0x110] sm:$0xff] %v2899_v17  ;;  %v3552_v29 = vadd.f32 %v3551_v62, %v2899_v17  ;;  %v3622_v11 = vmul.f32 %v2899_v17, %v2899_v17  ;;  %v4924_v56 = vadd.f32 %v4923_v42, %v2518_v48  ;;  %v2520_v61 = vpop.f32.mrb[71].mxu0  ;;  %v3231_v50 = vadd.f32 %v7654_v30, %v3230_v26 }
 0x35b   :  { %v3857_v8 = vadd.f32 %v3856_v55, %v3794_v10  ;;  %v3725_v19 = vadd.f32 %v3724_v38, %v3226_v9  ;;  %v3797_v9 = vmul.f32 %v3236_v32, %v3236_v32 }
 0x35c   :  { %v3685_v44 = vadd.f32 %v3684_v59, %v3622_v11  ;;  %v2904_v46 = vadd.f32 %v4924_v56, %v7549_v41  ;;  %v3796_v58 = vmul.f32 %v3231_v50, %v3231_v50  ;;  %v4483_v5 = vpop.f32.mrb[200].mxu1  ;;  %v4927_v41 = vadd.f32 %v7406_v20, %v7262_v14 }
 0x35d   :  { %v3726_v15 = vadd.f32 %v3725_v19, %v3231_v50  ;;  %v3858_v62 = vadd.f32 %v3857_v8, %v3795_v40  ;;  %v2523_v27 = vpop.f32.mrb[72].mxu0  ;;  %v3240_v28 = vpop.f32.mrb[201].mxu1  ;;  %v3246_v63 = vadd.f32 %v4483_v5, %v7654_v30 }
 0x35e   :  { %3082 = vst [vmem:[#allocation8 + $0x118] sm:$0xff] %v2904_v46  ;;  %v3553_v51 = vadd.f32 %v3552_v29, %v2904_v46  ;;  %v3623_v42 = vmul.f32 %v2904_v46, %v2904_v46  ;;  %v4926_v17 = vadd.f32 %v4925_v21, %v2523_v27  ;;  %v2525_v10 = vpop.f32.mrb[73].mxu0  ;;  %v3241_v33 = vadd.f32 %v7654_v30, %v3240_v28 }
 0x35f   :  { %v3859_v55 = vadd.f32 %v3858_v62, %v3796_v58  ;;  %v3727_v59 = vadd.f32 %v3726_v15, %v3236_v32  ;;  %v3799_v32 = vmul.f32 %v3246_v63, %v3246_v63 }
 0x360   :  { %v3686_v38 = vadd.f32 %v3685_v44, %v3623_v42  ;;  %v2909_v48 = vadd.f32 %v4926_v17, %v7558_v23  ;;  %v3798_v26 = vmul.f32 %v3241_v33, %v3241_v33  ;;  %v4486_v11 = vpop.f32.mrb[202].mxu1  ;;  %v4929_v23 = vadd.f32 %v7406_v20, %v7270_v4 }
 0x361   :  { %v3728_v56 = vadd.f32 %v3727_v59, %v3241_v33  ;;  %v3860_v29 = vadd.f32 %v3859_v55, %v3797_v9  ;;  %v2528_v61 = vpop.f32.mrb[74].mxu0  ;;  %v3250_v50 = vpop.f32.mrb[203].mxu1  ;;  %v3256_v14 = vadd.f32 %v4486_v11, %v7654_v30 }
 0x362   :  { %3083 = vst [vmem:[#allocation8 + $0x120] sm:$0xff] %v2909_v48  ;;  %v3554_v40 = vadd.f32 %v3553_v51, %v2909_v48  ;;  %v3624_v8 = vmul.f32 %v2909_v48, %v2909_v48  ;;  %v4928_v19 = vadd.f32 %v4927_v41, %v2528_v61  ;;  %v2530_v21 = vpop.f32.mrb[75].mxu0  ;;  %v3251_v46 = vadd.f32 %v7654_v30, %v3250_v50 }
 0x363   :  { %v3861_v58 = vadd.f32 %v3860_v29, %v3798_v26  ;;  %v3729_v44 = vadd.f32 %v3728_v56, %v3246_v63  ;;  %v3801_v63 = vmul.f32 %v3256_v14, %v3256_v14 }
 0x364   :  { %v3687_v5 = vadd.f32 %v3686_v38, %v3624_v8  ;;  %v2914_v15 = vadd.f32 %v4928_v19, %v7556_v0  ;;  %v3800_v62 = vmul.f32 %v3251_v46, %v3251_v46  ;;  %v4489_v27 = vpop.f32.mrb[204].mxu1  ;;  %v7694_v0 = vld [vmem:[%s7857_s2] ss:$0 sm:$0xff] }
 0x365   :  { %v3730_v28 = vadd.f32 %v3729_v44, %v3251_v46  ;;  %v3862_v51 = vadd.f32 %v3861_v58, %v3799_v32  ;;  %v2533_v42 = vpop.f32.mrb[76].mxu0  ;;  %v3260_v17 = vpop.f32.mrb[205].mxu1  ;;  %v3266_v4 = vadd.f32 %v4489_v27, %v7654_v30  ;;  %v4931_v38 = vadd.f32 %v7694_v0, %v7276_v57 }
 0x366   :  { %3084 = vst [vmem:[#allocation8 + $0x128] sm:$0xff] %v2914_v15  ;;  %v3555_v10 = vadd.f32 %v3554_v40, %v2914_v15  ;;  %v3625_v33 = vmul.f32 %v2914_v15, %v2914_v15  ;;  %v4930_v9 = vadd.f32 %v4929_v23, %v2533_v42  ;;  %v2535_v55 = vpop.f32.mrb[77].mxu0  ;;  %v3261_v59 = vadd.f32 %v7654_v30, %v3260_v17 }
 0x367   :  { %v3863_v41 = vadd.f32 %v3862_v51, %v3800_v62  ;;  %v3731_v20 = vadd.f32 %v3730_v28, %v3256_v14  ;;  %v3803_v58 = vmul.f32 %v3266_v4, %v3266_v4 }
 0x368   :  { %v3688_v48 = vadd.f32 %v3687_v5, %v3625_v33  ;;  %v2919_v26 = vadd.f32 %v4930_v9, %v7565_v39  ;;  %v3802_v11 = vmul.f32 %v3261_v59, %v3261_v59  ;;  %v4492_v56 = vpop.f32.mrb[206].mxu1  ;;  %v4933_v39 = vadd.f32 %v7694_v0, %v7284_v34 }
 0x369   :  { %v3732_v29 = vadd.f32 %v3731_v20, %v3261_v59  ;;  %v3864_v61 = vadd.f32 %v3863_v41, %v3801_v63  ;;  %v2538_v50 = vpop.f32.mrb[78].mxu0  ;;  %v3270_v40 = vpop.f32.mrb[207].mxu1  ;;  %v3276_v57 = vadd.f32 %v4492_v56, %v7654_v30 }
 0x36a   :  { %3085 = vst [vmem:[#allocation8 + $0x130] sm:$0xff] %v2919_v26  ;;  %v3556_v8 = vadd.f32 %v3555_v10, %v2919_v26  ;;  %v3626_v19 = vmul.f32 %v2919_v26, %v2919_v26  ;;  %v4932_v21 = vadd.f32 %v4931_v38, %v2538_v50  ;;  %v2540_v46 = vpop.f32.mrb[79].mxu0  ;;  %v3271_v32 = vadd.f32 %v7654_v30, %v3270_v40 }
 0x36b   :  { %v3865_v14 = vadd.f32 %v3864_v61, %v3802_v11  ;;  %v3733_v44 = vadd.f32 %v3732_v29, %v3266_v4  ;;  %v3805_v59 = vmul.f32 %v3276_v57, %v3276_v57 }
 0x36c   :  { %v3689_v23 = vadd.f32 %v3688_v48, %v3626_v19  ;;  %v2924_v5 = vadd.f32 %v4932_v21, %v7563_v43  ;;  %v3804_v15 = vmul.f32 %v3271_v32, %v3271_v32  ;;  %v4495_v62 = vpop.f32.mrb[208].mxu1  ;;  %v4935_v43 = vadd.f32 %v7694_v0, %v7290_v7 }
 0x36d   :  { %v3734_v27 = vadd.f32 %v3733_v44, %v3271_v32  ;;  %v3866_v28 = vadd.f32 %v3865_v14, %v3803_v58  ;;  %v2543_v51 = vpop.f32.mrb[80].mxu0  ;;  %v3280_v42 = vpop.f32.mrb[209].mxu1  ;;  %v3286_v34 = vadd.f32 %v4495_v62, %v7654_v30 }
 0x36e   :  { %3086 = vst [vmem:[#allocation8 + $0x138] sm:$0xff] %v2924_v5  ;;  %v3557_v17 = vadd.f32 %v3556_v8, %v2924_v5  ;;  %v3627_v10 = vmul.f32 %v2924_v5, %v2924_v5  ;;  %v4934_v33 = vadd.f32 %v4933_v39, %v2543_v51  ;;  %v2545_v9 = vpop.f32.mrb[81].mxu0  ;;  %v3281_v55 = vadd.f32 %v7654_v30, %v3280_v42 }
 0x36f   :  { %v3867_v63 = vadd.f32 %v3866_v28, %v3804_v15  ;;  %v3735_v41 = vadd.f32 %v3734_v27, %v3276_v57  ;;  %v3807_v21 = vmul.f32 %v3286_v34, %v3286_v34 }
 0x370   :  { %v3690_v4 = vadd.f32 %v3689_v23, %v3627_v10  ;;  %v2929_v20 = vadd.f32 %v4934_v33, %v7572_v52  ;;  %v3806_v38 = vmul.f32 %v3281_v55, %v3281_v55  ;;  %v4498_v48 = vpop.f32.mrb[210].mxu1  ;;  %v4937_v52 = vadd.f32 %v7694_v0, %v7296_v49 }
 0x371   :  { %v3736_v26 = vadd.f32 %v3735_v41, %v3281_v55  ;;  %v3868_v11 = vadd.f32 %v3867_v63, %v3805_v59  ;;  %v2548_v56 = vpop.f32.mrb[82].mxu0  ;;  %v3290_v29 = vpop.f32.mrb[211].mxu1  ;;  %v3296_v7 = vadd.f32 %v4498_v48, %v7654_v30 }
 0x372   :  { %3087 = vst [vmem:[#allocation8 + $0x140] sm:$0xff] %v2929_v20  ;;  %v3558_v61 = vadd.f32 %v3557_v17, %v2929_v20  ;;  %v3628_v50 = vmul.f32 %v2929_v20, %v2929_v20  ;;  %v4936_v40 = vadd.f32 %v4935_v43, %v2548_v56  ;;  %v2550_v8 = vpop.f32.mrb[83].mxu0  ;;  %v3291_v19 = vadd.f32 %v7654_v30, %v3290_v29 }
 0x373   :  { %v3869_v46 = vadd.f32 %v3868_v11, %v3806_v38  ;;  %v3737_v32 = vadd.f32 %v3736_v26, %v3286_v34  ;;  %v3809_v17 = vmul.f32 %v3296_v7, %v3296_v7 }
 0x374   :  { %v3691_v58 = vadd.f32 %v3690_v4, %v3628_v50  ;;  %v2934_v14 = vadd.f32 %v4936_v40, %v7570_v3  ;;  %v3808_v57 = vmul.f32 %v3291_v19, %v3291_v19  ;;  %v4501_v44 = vpop.f32.mrb[212].mxu1  ;;  %v4939_v3 = vadd.f32 %v7694_v0, %v7301_v24 }
 0x375   :  { %v3738_v39 = vadd.f32 %v3737_v32, %v3291_v19  ;;  %v3870_v23 = vadd.f32 %v3869_v46, %v3807_v21  ;;  %v2553_v5 = vpop.f32.mrb[84].mxu0  ;;  %v3300_v15 = vpop.f32.mrb[213].mxu1  ;;  %v3306_v49 = vadd.f32 %v4501_v44, %v7654_v30 }
 0x376   :  { %3088 = vst [vmem:[#allocation8 + $0x148] sm:$0xff] %v2934_v14  ;;  %v3559_v62 = vadd.f32 %v3558_v61, %v2934_v14  ;;  %v3629_v27 = vmul.f32 %v2934_v14, %v2934_v14  ;;  %v4938_v28 = vadd.f32 %v4937_v52, %v2553_v5  ;;  %v2555_v51 = vpop.f32.mrb[85].mxu0  ;;  %v3301_v42 = vadd.f32 %v7654_v30, %v3300_v15 }
 0x377   :  { %v3871_v10 = vadd.f32 %v3870_v23, %v3808_v57  ;;  %v3739_v33 = vadd.f32 %v3738_v39, %v3296_v7  ;;  %v3811_v56 = vmul.f32 %v3306_v49, %v3306_v49 }
 0x378   :  { %v3692_v9 = vadd.f32 %v3691_v58, %v3629_v27  ;;  %v2939_v55 = vadd.f32 %v4938_v28, %v7579_v53  ;;  %v3810_v59 = vmul.f32 %v3301_v42, %v3301_v42  ;;  %v4504_v63 = vpop.f32.mrb[214].mxu1  ;;  %v4941_v53 = vadd.f32 %v7694_v0, %v7307_v25 }
 0x379   :  { %v3740_v34 = vadd.f32 %v3739_v33, %v3301_v42  ;;  %v3872_v41 = vadd.f32 %v3871_v10, %v3809_v17  ;;  %v2558_v43 = vpop.f32.mrb[86].mxu0  ;;  %v3310_v4 = vpop.f32.mrb[215].mxu1  ;;  %v3316_v24 = vadd.f32 %v4504_v63, %v7654_v30 }
 0x37a   :  { %3089 = vst [vmem:[#allocation8 + $0x150] sm:$0xff] %v2939_v55  ;;  %v3560_v20 = vadd.f32 %v3559_v62, %v2939_v55  ;;  %v3630_v38 = vmul.f32 %v2939_v55, %v2939_v55  ;;  %v4940_v48 = vadd.f32 %v4939_v3, %v2558_v43  ;;  %v2560_v26 = vpop.f32.mrb[87].mxu0  ;;  %v3311_v11 = vadd.f32 %v7654_v30, %v3310_v4 }
 0x37b   :  { %v3873_v29 = vadd.f32 %v3872_v41, %v3810_v59  ;;  %v3741_v61 = vadd.f32 %v3740_v34, %v3306_v49  ;;  %v3813_v39 = vmul.f32 %v3316_v24, %v3316_v24 }
 0x37c   :  { %v3693_v50 = vadd.f32 %v3692_v9, %v3630_v38  ;;  %v2944_v40 = vadd.f32 %v4940_v48, %v7577_v1  ;;  %v3812_v8 = vmul.f32 %v3311_v11, %v3311_v11  ;;  %v4507_v19 = vpop.f32.mrb[216].mxu1  ;;  %v4943_v1 = vadd.f32 %v7694_v0, %v7311_v54 }
 0x37d   :  { %v3742_v21 = vadd.f32 %v3741_v61, %v3311_v11  ;;  %v3874_v46 = vadd.f32 %v3873_v29, %v3811_v56  ;;  %v2563_v7 = vpop.f32.mrb[88].mxu0  ;;  %v3320_v32 = vpop.f32.mrb[217].mxu1  ;;  %v3326_v25 = vadd.f32 %v4507_v19, %v7654_v30 }
 0x37e   :  { %3090 = vst [vmem:[#allocation8 + $0x158] sm:$0xff] %v2944_v40  ;;  %v3561_v52 = vadd.f32 %v3560_v20, %v2944_v40  ;;  %v3631_v58 = vmul.f32 %v2944_v40, %v2944_v40  ;;  %v4942_v14 = vadd.f32 %v4941_v53, %v2563_v7  ;;  %v2565_v57 = vpop.f32.mrb[89].mxu0  ;;  %v3321_v44 = vadd.f32 %v7654_v30, %v3320_v32 }
 0x37f   :  { %v3875_v23 = vadd.f32 %v3874_v46, %v3812_v8  ;;  %v3743_v5 = vadd.f32 %v3742_v21, %v3316_v24  ;;  %v3815_v59 = vmul.f32 %v3326_v25, %v3326_v25 }
 0x380   :  { %v3694_v15 = vadd.f32 %v3693_v50, %v3631_v58  ;;  %v2949_v62 = vadd.f32 %v4942_v14, %v7586_v45  ;;  %v3814_v27 = vmul.f32 %v3321_v44, %v3321_v44  ;;  %v4510_v28 = vpop.f32.mrb[218].mxu1  ;;  %v4945_v45 = vadd.f32 %v7694_v0, %v7317_v47 }
 0x381   :  { %v3744_v51 = vadd.f32 %v3743_v5, %v3321_v44  ;;  %v3876_v42 = vadd.f32 %v3875_v23, %v3813_v39  ;;  %v2568_v17 = vpop.f32.mrb[90].mxu0  ;;  %v3330_v10 = vpop.f32.mrb[219].mxu1  ;;  %v3336_v54 = vadd.f32 %v4510_v28, %v7654_v30 }
 0x382   :  { %3091 = vst [vmem:[#allocation8 + $0x160] sm:$0xff] %v2949_v62  ;;  %v3562_v49 = vadd.f32 %v3561_v52, %v2949_v62  ;;  %v3632_v33 = vmul.f32 %v2949_v62, %v2949_v62  ;;  %v4944_v3 = vadd.f32 %v4943_v1, %v2568_v17  ;;  %v2570_v9 = vpop.f32.mrb[91].mxu0  ;;  %v3331_v55 = vadd.f32 %v7654_v30, %v3330_v10 }
 0x383   :  { %v3877_v63 = vadd.f32 %v3876_v42, %v3814_v27  ;;  %v3745_v34 = vadd.f32 %v3744_v51, %v3326_v25  ;;  %v3817_v50 = vmul.f32 %v3336_v54, %v3336_v54 }
 0x384   :  { %v3695_v41 = vadd.f32 %v3694_v15, %v3632_v33  ;;  %v2954_v43 = vadd.f32 %v4944_v3, %v7584_v22  ;;  %v3816_v4 = vmul.f32 %v3331_v55, %v3331_v55  ;;  %v4513_v20 = vpop.f32.mrb[220].mxu1  ;;  %v4947_v22 = vadd.f32 %v7694_v0, %v7321_v35 }
 0x385   :  { %v3746_v38 = vadd.f32 %v3745_v34, %v3331_v55  ;;  %v3878_v48 = vadd.f32 %v3877_v63, %v3815_v59  ;;  %v2573_v26 = vpop.f32.mrb[92].mxu0  ;;  %v3340_v11 = vpop.f32.mrb[221].mxu1  ;;  %v3346_v47 = vadd.f32 %v4513_v20, %v7654_v30 }
 0x386   :  { %3092 = vst [vmem:[#allocation8 + $0x168] sm:$0xff] %v2954_v43  ;;  %v3563_v56 = vadd.f32 %v3562_v49, %v2954_v43  ;;  %v3633_v29 = vmul.f32 %v2954_v43, %v2954_v43  ;;  %v4946_v24 = vadd.f32 %v4945_v45, %v2573_v26  ;;  %v2575_v61 = vpop.f32.mrb[93].mxu0  ;;  %v3341_v53 = vadd.f32 %v7654_v30, %v3340_v11 }
 0x387   :  { %v3879_v40 = vadd.f32 %v3878_v48, %v3816_v4  ;;  %v3747_v8 = vadd.f32 %v3746_v38, %v3336_v54  ;;  %v3819_v5 = vmul.f32 %v3346_v47, %v3346_v47 }
 0x388   :  { %v3696_v19 = vadd.f32 %v3695_v41, %v3633_v29  ;;  %v2959_v21 = vadd.f32 %v4946_v24, %v7593_v36  ;;  %v3818_v46 = vmul.f32 %v3341_v53, %v3341_v53  ;;  %v4516_v7 = vpop.f32.mrb[222].mxu1  ;;  %v4949_v36 = vadd.f32 %v7694_v0, %v7327_v6 }
 0x389   :  { %v3748_v32 = vadd.f32 %v3747_v8, %v3341_v53  ;;  %v3880_v52 = vadd.f32 %v3879_v40, %v3817_v50  ;;  %v2578_v58 = vpop.f32.mrb[94].mxu0  ;;  %v3350_v14 = vpop.f32.mrb[223].mxu1  ;;  %v3356_v35 = vadd.f32 %v4516_v7, %v7654_v30 }
 0x38a   :  { %3093 = vst [vmem:[#allocation8 + $0x170] sm:$0xff] %v2959_v21  ;;  %v3564_v57 = vadd.f32 %v3563_v56, %v2959_v21  ;;  %v3634_v44 = vmul.f32 %v2959_v21, %v2959_v21  ;;  %v4948_v39 = vadd.f32 %v4947_v22, %v2578_v58  ;;  %v2580_v23 = vpop.f32.mrb[95].mxu0  ;;  %v3351_v25 = vadd.f32 %v7654_v30, %v3350_v14  ;;  %v8542_v22 = vld [vmem:[#allocation29_spill] sm:$0xff] }
 0x38b   :  { %v3881_v1 = vadd.f32 %v3880_v52, %v3818_v46  ;;  %v3749_v15 = vadd.f32 %v3748_v32, %v3346_v47  ;;  %v3821_v63 = vmul.f32 %v3356_v35, %v3356_v35  ;;  %v8541_v47 = vld [vmem:[#allocation170_spill] sm:$0xff] }
 0x38c   :  { %v3697_v62 = vadd.f32 %v3696_v19, %v3634_v44  ;;  %v2964_v27 = vadd.f32 %v4948_v39, %v7591_v16  ;;  %v3820_v28 = vmul.f32 %v3351_v25, %v3351_v25  ;;  %v4519_v51 = vpop.f32.mrb[224].mxu1  ;;  %v4951_v16 = vadd.f32 %v7694_v0, %v7331_v37 }
 0x38d   :  { %v3750_v42 = vadd.f32 %v3749_v15, %v3351_v25  ;;  %v3882_v17 = vadd.f32 %v3881_v1, %v3819_v5  ;;  %v2583_v10 = vpop.f32.mrb[96].mxu0  ;;  %v3360_v49 = vpop.f32.mrb[225].mxu1  ;;  %v3366_v6 = vadd.f32 %v4519_v51, %v7654_v30  ;;  %v8543_v15 = vld [vmem:[#allocation22_spill] sm:$0xff] }
 0x38e   :  { %3094 = vst [vmem:[#allocation8 + $0x178] sm:$0xff] %v2964_v27  ;;  %v3565_v33 = vadd.f32 %v3564_v57, %v2964_v27  ;;  %v3635_v3 = vmul.f32 %v2964_v27, %v2964_v27  ;;  %v4950_v9 = vadd.f32 %v4949_v36, %v2583_v10  ;;  %v2585_v55 = vpop.f32.mrb[97].mxu0  ;;  %v3361_v59 = vadd.f32 %v7654_v30, %v3360_v49 }
 0x38f   :  { %v3883_v54 = vadd.f32 %v3882_v17, %v3820_v28  ;;  %v3751_v34 = vadd.f32 %v3750_v42, %v3356_v35  ;;  %v3823_v53 = vmul.f32 %v3366_v6, %v3366_v6  ;;  %v4955_v36 = vadd.f32 %v7694_v0, %v8543_v15  ;;  %v8547_v15 = vld [vmem:[#allocation17_spill] sm:$0xff] }
 0x390   :  { %v3698_v45 = vadd.f32 %v3697_v62, %v3635_v3  ;;  %v2969_v41 = vadd.f32 %v4950_v9, %v7600_v31  ;;  %v3822_v43 = vmul.f32 %v3361_v59, %v3361_v59  ;;  %v4522_v4 = vpop.f32.mrb[226].mxu1  ;;  %v4953_v31 = vadd.f32 %v7694_v0, %v8541_v47 }
 0x391   :  { %v3752_v20 = vadd.f32 %v3751_v34, %v3361_v59  ;;  %v3884_v38 = vadd.f32 %v3883_v54, %v3821_v63  ;;  %v2588_v48 = vpop.f32.mrb[98].mxu0  ;;  %v3370_v26 = vpop.f32.mrb[227].mxu1  ;;  %v3376_v37 = vadd.f32 %v4522_v4, %v7654_v30 }
 0x392   :  { %3095 = vst [vmem:[#allocation8 + $0x180] sm:$0xff] %v2969_v41  ;;  %v3566_v11 = vadd.f32 %v3565_v33, %v2969_v41  ;;  %v3636_v56 = vmul.f32 %v2969_v41, %v2969_v41  ;;  %v4952_v29 = vadd.f32 %v4951_v16, %v2588_v48  ;;  %v2590_v24 = vpop.f32.mrb[99].mxu0  ;;  %v3371_v61 = vadd.f32 %v7654_v30, %v3370_v26  ;;  %v8544_v16 = vld [vmem:[#allocation20_spill] sm:$0xff]  ;;  %v8545_v41 = vld [vmem:[#allocation43_spill] sm:$0xff] }
 0x393   :  { %v3885_v50 = vadd.f32 %v3884_v38, %v3822_v43  ;;  %v3753_v40 = vadd.f32 %v3752_v20, %v3366_v6  ;;  %v3825_v25 = vmul.f32 %v3376_v37, %v3376_v37 }
 0x394   :  { %v3699_v8 = vadd.f32 %v3698_v45, %v3636_v56  ;;  %v2974_v19 = vadd.f32 %v4952_v29, %v8542_v22  ;;  %v3824_v21 = vmul.f32 %v3371_v61, %v3371_v61  ;;  %v4525_v46 = vpop.f32.mrb[228].mxu1 }
 0x395   :  { %v3754_v7 = vadd.f32 %v3753_v40, %v3371_v61  ;;  %v3886_v32 = vadd.f32 %v3885_v50, %v3823_v53  ;;  %v2593_v52 = vpop.f32.mrb[100].mxu0  ;;  %v3380_v58 = vpop.f32.mrb[229].mxu1  ;;  %v3386_v1 = vadd.f32 %v4525_v46, %v7654_v30 }
 0x396   :  { %3096 = vst [vmem:[#allocation8 + $0x188] sm:$0xff] %v2974_v19  ;;  %v3567_v14 = vadd.f32 %v3566_v11, %v2974_v19  ;;  %v3637_v57 = vmul.f32 %v2974_v19, %v2974_v19  ;;  %v4954_v44 = vadd.f32 %v4953_v31, %v2593_v52  ;;  %v2595_v39 = vpop.f32.mrb[101].mxu0  ;;  %v3381_v23 = vadd.f32 %v7654_v30, %v3380_v58  ;;  %v8546_v31 = vld [vmem:[#allocation25_spill] sm:$0xff] }
 0x397   :  { %v3887_v5 = vadd.f32 %v3886_v32, %v3824_v21  ;;  %v3755_v35 = vadd.f32 %v3754_v7, %v3376_v37  ;;  %v3827_v63 = vmul.f32 %v3386_v1, %v3386_v1 }
 0x398   :  { %v3700_v62 = vadd.f32 %v3699_v8, %v3637_v57  ;;  %v2979_v27 = vadd.f32 %v4954_v44, %v7607_v18  ;;  %v3826_v28 = vmul.f32 %v3381_v23, %v3381_v23  ;;  %v4528_v51 = vpop.f32.mrb[230].mxu1  ;;  %v4957_v18 = vadd.f32 %v7694_v0, %v8544_v16  ;;  %v8549_v16 = vld [vmem:[#allocation23_spill] sm:$0xff] }
 0x399   :  { %v3756_v42 = vadd.f32 %v3755_v35, %v3381_v23  ;;  %v3888_v17 = vadd.f32 %v3887_v5, %v3825_v25  ;;  %v2598_v10 = vpop.f32.mrb[102].mxu0  ;;  %v3390_v49 = vpop.f32.mrb[231].mxu1  ;;  %v3396_v6 = vadd.f32 %v4528_v51, %v7654_v30  ;;  %v4959_v8 = vadd.f32 %v7694_v0, %v8546_v31 }
 0x39a   :  { %3097 = vst [vmem:[#allocation8 + $0x190] sm:$0xff] %v2979_v27  ;;  %v3568_v33 = vadd.f32 %v3567_v14, %v2979_v27  ;;  %v3638_v3 = vmul.f32 %v2979_v27, %v2979_v27  ;;  %v4956_v9 = vadd.f32 %v4955_v36, %v2598_v10  ;;  %v2600_v55 = vpop.f32.mrb[103].mxu0  ;;  %v3391_v59 = vadd.f32 %v7654_v30, %v3390_v49 }
 0x39b   :  { %v3889_v54 = vadd.f32 %v3888_v17, %v3826_v28  ;;  %v3757_v34 = vadd.f32 %v3756_v42, %v3386_v1  ;;  %v3829_v50 = vmul.f32 %v3396_v6, %v3396_v6 }
 0x39c   :  { %v3701_v45 = vadd.f32 %v3700_v62, %v3638_v3  ;;  %v2984_v43 = vadd.f32 %v4956_v9, %v8545_v41  ;;  %v3828_v4 = vmul.f32 %v3391_v59, %v3391_v59  ;;  %v4531_v20 = vpop.f32.mrb[232].mxu1  ;;  %v8548_v62 = vld [vmem:[#allocation21_spill] sm:$0xff] }
 0x39d   :  { %v3758_v38 = vadd.f32 %v3757_v34, %v3391_v59  ;;  %v3890_v48 = vadd.f32 %v3889_v54, %v3827_v63  ;;  %v2603_v26 = vpop.f32.mrb[104].mxu0  ;;  %v3400_v11 = vpop.f32.mrb[233].mxu1  ;;  %v3406_v40 = vadd.f32 %v4531_v20, %v7654_v30 }
 0x39e   :  { %3098 = vst [vmem:[#allocation8 + $0x198] sm:$0xff] %v2984_v43  ;;  %v3569_v56 = vadd.f32 %v3568_v33, %v2984_v43  ;;  %v3639_v29 = vmul.f32 %v2984_v43, %v2984_v43  ;;  %v4958_v24 = vadd.f32 %v4957_v18, %v2603_v26  ;;  %v2605_v61 = vpop.f32.mrb[105].mxu0  ;;  %v3401_v53 = vadd.f32 %v7654_v30, %v3400_v11 }
 0x39f   :  { %v3891_v37 = vadd.f32 %v3890_v48, %v3828_v4  ;;  %v3759_v47 = vadd.f32 %v3758_v38, %v3396_v6  ;;  %v3831_v25 = vmul.f32 %v3406_v40, %v3406_v40  ;;  %v4963_v18 = vadd.f32 %v7694_v0, %v8549_v16  ;;  %v8554_v16 = vld [vmem:[#allocation32_spill] sm:$0xff] }
 0x3a0   :  { %v3702_v22 = vadd.f32 %v3701_v45, %v3639_v29  ;;  %v2989_v19 = vadd.f32 %v4958_v24, %v7614_v13  ;;  %v3830_v21 = vmul.f32 %v3401_v53, %v3401_v53  ;;  %v4534_v46 = vpop.f32.mrb[234].mxu1  ;;  %v4961_v13 = vadd.f32 %v7694_v0, %v8547_v15 }
 0x3a1   :  { %v3760_v7 = vadd.f32 %v3759_v47, %v3401_v53  ;;  %v3892_v32 = vadd.f32 %v3891_v37, %v3829_v50  ;;  %v2608_v52 = vpop.f32.mrb[106].mxu0  ;;  %v3410_v58 = vpop.f32.mrb[235].mxu1  ;;  %v3416_v1 = vadd.f32 %v4534_v46, %v7654_v30  ;;  %v8550_v47 = vld [vmem:[#allocation28_spill] sm:$0xff] }
 0x3a2   :  { %3099 = vst [vmem:[#allocation8 + $0x1a0] sm:$0xff] %v2989_v19  ;;  %v3570_v14 = vadd.f32 %v3569_v56, %v2989_v19  ;;  %v3640_v57 = vmul.f32 %v2989_v19, %v2989_v19  ;;  %v4960_v44 = vadd.f32 %v4959_v8, %v2608_v52  ;;  %v2610_v39 = vpop.f32.mrb[107].mxu0  ;;  %v3411_v23 = vadd.f32 %v7654_v30, %v3410_v58  ;;  %v8551_v8 = vld [vmem:[#allocation46_spill] sm:$0xff] }
 0x3a3   :  { %v3893_v5 = vadd.f32 %v3892_v32, %v3830_v21  ;;  %v3761_v35 = vadd.f32 %v3760_v7, %v3406_v40  ;;  %v3833_v63 = vmul.f32 %v3416_v1, %v3416_v1 }
 0x3a4   :  { %v3703_v36 = vadd.f32 %v3702_v22, %v3640_v57  ;;  %v2994_v27 = vadd.f32 %v4960_v44, %v8548_v62  ;;  %v3832_v28 = vmul.f32 %v3411_v23, %v3411_v23  ;;  %v4537_v51 = vpop.f32.mrb[236].mxu1 }
 0x3a5   :  { %v3762_v42 = vadd.f32 %v3761_v35, %v3411_v23  ;;  %v3894_v17 = vadd.f32 %v3893_v5, %v3831_v25  ;;  %v2613_v10 = vpop.f32.mrb[108].mxu0  ;;  %v3420_v49 = vpop.f32.mrb[237].mxu1  ;;  %v3426_v6 = vadd.f32 %v4537_v51, %v7654_v30  ;;  %v8552_v35 = vld [vmem:[#allocation31_spill] sm:$0xff] }
 0x3a6   :  { %3100 = vst [vmem:[#allocation8 + $0x1a8] sm:$0xff] %v2994_v27  ;;  %v3571_v33 = vadd.f32 %v3570_v14, %v2994_v27  ;;  %v3641_v3 = vmul.f32 %v2994_v27, %v2994_v27  ;;  %v4962_v9 = vadd.f32 %v4961_v13, %v2613_v10  ;;  %v2615_v55 = vpop.f32.mrb[109].mxu0  ;;  %v3421_v59 = vadd.f32 %v7654_v30, %v3420_v49 }
 0x3a7   :  { %v3895_v54 = vadd.f32 %v3894_v17, %v3832_v28  ;;  %v3763_v34 = vadd.f32 %v3762_v42, %v3416_v1  ;;  %v3835_v53 = vmul.f32 %v3426_v6, %v3426_v6  ;;  %v4967_v15 = vadd.f32 %v7694_v0, %v8552_v35 }
 0x3a8   :  { %v3704_v45 = vadd.f32 %v3703_v36, %v3641_v3  ;;  %v2999_v41 = vadd.f32 %v4962_v9, %v7621_v60  ;;  %v3834_v43 = vmul.f32 %v3421_v59, %v3421_v59  ;;  %v4540_v4 = vpop.f32.mrb[238].mxu1  ;;  %v4965_v60 = vadd.f32 %v7694_v0, %v8550_v47 }
 0x3a9   :  { %v3764_v20 = vadd.f32 %v3763_v34, %v3421_v59  ;;  %v3896_v38 = vadd.f32 %v3895_v54, %v3833_v63  ;;  %v2618_v48 = vpop.f32.mrb[110].mxu0  ;;  %v3430_v26 = vpop.f32.mrb[239].mxu1  ;;  %v3436_v37 = vadd.f32 %v4540_v4, %v7654_v30 }
 0x3aa   :  { %3101 = vst [vmem:[#allocation8 + $0x1b0] sm:$0xff] %v2999_v41  ;;  %v3572_v11 = vadd.f32 %v3571_v33, %v2999_v41  ;;  %v3642_v56 = vmul.f32 %v2999_v41, %v2999_v41  ;;  %v4964_v29 = vadd.f32 %v4963_v18, %v2618_v48  ;;  %v2620_v24 = vpop.f32.mrb[111].mxu0  ;;  %v3431_v61 = vadd.f32 %v7654_v30, %v3430_v26 }
 0x3ab   :  { %v3897_v50 = vadd.f32 %v3896_v38, %v3834_v43  ;;  %v3765_v40 = vadd.f32 %v3764_v20, %v3426_v6  ;;  %v3837_v23 = vmul.f32 %v3436_v37, %v3436_v37  ;;  %v8553_v6 = vld [vmem:[#allocation18_spill] sm:$0xff] }
 0x3ac   :  { %v3705_v31 = vadd.f32 %v3704_v45, %v3642_v56  ;;  %v3004_v22 = vadd.f32 %v4964_v29, %v8551_v8  ;;  %v3836_v19 = vmul.f32 %v3431_v61, %v3431_v61  ;;  %v4543_v21 = vpop.f32.mrb[240].mxu1 }
 0x3ad   :  { %v3766_v46 = vadd.f32 %v3765_v40, %v3431_v61  ;;  %v3898_v7 = vadd.f32 %v3897_v50, %v3835_v53  ;;  %v2623_v32 = vpop.f32.mrb[112].mxu0  ;;  %v3440_v52 = vpop.f32.mrb[241].mxu1  ;;  %v3446_v5 = vadd.f32 %v4543_v21, %v7654_v30 }
 0x3ae   :  { %3102 = vst [vmem:[#allocation8 + $0x1b8] sm:$0xff] %v3004_v22  ;;  %v3573_v58 = vadd.f32 %v3572_v11, %v3004_v22  ;;  %v3643_v14 = vmul.f32 %v3004_v22, %v3004_v22  ;;  %v4966_v57 = vadd.f32 %v4965_v60, %v2623_v32  ;;  %v2625_v44 = vpop.f32.mrb[113].mxu0  ;;  %v3441_v39 = vadd.f32 %v7654_v30, %v3440_v52 }
 0x3af   :  { %v3899_v25 = vadd.f32 %v3898_v7, %v3836_v19  ;;  %v3767_v1 = vadd.f32 %v3766_v46, %v3436_v37  ;;  %v3839_v55 = vmul.f32 %v3446_v5, %v3446_v5  ;;  %v8555_v37 = vld [vmem:[#allocation34_spill] sm:$0xff] }
 0x3b0   :  { %v3706_v13 = vadd.f32 %v3705_v31, %v3643_v14  ;;  %v3009_v36 = vadd.f32 %v4966_v57, %v7628_v12  ;;  %v3838_v62 = vmul.f32 %v3441_v39, %v3441_v39  ;;  %v4546_v27 = vpop.f32.mrb[242].mxu1  ;;  %v4969_v12 = vadd.f32 %v7694_v0, %v8553_v6  ;;  %v8559_v6 = vld [vmem:[#allocation52_spill] sm:$0xff] }
 0x3b1   :  { %v3768_v28 = vadd.f32 %v3767_v1, %v3441_v39  ;;  %v3900_v51 = vadd.f32 %v3899_v25, %v3837_v23  ;;  %v2628_v42 = vpop.f32.mrb[114].mxu0  ;;  %v3450_v17 = vpop.f32.mrb[243].mxu1  ;;  %v3456_v63 = vadd.f32 %v4546_v27, %v7654_v30  ;;  %v4971_v40 = vadd.f32 %v7694_v0, %v8555_v37  ;;  %v8556_v23 = vld [vmem:[#allocation26_spill] sm:$0xff]  ;;  %v8557_v1 = vld [vmem:[#allocation49_spill] sm:$0xff]  ;;  %v8561_v37 = vld [vmem:[#allocation24_spill] sm:$0xff] }
 0x3b2   :  { %3103 = vst [vmem:[#allocation8 + $0x1c0] sm:$0xff] %v3009_v36  ;;  %v3574_v10 = vadd.f32 %v3573_v58, %v3009_v36  ;;  %v3644_v49 = vmul.f32 %v3009_v36, %v3009_v36  ;;  %v4968_v33 = vadd.f32 %v4967_v15, %v2628_v42  ;;  %v2630_v3 = vpop.f32.mrb[115].mxu0  ;;  %v3451_v9 = vadd.f32 %v7654_v30, %v3450_v17 }
 0x3b3   :  { %v3901_v59 = vadd.f32 %v3900_v51, %v3838_v62  ;;  %v3769_v54 = vadd.f32 %v3768_v28, %v3446_v5  ;;  %v3841_v24 = vmul.f32 %v3456_v63, %v3456_v63  ;;  %v4973_v25 = vadd.f32 %v7694_v0, %v8556_v23 }
 0x3b4   :  { %v3707_v34 = vadd.f32 %v3706_v13, %v3644_v49  ;;  %v3014_v18 = vadd.f32 %v4968_v33, %v8554_v16  ;;  %v3840_v45 = vmul.f32 %v3451_v9, %v3451_v9  ;;  %v4549_v41 = vpop.f32.mrb[244].mxu1 }
 0x3b5   :  { %v3770_v43 = vadd.f32 %v3769_v54, %v3451_v9  ;;  %v3902_v4 = vadd.f32 %v3901_v59, %v3839_v55  ;;  %v2633_v20 = vpop.f32.mrb[116].mxu0  ;;  %v3460_v38 = vpop.f32.mrb[245].mxu1  ;;  %v3466_v53 = vadd.f32 %v4549_v41, %v7654_v30  ;;  %v8558_v59 = vld [vmem:[#allocation37_spill] sm:$0xff] }
 0x3b6   :  { %3104 = vst [vmem:[#allocation8 + $0x1c8] sm:$0xff] %v3014_v18  ;;  %v3575_v48 = vadd.f32 %v3574_v10, %v3014_v18  ;;  %v3645_v26 = vmul.f32 %v3014_v18, %v3014_v18  ;;  %v4970_v11 = vadd.f32 %v4969_v12, %v2633_v20  ;;  %v2635_v56 = vpop.f32.mrb[117].mxu0  ;;  %v3461_v29 = vadd.f32 %v7654_v30, %v3460_v38  ;;  %v7802_v30 = vld [vmem:[%s7859_s4] ss:$0 sm:$0xff]  ;;  %s5435_s4 = smov [#allocation8]  }
 0x3b7   :  { %v3903_v61 = vadd.f32 %v3902_v4, %v3840_v45  ;;  %v3771_v50 = vadd.f32 %v3770_v43, %v3456_v63  ;;  %v3843_v57 = vmul.f32 %v3466_v53, %v3466_v53  ;;  %v4975_v63 = vadd.f32 %v7694_v0, %v8558_v59  ;;  %s3936_s17 = sshll.u32 %s5435_s4, 4  ;;  %s3937_s17 = int_to_ptr.vmem [resolvable:$true] %s3936_s17 }
 0x3b8   :  { %v3708_v47 = vadd.f32 %v3707_v34, %v3645_v26  ;;  %v3019_v60 = vadd.f32 %v4970_v11, %v7635_v2  ;;  %v3842_v31 = vmul.f32 %v3461_v29, %v3461_v29  ;;  %v4552_v8 = vpop.f32.mrb[246].mxu1  ;;  %s5376_s18 = scalar_lea.vmem %s3937_s17, 8192  ;;  %p5381_p11 = scmp.lt.s32.totalorder %s3937_s17, %s3937_s17 }
 0x3b9   :  { %v3772_v22 = vadd.f32 %v3771_v50, %v3461_v29  ;;  %v3904_v19 = vadd.f32 %v3903_v61, %v3841_v24  ;;  %v2638_v21 = vpop.f32.mrb[118].mxu0  ;;  %v3470_v46 = vpop.f32.mrb[247].mxu1  ;;  %v3476_v44 = vadd.f32 %v7802_v30, %v4552_v8  ;;  %v8560_v61 = vld [vmem:[#allocation19_spill] sm:$0xff]  ;;  %p5377_p10 = scmp.ne.s32.totalorder %s3937_s17, %s5376_s18  ;;  %p5382_p12 = scmp.lt.s32.totalorder %s5376_s18, %s5376_s18 }
 0x3ba   :  { %3105 = vst [vmem:[#allocation8 + $0x1d0] sm:$0xff] %v3019_v60  ;;  %v3576_v7 = vadd.f32 %v3575_v48, %v3019_v60  ;;  %v3646_v32 = vmul.f32 %v3019_v60, %v3019_v60  ;;  %v4972_v52 = vadd.f32 %v4971_v40, %v2638_v21  ;;  %v2640_v58 = vpop.f32.mrb[119].mxu0  ;;  %v3471_v14 = vadd.f32 %v7802_v30, %v3470_v46 }
 0x3bb   :  { %v3905_v2 = vadd.f32 %v3904_v19, %v3842_v31  ;;  %v3773_v39 = vadd.f32 %v3772_v22, %v3466_v53  ;;  %v3845_v33 = vmul.f32 %v3476_v44, %v3476_v44  ;;  %v4977_v53 = vadd.f32 %v7694_v0, %v8560_v61  ;;  %p5383_p13 = por %p5382_p12, %p5381_p11 }
 0x3bc   :  { %v3709_v5 = vadd.f32 %v3708_v47, %v3646_v32  ;;  %v3024_v35 = vadd.f32 %v4972_v52, %v8557_v1  ;;  %v3844_v15 = vmul.f32 %v3471_v14, %v3471_v14  ;;  %v4555_v13 = vpop.f32.mrb[248].mxu1 }
 0x3bd   :  { %v3774_v36 = vadd.f32 %v3773_v39, %v3471_v14  ;;  %v3906_v62 = vadd.f32 %v3905_v2, %v3843_v57  ;;  %v2643_v27 = vpop.f32.mrb[120].mxu0  ;;  %v3480_v28 = vpop.f32.mrb[249].mxu1  ;;  %v3486_v9 = vadd.f32 %v7802_v30, %v4555_v13  ;;  %p5384_p0 = pnand %p5383_p13, %p5377_p10 }
 0x3be   :  { %3106 = vst [vmem:[#allocation8 + $0x1d8] sm:$0xff] %v3024_v35  ;;  %v3577_v51 = vadd.f32 %v3576_v7, %v3024_v35  ;;  %v3647_v42 = vmul.f32 %v3024_v35, %v3024_v35  ;;  %v4974_v17 = vadd.f32 %v4973_v25, %v2643_v27  ;;  %v2645_v10 = vpop.f32.mrb[121].mxu0  ;;  %v3481_v49 = vadd.f32 %v7802_v30, %v3480_v28  ;;  %v8563_v25 = vld [vmem:[#allocation55_spill] sm:$0xff] }
 0x3bf   :  { %v3907_v3 = vadd.f32 %v3906_v62, %v3844_v15  ;;  %v3775_v55 = vadd.f32 %v3774_v36, %v3476_v44  ;;  %v3847_v11 = vmul.f32 %v3486_v9, %v3486_v9  ;;  %v8562_v44 = vld [vmem:[#allocation40_spill] sm:$0xff] }
 0x3c0   :  { %v3710_v54 = vadd.f32 %v3709_v5, %v3647_v42  ;;  %v3029_v12 = vadd.f32 %v4974_v17, %v8559_v6  ;;  %v3846_v34 = vmul.f32 %v3481_v49, %v3481_v49  ;;  %v4558_v16 = vpop.f32.mrb[250].mxu1  ;;  %v4979_v39 = vadd.f32 %v7694_v0, %v8562_v44 }
 0x3c1   :  { %v3776_v18 = vadd.f32 %v3775_v55, %v3481_v49  ;;  %v3908_v45 = vadd.f32 %v3907_v3, %v3845_v33  ;;  %v2648_v41 = vpop.f32.mrb[122].mxu0  ;;  %v3490_v43 = vpop.f32.mrb[251].mxu1  ;;  %v3496_v29 = vadd.f32 %v7802_v30, %v4558_v16 }
 0x3c2   :  { %3107 = vst [vmem:[#allocation8 + $0x1e0] sm:$0xff] %v3029_v12  ;;  %v3578_v4 = vadd.f32 %v3577_v51, %v3029_v12  ;;  %v3648_v20 = vmul.f32 %v3029_v12, %v3029_v12  ;;  %v4976_v38 = vadd.f32 %v4975_v63, %v2648_v41  ;;  %v2650_v48 = vpop.f32.mrb[123].mxu0  ;;  %v3491_v26 = vadd.f32 %v7802_v30, %v3490_v43 }
 0x3c3   :  { %v3909_v56 = vadd.f32 %v3908_v45, %v3846_v34  ;;  %v3777_v24 = vadd.f32 %v3776_v18, %v3486_v9  ;;  %v3849_v58 = vmul.f32 %v3496_v29, %v3496_v29  ;;  %v8564_v9 = vld [vmem:[#allocation35_spill] sm:$0xff] }
 0x3c4   :  { %v3711_v50 = vadd.f32 %v3710_v54, %v3648_v20  ;;  %v3034_v40 = vadd.f32 %v4976_v38, %v8561_v37  ;;  %v3848_v47 = vmul.f32 %v3491_v26, %v3491_v26  ;;  %v4561_v60 = vpop.f32.mrb[252].mxu1 }
 0x3c5   :  { %v3778_v31 = vadd.f32 %v3777_v24, %v3491_v26  ;;  %v3910_v8 = vadd.f32 %v3909_v56, %v3847_v11  ;;  %v2653_v22 = vpop.f32.mrb[124].mxu0  ;;  %v3500_v19 = vpop.f32.mrb[253].mxu1  ;;  %v3506_v57 = vadd.f32 %v7802_v30, %v4561_v60 }
 0x3c6   :  { %3108 = vst [vmem:[#allocation8 + $0x1e8] sm:$0xff] %v3034_v40  ;;  %v3579_v21 = vadd.f32 %v3578_v4, %v3034_v40  ;;  %v3649_v46 = vmul.f32 %v3034_v40, %v3034_v40  ;;  %v4978_v7 = vadd.f32 %v4977_v53, %v2653_v22  ;;  %v2655_v32 = vpop.f32.mrb[125].mxu0  ;;  %v3501_v52 = vadd.f32 %v7802_v30, %v3500_v19 }
 0x3c7   :  { %v3911_v14 = vadd.f32 %v3910_v8, %v3848_v47  ;;  %v3779_v2 = vadd.f32 %v3778_v31, %v3496_v29  ;;  %v3851_v10 = vmul.f32 %v3506_v57, %v3506_v57 }
 0x3c8   :  { %v3712_v23 = vadd.f32 %v3711_v50, %v3649_v46  ;;  %v3039_v5 = vadd.f32 %v4978_v7, %v8563_v25  ;;  %v3850_v1 = vmul.f32 %v3501_v52, %v3501_v52  ;;  %v4564_v35 = vpop.f32.mrb[254].mxu1 }
 0x3c9   :  { %v3780_v15 = vadd.f32 %v3779_v2, %v3501_v52  ;;  %v3912_v13 = vadd.f32 %v3911_v14, %v3849_v58  ;;  %v2658_v36 = vpop.f32.mrb[126].mxu0  ;;  %v3510_v62 = vpop.f32.mrb[255].mxu1  ;;  %v3516_v49 = vadd.f32 %v7802_v30, %v4564_v35 }
 0x3ca   :  { %3109 = vst [vmem:[#allocation8 + $0x1f0] sm:$0xff] %v3039_v5  ;;  %v3580_v27 = vadd.f32 %v3579_v21, %v3039_v5  ;;  %v3650_v28 = vmul.f32 %v3039_v5, %v3039_v5  ;;  %v4980_v51 = vadd.f32 %v4979_v39, %v2658_v36  ;;  %v2660_v42 = vpop.f32.mrb[127].mxu0  ;;  %v3511_v17 = vadd.f32 %v7802_v30, %v3510_v62 }
 0x3cb   :  { %v3913_v0 = vadd.f32 %v3912_v13, %v3850_v1  ;;  %v3781_v33 = vadd.f32 %v3780_v15, %v3506_v57  ;;  %v3853_v34 = vmul.f32 %v3516_v49, %v3516_v49 }
 0x3cc   :  { %v3713_v3 = vadd.f32 %v3712_v23, %v3650_v28  ;;  %v3044_v55 = vadd.f32 %v4980_v51, %v8564_v9  ;;  %v3852_v59 = vmul.f32 %v3511_v17, %v3511_v17 }
 0x3cd   :  { %v3782_v63 = vadd.f32 %v3781_v33, %v3511_v17  ;;  %v3914_v54 = vadd.f32 %v3913_v0, %v3851_v10 }
 0x3ce   :  { %3110 = vst [vmem:[#allocation8 + $0x1f8] sm:$0xff] %v3044_v55  ;;  %v3581_v6 = vadd.f32 %v3580_v27, %v3044_v55  ;;  %v3651_v12 = vmul.f32 %v3044_v55, %v3044_v55 }
 0x3cf   :  { %v3783_v16 = vadd.f32 %v3782_v63, %v3516_v49  ;;  %v3915_v18 = vadd.f32 %v3914_v54, %v3852_v59 }
 0x3d0   :  { %5387 = shalt.err (!%p5384_p0)
}
 0x3d1   :  { %s5388_s1 = scalar_lea.hbm %s7860_s5, 8192 }
 0x3d2   :  { %p5389_p1 = scmp.ne.s32.totalorder %s7860_s5, %s5388_s1  ;;  %p5392_p2 = scmp.lt.u32.totalorder %s5388_s1, %s7860_s5 }
 0x3d4   :  { %p5394_p3 = pnand %p5392_p2, %p5389_p1 }
 0x3d6   :  { %5397 = shalt.err (!%p5394_p3)
}
 0x3d7   :  { %3942 = dma.vmem_to_hbm [thread:$0]  %s3937_s17, 8192, %s7860_s5, [#allocation4], %s5430_s9, %s5430_s9, %s5431_s10   ;;  %v3582_v30 = vrot.slane %v3581_v6, 4  ;;  %v3714_v45 = vadd.f32 %v3713_v3, %v3651_v12  ;;  %v3784_v41 = vrot.slane %v3783_v16, 4  ;;  %v3916_v43 = vadd.f32 %v3915_v18, %v3853_v34 }
 0x3d8   :  { %vm3924_vm4 = vcmask 1041408   ;;  %vm3926_vm5 = vcmask 1042432   ;;  %s5436_s5 = smov [#allocation9]   ;;  %vm3928_vm6 = vcmask 1043456  }
 0x3d9   :  { %v3583_v4 = vadd.f32 %v3582_v30, %v3581_v6  ;;  %v3715_v20 = vrot.slane %v3714_v45, 4  ;;  %v3785_v38 = vadd.f32 %v3784_v41, %v3783_v16  ;;  %v3917_v48 = vrot.slane %v3916_v43, 4  ;;  %s3949_s9 = sshll.u32 %s5436_s5, 4  ;;  %s3950_s9 = int_to_ptr.vmem [resolvable:$true] %s3949_s9 }
 0x3da   :  { %s5398_s10 = scalar_lea.vmem %s3950_s9, 128  ;;  %p5403_p5 = scmp.lt.s32.totalorder %s3950_s9, %s3950_s9 }
 0x3db   :  { %v3584_v26 = vrot.slane %v3583_v4, 2  ;;  %v3716_v11 = vadd.f32 %v3715_v20, %v3714_v45  ;;  %v3786_v56 = vrot.slane %v3785_v38, 2  ;;  %v3918_v29 = vadd.f32 %v3917_v48, %v3916_v43  ;;  %p5399_p4 = scmp.ne.s32.totalorder %s3950_s9, %s5398_s10  ;;  %p5404_p6 = scmp.lt.s32.totalorder %s5398_s10, %s5398_s10 }
 0x3dd   :  { %v3585_v24 = vadd.f32 %v3584_v26, %v3583_v4  ;;  %v3717_v61 = vrot.slane %v3716_v11, 2  ;;  %v3787_v53 = vadd.f32 %v3786_v56, %v3785_v38  ;;  %v3919_v50 = vrot.slane %v3918_v29, 2  ;;  %p5405_p7 = por %p5404_p6, %p5403_p5 }
 0x3df   :  { %v3586_v37 = vrot.slane %v3585_v24, 1  ;;  %v3718_v40 = vadd.f32 %v3717_v61, %v3716_v11  ;;  %v3788_v47 = vrot.slane %v3787_v53, 1  ;;  %v3920_v60 = vadd.f32 %v3919_v50, %v3918_v29  ;;  %p5406_p8 = pnand %p5405_p7, %p5399_p4 }
 0x3e1   :  { %v3719_v31 = vrot.slane %v3718_v40, 1  ;;  %v3921_v8 = vrot.slane %v3920_v60, 1  ;;  %v3587_v22 = vadd.f32 %v3586_v37, %v3585_v24  ;;  %v3789_v21 = vadd.f32 %v3788_v47, %v3787_v53 }
 0x3e3   :  { %v3720_v19 = vadd.f32 %v3719_v31, %v3718_v40  ;;  %v3922_v46 = vadd.f32 %v3921_v8, %v3920_v60 }
 0x3e5   :  { %v3923_v7 = vsel %vm161_vm0, %v3587_v22, %v3720_v19 }
 0x3e6   :  { %v3925_v32 = vsel %vm3924_vm4, %v3923_v7, %v3789_v21 }
 0x3e7   :  { %v3927_v52 = vsel %vm3926_vm5, %v3925_v32, %v3922_v46 }
 0x3e8   :  { %v3929_v58 = vsel %vm3928_vm6, %v3927_v52, 0.0 }
 0x3e9   :  { %3930 = vst [vmem:[#allocation9] sm:$0xff] %v3929_v58 }
 0x3ea   :  { %5409 = shalt.err (!%p5406_p8)
}
 0x3eb   :  { %s5410_s30 = scalar_lea.hbm %s7861_s6, 128 }
 0x3ec   :  { %p5411_p9 = scmp.ne.s32.totalorder %s7861_s6, %s5410_s30  ;;  %p5414_p10 = scmp.lt.u32.totalorder %s5410_s30, %s7861_s6 }
 0x3ee   :  { %p5416_p11 = pnand %p5414_p10, %p5411_p9 }
 0x3f0   :  { %5419 = shalt.err (!%p5416_p11)
}
 0x3f1   :  { %3952 = dma.vmem_to_hbm [thread:$0]  %s3950_s9, 128, %s7861_s6, [#allocation10]  }
 0x3f2   :  { %5424 = dma.done.wait [#allocation4], 8192  }
 0x3f3   :  { %5425 = vsyncadd [#allocation4], 4294959104 }
 0x3f4   :  { %5426 = dma.done.wait [#allocation10], 128  }
 0x3f5   :  { %5427 = vsyncadd [#allocation10], 4294967168 }
 0x3f6   :  { %3959 = vsyncpa [#allocation3], 1 }
 0x3f7   :  { %3960 = vsyncpa [#allocation6], 1 }
 0x3f8   :  { %3961 = vsyncpa [#allocation4], 1 }
 0x3f9   :  { %3962 = vsyncpa [#allocation10], 1 }

</bundles_post_ra>
